<compile_context>
chip_gen: v7x
topology: tpu7x:2x2x1
jax: 0.10.0
libtpu: 0.0.40
codegen_flags: <defaults>
</compile_context>

<pallas_src>
import jax
import jax.numpy as jnp
from jax.experimental import pallas as pl
from jax.experimental.pallas import tpu as pltpu

# ---- static problem sizes implied by MyCovnNet ----
N = 2            # batch
C_IN = 3         # in_channels
C_OUT = 3        # out_channels
H = 16           # spatial height
W = 16           # spatial width
KH, KW = 3, 3    # kernel size
H_OUT = H - KH + 1            # 14 (stride=1, padding=0 / VALID)
W_OUT = W - KW + 1            # 14
K = C_IN * KH * KW            # 27 contraction taps


def conv2d_fused_kernel(x_ref, w_ref, b_ref, o_ref):
    """Fully fused Conv2d(3->3, 3x3, stride=1, VALID) forward.

    x_ref: VMEM (N, C_IN, H, W)          f32  raw NCHW input (no wrapper im2col)
    w_ref: SMEM (C_OUT, C_IN*KH*KW)      f32  flattened OIHW weights (scalar table)
    b_ref: SMEM (C_OUT,)                 f32  bias
    o_ref: VMEM (N, C_OUT, H_OUT, W_OUT) f32  NCHW output (no wrapper relayout)
    """
    x = x_ref[...]                                        # (2, 3, 16, 16), ~6 KiB

    # One accumulator per output channel, initialized with the bias.
    accs = [jnp.full((N, H_OUT, W_OUT), b_ref[co], jnp.float32)
            for co in range(C_OUT)]

    # 27 static shifted slices; each slice is FMA'd into all 3 output channels
    # with a scalar weight read from SMEM.  Pure f32 VPU work (exact).
    for ci in range(C_IN):
        for ky in range(KH):
            for kx in range(KW):
                k = ci * KH * KW + ky * KW + kx
                tap = x[:, ci, ky:ky + H_OUT, kx:kx + W_OUT]   # (N, 14, 14)
                for co in range(C_OUT):
                    accs[co] = accs[co] + w_ref[co, k] * tap

    for co in range(C_OUT):
        o_ref[:, co, :, :] = accs[co]


@jax.jit
def my_covn_net_forward(x, weight, bias):
    """x: (N, C_IN, H, W); weight: (C_OUT, C_IN, KH, KW); bias: (C_OUT,)."""
    x = x.astype(jnp.float32)
    w2 = weight.astype(jnp.float32).reshape(C_OUT, K)     # tiny, jit-fused
    b = bias.astype(jnp.float32)

    flops = 2 * N * C_OUT * H_OUT * W_OUT * K              # ~63.5 KFLOPs
    bytes_accessed = 4 * (N * C_IN * H * W + C_OUT * K + C_OUT
                          + N * C_OUT * H_OUT * W_OUT)

    out = pl.pallas_call(
        conv2d_fused_kernel,
        out_shape=jax.ShapeDtypeStruct((N, C_OUT, H_OUT, W_OUT), jnp.float32),
        in_specs=[
            pl.BlockSpec(memory_space=pltpu.MemorySpace.VMEM),   # x
            pl.BlockSpec(memory_space=pltpu.MemorySpace.SMEM),   # weights
            pl.BlockSpec(memory_space=pltpu.MemorySpace.SMEM),   # bias
        ],
        out_specs=pl.BlockSpec(memory_space=pltpu.MemorySpace.VMEM),
        cost_estimate=pl.CostEstimate(
            flops=flops, transcendentals=0, bytes_accessed=bytes_accessed),
    )(x, w2, b)
    return out.astype(x.dtype)   # already NCHW; no post-kernel relayout ops


def _reference_conv(x, weight, bias):
    # Pure-JAX reference (NCHW, OIHW, VALID), pinned precision so the
    # comparison against the exact-f32 Pallas kernel is well-defined.
    out = jax.lax.conv_general_dilated(
        x, weight, window_strides=(1, 1), padding="VALID",
        dimension_numbers=("NCHW", "OIHW", "NCHW"),
        precision=jax.lax.Precision.HIGHEST)
    return out + bias.reshape(1, C_OUT, 1, 1)


if __name__ == "__main__":
    key = jax.random.PRNGKey(0)
    kx, kw, kb = jax.random.split(key, 3)

    # Deterministic synthetic parameters (PyTorch-like uniform init bound).
    fan_in = C_IN * KH * KW
    bound = 1.0 / (fan_in ** 0.5)
    weight = jax.random.uniform(kw, (C_OUT, C_IN, KH, KW),
                                minval=-bound, maxval=bound,
                                dtype=jnp.float32)
    bias = jax.random.uniform(kb, (C_OUT,), minval=-bound, maxval=bound,
                              dtype=jnp.float32)
    x = jax.random.normal(kx, (N, C_IN, H, W), dtype=jnp.float32)

    out = my_covn_net_forward(x, weight, bias)
    out = jax.block_until_ready(out)

    ref = jax.block_until_ready(_reference_conv(x, weight, bias))
    assert out.shape == (N, C_OUT, H_OUT, W_OUT)
    assert jnp.allclose(out, ref, atol=1e-5, rtol=1e-5)

    print("KERNEL_OK")
</pallas_src>

<mosaic_0001>
module attributes {stable_mosaic.version = 11 : i64} {
  func.func @conv2d_fused_kernel(%arg0: memref<2x3x16x16xf32, #tpu.memory_space<vmem>>, %arg1: memref<3x27xf32, #tpu.memory_space<smem>>, %arg2: memref<3xf32, #tpu.memory_space<smem>>, %arg3: memref<2x3x14x14xf32, #tpu.memory_space<vmem>>) attributes {dimension_semantics = [], scalar_prefetch = 0 : i64, scratch_operands = 0 : i64, tpu.core_type = #tpu.core_type<tc>} {
    %c0 = arith.constant 0 : index
    %c0_0 = arith.constant 0 : index
    %c0_1 = arith.constant 0 : index
    %c0_2 = arith.constant 0 : index
    %0 = vector.load %arg0[%c0, %c0_0, %c0_1, %c0_2] : memref<2x3x16x16xf32, #tpu.memory_space<vmem>>, vector<2x3x16x16xf32>
    %c0_3 = arith.constant 0 : index
    %1 = memref.load %arg2[%c0_3] : memref<3xf32, #tpu.memory_space<smem>>
    %2 = vector.broadcast %1 : f32 to vector<2x14x14xf32>
    %c1 = arith.constant 1 : index
    %3 = memref.load %arg2[%c1] : memref<3xf32, #tpu.memory_space<smem>>
    %4 = vector.broadcast %3 : f32 to vector<2x14x14xf32>
    %c2 = arith.constant 2 : index
    %5 = memref.load %arg2[%c2] : memref<3xf32, #tpu.memory_space<smem>>
    %6 = vector.broadcast %5 : f32 to vector<2x14x14xf32>
    %7 = vector.extract_strided_slice %0 {offsets = [0, 0, 0, 0], sizes = [2, 1, 14, 14], strides = [1, 1, 1, 1]} : vector<2x3x16x16xf32> to vector<2x1x14x14xf32>
    %8 = vector.shape_cast %7 : vector<2x1x14x14xf32> to vector<2x14x14xf32>
    %c0_4 = arith.constant 0 : index
    %c0_5 = arith.constant 0 : index
    %9 = memref.load %arg1[%c0_4, %c0_5] : memref<3x27xf32, #tpu.memory_space<smem>>
    %10 = vector.broadcast %9 : f32 to vector<2x14x14xf32>
    %11 = arith.mulf %10, %8 : vector<2x14x14xf32>
    %12 = arith.addf %2, %11 : vector<2x14x14xf32>
    %c1_6 = arith.constant 1 : index
    %c0_7 = arith.constant 0 : index
    %13 = memref.load %arg1[%c1_6, %c0_7] : memref<3x27xf32, #tpu.memory_space<smem>>
    %14 = vector.broadcast %13 : f32 to vector<2x14x14xf32>
    %15 = arith.mulf %14, %8 : vector<2x14x14xf32>
    %16 = arith.addf %4, %15 : vector<2x14x14xf32>
    %c2_8 = arith.constant 2 : index
    %c0_9 = arith.constant 0 : index
    %17 = memref.load %arg1[%c2_8, %c0_9] : memref<3x27xf32, #tpu.memory_space<smem>>
    %18 = vector.broadcast %17 : f32 to vector<2x14x14xf32>
    %19 = arith.mulf %18, %8 : vector<2x14x14xf32>
    %20 = arith.addf %6, %19 : vector<2x14x14xf32>
    %21 = vector.extract_strided_slice %0 {offsets = [0, 0, 0, 1], sizes = [2, 1, 14, 14], strides = [1, 1, 1, 1]} : vector<2x3x16x16xf32> to vector<2x1x14x14xf32>
    %22 = vector.shape_cast %21 : vector<2x1x14x14xf32> to vector<2x14x14xf32>
    %c0_10 = arith.constant 0 : index
    %c1_11 = arith.constant 1 : index
    %23 = memref.load %arg1[%c0_10, %c1_11] : memref<3x27xf32, #tpu.memory_space<smem>>
    %24 = vector.broadcast %23 : f32 to vector<2x14x14xf32>
    %25 = arith.mulf %24, %22 : vector<2x14x14xf32>
    %26 = arith.addf %12, %25 : vector<2x14x14xf32>
    %c1_12 = arith.constant 1 : index
    %c1_13 = arith.constant 1 : index
    %27 = memref.load %arg1[%c1_12, %c1_13] : memref<3x27xf32, #tpu.memory_space<smem>>
    %28 = vector.broadcast %27 : f32 to vector<2x14x14xf32>
    %29 = arith.mulf %28, %22 : vector<2x14x14xf32>
    %30 = arith.addf %16, %29 : vector<2x14x14xf32>
    %c2_14 = arith.constant 2 : index
    %c1_15 = arith.constant 1 : index
    %31 = memref.load %arg1[%c2_14, %c1_15] : memref<3x27xf32, #tpu.memory_space<smem>>
    %32 = vector.broadcast %31 : f32 to vector<2x14x14xf32>
    %33 = arith.mulf %32, %22 : vector<2x14x14xf32>
    %34 = arith.addf %20, %33 : vector<2x14x14xf32>
    %35 = vector.extract_strided_slice %0 {offsets = [0, 0, 0, 2], sizes = [2, 1, 14, 14], strides = [1, 1, 1, 1]} : vector<2x3x16x16xf32> to vector<2x1x14x14xf32>
    %36 = vector.shape_cast %35 : vector<2x1x14x14xf32> to vector<2x14x14xf32>
    %c0_16 = arith.constant 0 : index
    %c2_17 = arith.constant 2 : index
    %37 = memref.load %arg1[%c0_16, %c2_17] : memref<3x27xf32, #tpu.memory_space<smem>>
    %38 = vector.broadcast %37 : f32 to vector<2x14x14xf32>
    %39 = arith.mulf %38, %36 : vector<2x14x14xf32>
    %40 = arith.addf %26, %39 : vector<2x14x14xf32>
    %c1_18 = arith.constant 1 : index
    %c2_19 = arith.constant 2 : index
    %41 = memref.load %arg1[%c1_18, %c2_19] : memref<3x27xf32, #tpu.memory_space<smem>>
    %42 = vector.broadcast %41 : f32 to vector<2x14x14xf32>
    %43 = arith.mulf %42, %36 : vector<2x14x14xf32>
    %44 = arith.addf %30, %43 : vector<2x14x14xf32>
    %c2_20 = arith.constant 2 : index
    %c2_21 = arith.constant 2 : index
    %45 = memref.load %arg1[%c2_20, %c2_21] : memref<3x27xf32, #tpu.memory_space<smem>>
    %46 = vector.broadcast %45 : f32 to vector<2x14x14xf32>
    %47 = arith.mulf %46, %36 : vector<2x14x14xf32>
    %48 = arith.addf %34, %47 : vector<2x14x14xf32>
    %49 = vector.extract_strided_slice %0 {offsets = [0, 0, 1, 0], sizes = [2, 1, 14, 14], strides = [1, 1, 1, 1]} : vector<2x3x16x16xf32> to vector<2x1x14x14xf32>
    %50 = vector.shape_cast %49 : vector<2x1x14x14xf32> to vector<2x14x14xf32>
    %c0_22 = arith.constant 0 : index
    %c3 = arith.constant 3 : index
    %51 = memref.load %arg1[%c0_22, %c3] : memref<3x27xf32, #tpu.memory_space<smem>>
    %52 = vector.broadcast %51 : f32 to vector<2x14x14xf32>
    %53 = arith.mulf %52, %50 : vector<2x14x14xf32>
    %54 = arith.addf %40, %53 : vector<2x14x14xf32>
    %c1_23 = arith.constant 1 : index
    %c3_24 = arith.constant 3 : index
    %55 = memref.load %arg1[%c1_23, %c3_24] : memref<3x27xf32, #tpu.memory_space<smem>>
    %56 = vector.broadcast %55 : f32 to vector<2x14x14xf32>
    %57 = arith.mulf %56, %50 : vector<2x14x14xf32>
    %58 = arith.addf %44, %57 : vector<2x14x14xf32>
    %c2_25 = arith.constant 2 : index
    %c3_26 = arith.constant 3 : index
    %59 = memref.load %arg1[%c2_25, %c3_26] : memref<3x27xf32, #tpu.memory_space<smem>>
    %60 = vector.broadcast %59 : f32 to vector<2x14x14xf32>
    %61 = arith.mulf %60, %50 : vector<2x14x14xf32>
    %62 = arith.addf %48, %61 : vector<2x14x14xf32>
    %63 = vector.extract_strided_slice %0 {offsets = [0, 0, 1, 1], sizes = [2, 1, 14, 14], strides = [1, 1, 1, 1]} : vector<2x3x16x16xf32> to vector<2x1x14x14xf32>
    %64 = vector.shape_cast %63 : vector<2x1x14x14xf32> to vector<2x14x14xf32>
    %c0_27 = arith.constant 0 : index
    %c4 = arith.constant 4 : index
    %65 = memref.load %arg1[%c0_27, %c4] : memref<3x27xf32, #tpu.memory_space<smem>>
    %66 = vector.broadcast %65 : f32 to vector<2x14x14xf32>
    %67 = arith.mulf %66, %64 : vector<2x14x14xf32>
    %68 = arith.addf %54, %67 : vector<2x14x14xf32>
    %c1_28 = arith.constant 1 : index
    %c4_29 = arith.constant 4 : index
    %69 = memref.load %arg1[%c1_28, %c4_29] : memref<3x27xf32, #tpu.memory_space<smem>>
    %70 = vector.broadcast %69 : f32 to vector<2x14x14xf32>
    %71 = arith.mulf %70, %64 : vector<2x14x14xf32>
    %72 = arith.addf %58, %71 : vector<2x14x14xf32>
    %c2_30 = arith.constant 2 : index
    %c4_31 = arith.constant 4 : index
    %73 = memref.load %arg1[%c2_30, %c4_31] : memref<3x27xf32, #tpu.memory_space<smem>>
    %74 = vector.broadcast %73 : f32 to vector<2x14x14xf32>
    %75 = arith.mulf %74, %64 : vector<2x14x14xf32>
    %76 = arith.addf %62, %75 : vector<2x14x14xf32>
    %77 = vector.extract_strided_slice %0 {offsets = [0, 0, 1, 2], sizes = [2, 1, 14, 14], strides = [1, 1, 1, 1]} : vector<2x3x16x16xf32> to vector<2x1x14x14xf32>
    %78 = vector.shape_cast %77 : vector<2x1x14x14xf32> to vector<2x14x14xf32>
    %c0_32 = arith.constant 0 : index
    %c5 = arith.constant 5 : index
    %79 = memref.load %arg1[%c0_32, %c5] : memref<3x27xf32, #tpu.memory_space<smem>>
    %80 = vector.broadcast %79 : f32 to vector<2x14x14xf32>
    %81 = arith.mulf %80, %78 : vector<2x14x14xf32>
    %82 = arith.addf %68, %81 : vector<2x14x14xf32>
    %c1_33 = arith.constant 1 : index
    %c5_34 = arith.constant 5 : index
    %83 = memref.load %arg1[%c1_33, %c5_34] : memref<3x27xf32, #tpu.memory_space<smem>>
    %84 = vector.broadcast %83 : f32 to vector<2x14x14xf32>
    %85 = arith.mulf %84, %78 : vector<2x14x14xf32>
    %86 = arith.addf %72, %85 : vector<2x14x14xf32>
    %c2_35 = arith.constant 2 : index
    %c5_36 = arith.constant 5 : index
    %87 = memref.load %arg1[%c2_35, %c5_36] : memref<3x27xf32, #tpu.memory_space<smem>>
    %88 = vector.broadcast %87 : f32 to vector<2x14x14xf32>
    %89 = arith.mulf %88, %78 : vector<2x14x14xf32>
    %90 = arith.addf %76, %89 : vector<2x14x14xf32>
    %91 = vector.extract_strided_slice %0 {offsets = [0, 0, 2, 0], sizes = [2, 1, 14, 14], strides = [1, 1, 1, 1]} : vector<2x3x16x16xf32> to vector<2x1x14x14xf32>
    %92 = vector.shape_cast %91 : vector<2x1x14x14xf32> to vector<2x14x14xf32>
    %c0_37 = arith.constant 0 : index
    %c6 = arith.constant 6 : index
    %93 = memref.load %arg1[%c0_37, %c6] : memref<3x27xf32, #tpu.memory_space<smem>>
    %94 = vector.broadcast %93 : f32 to vector<2x14x14xf32>
    %95 = arith.mulf %94, %92 : vector<2x14x14xf32>
    %96 = arith.addf %82, %95 : vector<2x14x14xf32>
    %c1_38 = arith.constant 1 : index
    %c6_39 = arith.constant 6 : index
    %97 = memref.load %arg1[%c1_38, %c6_39] : memref<3x27xf32, #tpu.memory_space<smem>>
    %98 = vector.broadcast %97 : f32 to vector<2x14x14xf32>
    %99 = arith.mulf %98, %92 : vector<2x14x14xf32>
    %100 = arith.addf %86, %99 : vector<2x14x14xf32>
    %c2_40 = arith.constant 2 : index
    %c6_41 = arith.constant 6 : index
    %101 = memref.load %arg1[%c2_40, %c6_41] : memref<3x27xf32, #tpu.memory_space<smem>>
    %102 = vector.broadcast %101 : f32 to vector<2x14x14xf32>
    %103 = arith.mulf %102, %92 : vector<2x14x14xf32>
    %104 = arith.addf %90, %103 : vector<2x14x14xf32>
    %105 = vector.extract_strided_slice %0 {offsets = [0, 0, 2, 1], sizes = [2, 1, 14, 14], strides = [1, 1, 1, 1]} : vector<2x3x16x16xf32> to vector<2x1x14x14xf32>
    %106 = vector.shape_cast %105 : vector<2x1x14x14xf32> to vector<2x14x14xf32>
    %c0_42 = arith.constant 0 : index
    %c7 = arith.constant 7 : index
    %107 = memref.load %arg1[%c0_42, %c7] : memref<3x27xf32, #tpu.memory_space<smem>>
    %108 = vector.broadcast %107 : f32 to vector<2x14x14xf32>
    %109 = arith.mulf %108, %106 : vector<2x14x14xf32>
    %110 = arith.addf %96, %109 : vector<2x14x14xf32>
    %c1_43 = arith.constant 1 : index
    %c7_44 = arith.constant 7 : index
    %111 = memref.load %arg1[%c1_43, %c7_44] : memref<3x27xf32, #tpu.memory_space<smem>>
    %112 = vector.broadcast %111 : f32 to vector<2x14x14xf32>
    %113 = arith.mulf %112, %106 : vector<2x14x14xf32>
    %114 = arith.addf %100, %113 : vector<2x14x14xf32>
    %c2_45 = arith.constant 2 : index
    %c7_46 = arith.constant 7 : index
    %115 = memref.load %arg1[%c2_45, %c7_46] : memref<3x27xf32, #tpu.memory_space<smem>>
    %116 = vector.broadcast %115 : f32 to vector<2x14x14xf32>
    %117 = arith.mulf %116, %106 : vector<2x14x14xf32>
    %118 = arith.addf %104, %117 : vector<2x14x14xf32>
    %119 = vector.extract_strided_slice %0 {offsets = [0, 0, 2, 2], sizes = [2, 1, 14, 14], strides = [1, 1, 1, 1]} : vector<2x3x16x16xf32> to vector<2x1x14x14xf32>
    %120 = vector.shape_cast %119 : vector<2x1x14x14xf32> to vector<2x14x14xf32>
    %c0_47 = arith.constant 0 : index
    %c8 = arith.constant 8 : index
    %121 = memref.load %arg1[%c0_47, %c8] : memref<3x27xf32, #tpu.memory_space<smem>>
    %122 = vector.broadcast %121 : f32 to vector<2x14x14xf32>
    %123 = arith.mulf %122, %120 : vector<2x14x14xf32>
    %124 = arith.addf %110, %123 : vector<2x14x14xf32>
    %c1_48 = arith.constant 1 : index
    %c8_49 = arith.constant 8 : index
    %125 = memref.load %arg1[%c1_48, %c8_49] : memref<3x27xf32, #tpu.memory_space<smem>>
    %126 = vector.broadcast %125 : f32 to vector<2x14x14xf32>
    %127 = arith.mulf %126, %120 : vector<2x14x14xf32>
    %128 = arith.addf %114, %127 : vector<2x14x14xf32>
    %c2_50 = arith.constant 2 : index
    %c8_51 = arith.constant 8 : index
    %129 = memref.load %arg1[%c2_50, %c8_51] : memref<3x27xf32, #tpu.memory_space<smem>>
    %130 = vector.broadcast %129 : f32 to vector<2x14x14xf32>
    %131 = arith.mulf %130, %120 : vector<2x14x14xf32>
    %132 = arith.addf %118, %131 : vector<2x14x14xf32>
    %133 = vector.extract_strided_slice %0 {offsets = [0, 1, 0, 0], sizes = [2, 1, 14, 14], strides = [1, 1, 1, 1]} : vector<2x3x16x16xf32> to vector<2x1x14x14xf32>
    %134 = vector.shape_cast %133 : vector<2x1x14x14xf32> to vector<2x14x14xf32>
    %c0_52 = arith.constant 0 : index
    %c9 = arith.constant 9 : index
    %135 = memref.load %arg1[%c0_52, %c9] : memref<3x27xf32, #tpu.memory_space<smem>>
    %136 = vector.broadcast %135 : f32 to vector<2x14x14xf32>
    %137 = arith.mulf %136, %134 : vector<2x14x14xf32>
    %138 = arith.addf %124, %137 : vector<2x14x14xf32>
    %c1_53 = arith.constant 1 : index
    %c9_54 = arith.constant 9 : index
    %139 = memref.load %arg1[%c1_53, %c9_54] : memref<3x27xf32, #tpu.memory_space<smem>>
    %140 = vector.broadcast %139 : f32 to vector<2x14x14xf32>
    %141 = arith.mulf %140, %134 : vector<2x14x14xf32>
    %142 = arith.addf %128, %141 : vector<2x14x14xf32>
    %c2_55 = arith.constant 2 : index
    %c9_56 = arith.constant 9 : index
    %143 = memref.load %arg1[%c2_55, %c9_56] : memref<3x27xf32, #tpu.memory_space<smem>>
    %144 = vector.broadcast %143 : f32 to vector<2x14x14xf32>
    %145 = arith.mulf %144, %134 : vector<2x14x14xf32>
    %146 = arith.addf %132, %145 : vector<2x14x14xf32>
    %147 = vector.extract_strided_slice %0 {offsets = [0, 1, 0, 1], sizes = [2, 1, 14, 14], strides = [1, 1, 1, 1]} : vector<2x3x16x16xf32> to vector<2x1x14x14xf32>
    %148 = vector.shape_cast %147 : vector<2x1x14x14xf32> to vector<2x14x14xf32>
    %c0_57 = arith.constant 0 : index
    %c10 = arith.constant 10 : index
    %149 = memref.load %arg1[%c0_57, %c10] : memref<3x27xf32, #tpu.memory_space<smem>>
    %150 = vector.broadcast %149 : f32 to vector<2x14x14xf32>
    %151 = arith.mulf %150, %148 : vector<2x14x14xf32>
    %152 = arith.addf %138, %151 : vector<2x14x14xf32>
    %c1_58 = arith.constant 1 : index
    %c10_59 = arith.constant 10 : index
    %153 = memref.load %arg1[%c1_58, %c10_59] : memref<3x27xf32, #tpu.memory_space<smem>>
    %154 = vector.broadcast %153 : f32 to vector<2x14x14xf32>
    %155 = arith.mulf %154, %148 : vector<2x14x14xf32>
    %156 = arith.addf %142, %155 : vector<2x14x14xf32>
    %c2_60 = arith.constant 2 : index
    %c10_61 = arith.constant 10 : index
    %157 = memref.load %arg1[%c2_60, %c10_61] : memref<3x27xf32, #tpu.memory_space<smem>>
    %158 = vector.broadcast %157 : f32 to vector<2x14x14xf32>
    %159 = arith.mulf %158, %148 : vector<2x14x14xf32>
    %160 = arith.addf %146, %159 : vector<2x14x14xf32>
    %161 = vector.extract_strided_slice %0 {offsets = [0, 1, 0, 2], sizes = [2, 1, 14, 14], strides = [1, 1, 1, 1]} : vector<2x3x16x16xf32> to vector<2x1x14x14xf32>
    %162 = vector.shape_cast %161 : vector<2x1x14x14xf32> to vector<2x14x14xf32>
    %c0_62 = arith.constant 0 : index
    %c11 = arith.constant 11 : index
    %163 = memref.load %arg1[%c0_62, %c11] : memref<3x27xf32, #tpu.memory_space<smem>>
    %164 = vector.broadcast %163 : f32 to vector<2x14x14xf32>
    %165 = arith.mulf %164, %162 : vector<2x14x14xf32>
    %166 = arith.addf %152, %165 : vector<2x14x14xf32>
    %c1_63 = arith.constant 1 : index
    %c11_64 = arith.constant 11 : index
    %167 = memref.load %arg1[%c1_63, %c11_64] : memref<3x27xf32, #tpu.memory_space<smem>>
    %168 = vector.broadcast %167 : f32 to vector<2x14x14xf32>
    %169 = arith.mulf %168, %162 : vector<2x14x14xf32>
    %170 = arith.addf %156, %169 : vector<2x14x14xf32>
    %c2_65 = arith.constant 2 : index
    %c11_66 = arith.constant 11 : index
    %171 = memref.load %arg1[%c2_65, %c11_66] : memref<3x27xf32, #tpu.memory_space<smem>>
    %172 = vector.broadcast %171 : f32 to vector<2x14x14xf32>
    %173 = arith.mulf %172, %162 : vector<2x14x14xf32>
    %174 = arith.addf %160, %173 : vector<2x14x14xf32>
    %175 = vector.extract_strided_slice %0 {offsets = [0, 1, 1, 0], sizes = [2, 1, 14, 14], strides = [1, 1, 1, 1]} : vector<2x3x16x16xf32> to vector<2x1x14x14xf32>
    %176 = vector.shape_cast %175 : vector<2x1x14x14xf32> to vector<2x14x14xf32>
    %c0_67 = arith.constant 0 : index
    %c12 = arith.constant 12 : index
    %177 = memref.load %arg1[%c0_67, %c12] : memref<3x27xf32, #tpu.memory_space<smem>>
    %178 = vector.broadcast %177 : f32 to vector<2x14x14xf32>
    %179 = arith.mulf %178, %176 : vector<2x14x14xf32>
    %180 = arith.addf %166, %179 : vector<2x14x14xf32>
    %c1_68 = arith.constant 1 : index
    %c12_69 = arith.constant 12 : index
    %181 = memref.load %arg1[%c1_68, %c12_69] : memref<3x27xf32, #tpu.memory_space<smem>>
    %182 = vector.broadcast %181 : f32 to vector<2x14x14xf32>
    %183 = arith.mulf %182, %176 : vector<2x14x14xf32>
    %184 = arith.addf %170, %183 : vector<2x14x14xf32>
    %c2_70 = arith.constant 2 : index
    %c12_71 = arith.constant 12 : index
    %185 = memref.load %arg1[%c2_70, %c12_71] : memref<3x27xf32, #tpu.memory_space<smem>>
    %186 = vector.broadcast %185 : f32 to vector<2x14x14xf32>
    %187 = arith.mulf %186, %176 : vector<2x14x14xf32>
    %188 = arith.addf %174, %187 : vector<2x14x14xf32>
    %189 = vector.extract_strided_slice %0 {offsets = [0, 1, 1, 1], sizes = [2, 1, 14, 14], strides = [1, 1, 1, 1]} : vector<2x3x16x16xf32> to vector<2x1x14x14xf32>
    %190 = vector.shape_cast %189 : vector<2x1x14x14xf32> to vector<2x14x14xf32>
    %c0_72 = arith.constant 0 : index
    %c13 = arith.constant 13 : index
    %191 = memref.load %arg1[%c0_72, %c13] : memref<3x27xf32, #tpu.memory_space<smem>>
    %192 = vector.broadcast %191 : f32 to vector<2x14x14xf32>
    %193 = arith.mulf %192, %190 : vector<2x14x14xf32>
    %194 = arith.addf %180, %193 : vector<2x14x14xf32>
    %c1_73 = arith.constant 1 : index
    %c13_74 = arith.constant 13 : index
    %195 = memref.load %arg1[%c1_73, %c13_74] : memref<3x27xf32, #tpu.memory_space<smem>>
    %196 = vector.broadcast %195 : f32 to vector<2x14x14xf32>
    %197 = arith.mulf %196, %190 : vector<2x14x14xf32>
    %198 = arith.addf %184, %197 : vector<2x14x14xf32>
    %c2_75 = arith.constant 2 : index
    %c13_76 = arith.constant 13 : index
    %199 = memref.load %arg1[%c2_75, %c13_76] : memref<3x27xf32, #tpu.memory_space<smem>>
    %200 = vector.broadcast %199 : f32 to vector<2x14x14xf32>
    %201 = arith.mulf %200, %190 : vector<2x14x14xf32>
    %202 = arith.addf %188, %201 : vector<2x14x14xf32>
    %203 = vector.extract_strided_slice %0 {offsets = [0, 1, 1, 2], sizes = [2, 1, 14, 14], strides = [1, 1, 1, 1]} : vector<2x3x16x16xf32> to vector<2x1x14x14xf32>
    %204 = vector.shape_cast %203 : vector<2x1x14x14xf32> to vector<2x14x14xf32>
    %c0_77 = arith.constant 0 : index
    %c14 = arith.constant 14 : index
    %205 = memref.load %arg1[%c0_77, %c14] : memref<3x27xf32, #tpu.memory_space<smem>>
    %206 = vector.broadcast %205 : f32 to vector<2x14x14xf32>
    %207 = arith.mulf %206, %204 : vector<2x14x14xf32>
    %208 = arith.addf %194, %207 : vector<2x14x14xf32>
    %c1_78 = arith.constant 1 : index
    %c14_79 = arith.constant 14 : index
    %209 = memref.load %arg1[%c1_78, %c14_79] : memref<3x27xf32, #tpu.memory_space<smem>>
    %210 = vector.broadcast %209 : f32 to vector<2x14x14xf32>
    %211 = arith.mulf %210, %204 : vector<2x14x14xf32>
    %212 = arith.addf %198, %211 : vector<2x14x14xf32>
    %c2_80 = arith.constant 2 : index
    %c14_81 = arith.constant 14 : index
    %213 = memref.load %arg1[%c2_80, %c14_81] : memref<3x27xf32, #tpu.memory_space<smem>>
    %214 = vector.broadcast %213 : f32 to vector<2x14x14xf32>
    %215 = arith.mulf %214, %204 : vector<2x14x14xf32>
    %216 = arith.addf %202, %215 : vector<2x14x14xf32>
    %217 = vector.extract_strided_slice %0 {offsets = [0, 1, 2, 0], sizes = [2, 1, 14, 14], strides = [1, 1, 1, 1]} : vector<2x3x16x16xf32> to vector<2x1x14x14xf32>
    %218 = vector.shape_cast %217 : vector<2x1x14x14xf32> to vector<2x14x14xf32>
    %c0_82 = arith.constant 0 : index
    %c15 = arith.constant 15 : index
    %219 = memref.load %arg1[%c0_82, %c15] : memref<3x27xf32, #tpu.memory_space<smem>>
    %220 = vector.broadcast %219 : f32 to vector<2x14x14xf32>
    %221 = arith.mulf %220, %218 : vector<2x14x14xf32>
    %222 = arith.addf %208, %221 : vector<2x14x14xf32>
    %c1_83 = arith.constant 1 : index
    %c15_84 = arith.constant 15 : index
    %223 = memref.load %arg1[%c1_83, %c15_84] : memref<3x27xf32, #tpu.memory_space<smem>>
    %224 = vector.broadcast %223 : f32 to vector<2x14x14xf32>
    %225 = arith.mulf %224, %218 : vector<2x14x14xf32>
    %226 = arith.addf %212, %225 : vector<2x14x14xf32>
    %c2_85 = arith.constant 2 : index
    %c15_86 = arith.constant 15 : index
    %227 = memref.load %arg1[%c2_85, %c15_86] : memref<3x27xf32, #tpu.memory_space<smem>>
    %228 = vector.broadcast %227 : f32 to vector<2x14x14xf32>
    %229 = arith.mulf %228, %218 : vector<2x14x14xf32>
    %230 = arith.addf %216, %229 : vector<2x14x14xf32>
    %231 = vector.extract_strided_slice %0 {offsets = [0, 1, 2, 1], sizes = [2, 1, 14, 14], strides = [1, 1, 1, 1]} : vector<2x3x16x16xf32> to vector<2x1x14x14xf32>
    %232 = vector.shape_cast %231 : vector<2x1x14x14xf32> to vector<2x14x14xf32>
    %c0_87 = arith.constant 0 : index
    %c16 = arith.constant 16 : index
    %233 = memref.load %arg1[%c0_87, %c16] : memref<3x27xf32, #tpu.memory_space<smem>>
    %234 = vector.broadcast %233 : f32 to vector<2x14x14xf32>
    %235 = arith.mulf %234, %232 : vector<2x14x14xf32>
    %236 = arith.addf %222, %235 : vector<2x14x14xf32>
    %c1_88 = arith.constant 1 : index
    %c16_89 = arith.constant 16 : index
    %237 = memref.load %arg1[%c1_88, %c16_89] : memref<3x27xf32, #tpu.memory_space<smem>>
    %238 = vector.broadcast %237 : f32 to vector<2x14x14xf32>
    %239 = arith.mulf %238, %232 : vector<2x14x14xf32>
    %240 = arith.addf %226, %239 : vector<2x14x14xf32>
    %c2_90 = arith.constant 2 : index
    %c16_91 = arith.constant 16 : index
    %241 = memref.load %arg1[%c2_90, %c16_91] : memref<3x27xf32, #tpu.memory_space<smem>>
    %242 = vector.broadcast %241 : f32 to vector<2x14x14xf32>
    %243 = arith.mulf %242, %232 : vector<2x14x14xf32>
    %244 = arith.addf %230, %243 : vector<2x14x14xf32>
    %245 = vector.extract_strided_slice %0 {offsets = [0, 1, 2, 2], sizes = [2, 1, 14, 14], strides = [1, 1, 1, 1]} : vector<2x3x16x16xf32> to vector<2x1x14x14xf32>
    %246 = vector.shape_cast %245 : vector<2x1x14x14xf32> to vector<2x14x14xf32>
    %c0_92 = arith.constant 0 : index
    %c17 = arith.constant 17 : index
    %247 = memref.load %arg1[%c0_92, %c17] : memref<3x27xf32, #tpu.memory_space<smem>>
    %248 = vector.broadcast %247 : f32 to vector<2x14x14xf32>
    %249 = arith.mulf %248, %246 : vector<2x14x14xf32>
    %250 = arith.addf %236, %249 : vector<2x14x14xf32>
    %c1_93 = arith.constant 1 : index
    %c17_94 = arith.constant 17 : index
    %251 = memref.load %arg1[%c1_93, %c17_94] : memref<3x27xf32, #tpu.memory_space<smem>>
    %252 = vector.broadcast %251 : f32 to vector<2x14x14xf32>
    %253 = arith.mulf %252, %246 : vector<2x14x14xf32>
    %254 = arith.addf %240, %253 : vector<2x14x14xf32>
    %c2_95 = arith.constant 2 : index
    %c17_96 = arith.constant 17 : index
    %255 = memref.load %arg1[%c2_95, %c17_96] : memref<3x27xf32, #tpu.memory_space<smem>>
    %256 = vector.broadcast %255 : f32 to vector<2x14x14xf32>
    %257 = arith.mulf %256, %246 : vector<2x14x14xf32>
    %258 = arith.addf %244, %257 : vector<2x14x14xf32>
    %259 = vector.extract_strided_slice %0 {offsets = [0, 2, 0, 0], sizes = [2, 1, 14, 14], strides = [1, 1, 1, 1]} : vector<2x3x16x16xf32> to vector<2x1x14x14xf32>
    %260 = vector.shape_cast %259 : vector<2x1x14x14xf32> to vector<2x14x14xf32>
    %c0_97 = arith.constant 0 : index
    %c18 = arith.constant 18 : index
    %261 = memref.load %arg1[%c0_97, %c18] : memref<3x27xf32, #tpu.memory_space<smem>>
    %262 = vector.broadcast %261 : f32 to vector<2x14x14xf32>
    %263 = arith.mulf %262, %260 : vector<2x14x14xf32>
    %264 = arith.addf %250, %263 : vector<2x14x14xf32>
    %c1_98 = arith.constant 1 : index
    %c18_99 = arith.constant 18 : index
    %265 = memref.load %arg1[%c1_98, %c18_99] : memref<3x27xf32, #tpu.memory_space<smem>>
    %266 = vector.broadcast %265 : f32 to vector<2x14x14xf32>
    %267 = arith.mulf %266, %260 : vector<2x14x14xf32>
    %268 = arith.addf %254, %267 : vector<2x14x14xf32>
    %c2_100 = arith.constant 2 : index
    %c18_101 = arith.constant 18 : index
    %269 = memref.load %arg1[%c2_100, %c18_101] : memref<3x27xf32, #tpu.memory_space<smem>>
    %270 = vector.broadcast %269 : f32 to vector<2x14x14xf32>
    %271 = arith.mulf %270, %260 : vector<2x14x14xf32>
    %272 = arith.addf %258, %271 : vector<2x14x14xf32>
    %273 = vector.extract_strided_slice %0 {offsets = [0, 2, 0, 1], sizes = [2, 1, 14, 14], strides = [1, 1, 1, 1]} : vector<2x3x16x16xf32> to vector<2x1x14x14xf32>
    %274 = vector.shape_cast %273 : vector<2x1x14x14xf32> to vector<2x14x14xf32>
    %c0_102 = arith.constant 0 : index
    %c19 = arith.constant 19 : index
    %275 = memref.load %arg1[%c0_102, %c19] : memref<3x27xf32, #tpu.memory_space<smem>>
    %276 = vector.broadcast %275 : f32 to vector<2x14x14xf32>
    %277 = arith.mulf %276, %274 : vector<2x14x14xf32>
    %278 = arith.addf %264, %277 : vector<2x14x14xf32>
    %c1_103 = arith.constant 1 : index
    %c19_104 = arith.constant 19 : index
    %279 = memref.load %arg1[%c1_103, %c19_104] : memref<3x27xf32, #tpu.memory_space<smem>>
    %280 = vector.broadcast %279 : f32 to vector<2x14x14xf32>
    %281 = arith.mulf %280, %274 : vector<2x14x14xf32>
    %282 = arith.addf %268, %281 : vector<2x14x14xf32>
    %c2_105 = arith.constant 2 : index
    %c19_106 = arith.constant 19 : index
    %283 = memref.load %arg1[%c2_105, %c19_106] : memref<3x27xf32, #tpu.memory_space<smem>>
    %284 = vector.broadcast %283 : f32 to vector<2x14x14xf32>
    %285 = arith.mulf %284, %274 : vector<2x14x14xf32>
    %286 = arith.addf %272, %285 : vector<2x14x14xf32>
    %287 = vector.extract_strided_slice %0 {offsets = [0, 2, 0, 2], sizes = [2, 1, 14, 14], strides = [1, 1, 1, 1]} : vector<2x3x16x16xf32> to vector<2x1x14x14xf32>
    %288 = vector.shape_cast %287 : vector<2x1x14x14xf32> to vector<2x14x14xf32>
    %c0_107 = arith.constant 0 : index
    %c20 = arith.constant 20 : index
    %289 = memref.load %arg1[%c0_107, %c20] : memref<3x27xf32, #tpu.memory_space<smem>>
    %290 = vector.broadcast %289 : f32 to vector<2x14x14xf32>
    %291 = arith.mulf %290, %288 : vector<2x14x14xf32>
    %292 = arith.addf %278, %291 : vector<2x14x14xf32>
    %c1_108 = arith.constant 1 : index
    %c20_109 = arith.constant 20 : index
    %293 = memref.load %arg1[%c1_108, %c20_109] : memref<3x27xf32, #tpu.memory_space<smem>>
    %294 = vector.broadcast %293 : f32 to vector<2x14x14xf32>
    %295 = arith.mulf %294, %288 : vector<2x14x14xf32>
    %296 = arith.addf %282, %295 : vector<2x14x14xf32>
    %c2_110 = arith.constant 2 : index
    %c20_111 = arith.constant 20 : index
    %297 = memref.load %arg1[%c2_110, %c20_111] : memref<3x27xf32, #tpu.memory_space<smem>>
    %298 = vector.broadcast %297 : f32 to vector<2x14x14xf32>
    %299 = arith.mulf %298, %288 : vector<2x14x14xf32>
    %300 = arith.addf %286, %299 : vector<2x14x14xf32>
    %301 = vector.extract_strided_slice %0 {offsets = [0, 2, 1, 0], sizes = [2, 1, 14, 14], strides = [1, 1, 1, 1]} : vector<2x3x16x16xf32> to vector<2x1x14x14xf32>
    %302 = vector.shape_cast %301 : vector<2x1x14x14xf32> to vector<2x14x14xf32>
    %c0_112 = arith.constant 0 : index
    %c21 = arith.constant 21 : index
    %303 = memref.load %arg1[%c0_112, %c21] : memref<3x27xf32, #tpu.memory_space<smem>>
    %304 = vector.broadcast %303 : f32 to vector<2x14x14xf32>
    %305 = arith.mulf %304, %302 : vector<2x14x14xf32>
    %306 = arith.addf %292, %305 : vector<2x14x14xf32>
    %c1_113 = arith.constant 1 : index
    %c21_114 = arith.constant 21 : index
    %307 = memref.load %arg1[%c1_113, %c21_114] : memref<3x27xf32, #tpu.memory_space<smem>>
    %308 = vector.broadcast %307 : f32 to vector<2x14x14xf32>
    %309 = arith.mulf %308, %302 : vector<2x14x14xf32>
    %310 = arith.addf %296, %309 : vector<2x14x14xf32>
    %c2_115 = arith.constant 2 : index
    %c21_116 = arith.constant 21 : index
    %311 = memref.load %arg1[%c2_115, %c21_116] : memref<3x27xf32, #tpu.memory_space<smem>>
    %312 = vector.broadcast %311 : f32 to vector<2x14x14xf32>
    %313 = arith.mulf %312, %302 : vector<2x14x14xf32>
    %314 = arith.addf %300, %313 : vector<2x14x14xf32>
    %315 = vector.extract_strided_slice %0 {offsets = [0, 2, 1, 1], sizes = [2, 1, 14, 14], strides = [1, 1, 1, 1]} : vector<2x3x16x16xf32> to vector<2x1x14x14xf32>
    %316 = vector.shape_cast %315 : vector<2x1x14x14xf32> to vector<2x14x14xf32>
    %c0_117 = arith.constant 0 : index
    %c22 = arith.constant 22 : index
    %317 = memref.load %arg1[%c0_117, %c22] : memref<3x27xf32, #tpu.memory_space<smem>>
    %318 = vector.broadcast %317 : f32 to vector<2x14x14xf32>
    %319 = arith.mulf %318, %316 : vector<2x14x14xf32>
    %320 = arith.addf %306, %319 : vector<2x14x14xf32>
    %c1_118 = arith.constant 1 : index
    %c22_119 = arith.constant 22 : index
    %321 = memref.load %arg1[%c1_118, %c22_119] : memref<3x27xf32, #tpu.memory_space<smem>>
    %322 = vector.broadcast %321 : f32 to vector<2x14x14xf32>
    %323 = arith.mulf %322, %316 : vector<2x14x14xf32>
    %324 = arith.addf %310, %323 : vector<2x14x14xf32>
    %c2_120 = arith.constant 2 : index
    %c22_121 = arith.constant 22 : index
    %325 = memref.load %arg1[%c2_120, %c22_121] : memref<3x27xf32, #tpu.memory_space<smem>>
    %326 = vector.broadcast %325 : f32 to vector<2x14x14xf32>
    %327 = arith.mulf %326, %316 : vector<2x14x14xf32>
    %328 = arith.addf %314, %327 : vector<2x14x14xf32>
    %329 = vector.extract_strided_slice %0 {offsets = [0, 2, 1, 2], sizes = [2, 1, 14, 14], strides = [1, 1, 1, 1]} : vector<2x3x16x16xf32> to vector<2x1x14x14xf32>
    %330 = vector.shape_cast %329 : vector<2x1x14x14xf32> to vector<2x14x14xf32>
    %c0_122 = arith.constant 0 : index
    %c23 = arith.constant 23 : index
    %331 = memref.load %arg1[%c0_122, %c23] : memref<3x27xf32, #tpu.memory_space<smem>>
    %332 = vector.broadcast %331 : f32 to vector<2x14x14xf32>
    %333 = arith.mulf %332, %330 : vector<2x14x14xf32>
    %334 = arith.addf %320, %333 : vector<2x14x14xf32>
    %c1_123 = arith.constant 1 : index
    %c23_124 = arith.constant 23 : index
    %335 = memref.load %arg1[%c1_123, %c23_124] : memref<3x27xf32, #tpu.memory_space<smem>>
    %336 = vector.broadcast %335 : f32 to vector<2x14x14xf32>
    %337 = arith.mulf %336, %330 : vector<2x14x14xf32>
    %338 = arith.addf %324, %337 : vector<2x14x14xf32>
    %c2_125 = arith.constant 2 : index
    %c23_126 = arith.constant 23 : index
    %339 = memref.load %arg1[%c2_125, %c23_126] : memref<3x27xf32, #tpu.memory_space<smem>>
    %340 = vector.broadcast %339 : f32 to vector<2x14x14xf32>
    %341 = arith.mulf %340, %330 : vector<2x14x14xf32>
    %342 = arith.addf %328, %341 : vector<2x14x14xf32>
    %343 = vector.extract_strided_slice %0 {offsets = [0, 2, 2, 0], sizes = [2, 1, 14, 14], strides = [1, 1, 1, 1]} : vector<2x3x16x16xf32> to vector<2x1x14x14xf32>
    %344 = vector.shape_cast %343 : vector<2x1x14x14xf32> to vector<2x14x14xf32>
    %c0_127 = arith.constant 0 : index
    %c24 = arith.constant 24 : index
    %345 = memref.load %arg1[%c0_127, %c24] : memref<3x27xf32, #tpu.memory_space<smem>>
    %346 = vector.broadcast %345 : f32 to vector<2x14x14xf32>
    %347 = arith.mulf %346, %344 : vector<2x14x14xf32>
    %348 = arith.addf %334, %347 : vector<2x14x14xf32>
    %c1_128 = arith.constant 1 : index
    %c24_129 = arith.constant 24 : index
    %349 = memref.load %arg1[%c1_128, %c24_129] : memref<3x27xf32, #tpu.memory_space<smem>>
    %350 = vector.broadcast %349 : f32 to vector<2x14x14xf32>
    %351 = arith.mulf %350, %344 : vector<2x14x14xf32>
    %352 = arith.addf %338, %351 : vector<2x14x14xf32>
    %c2_130 = arith.constant 2 : index
    %c24_131 = arith.constant 24 : index
    %353 = memref.load %arg1[%c2_130, %c24_131] : memref<3x27xf32, #tpu.memory_space<smem>>
    %354 = vector.broadcast %353 : f32 to vector<2x14x14xf32>
    %355 = arith.mulf %354, %344 : vector<2x14x14xf32>
    %356 = arith.addf %342, %355 : vector<2x14x14xf32>
    %357 = vector.extract_strided_slice %0 {offsets = [0, 2, 2, 1], sizes = [2, 1, 14, 14], strides = [1, 1, 1, 1]} : vector<2x3x16x16xf32> to vector<2x1x14x14xf32>
    %358 = vector.shape_cast %357 : vector<2x1x14x14xf32> to vector<2x14x14xf32>
    %c0_132 = arith.constant 0 : index
    %c25 = arith.constant 25 : index
    %359 = memref.load %arg1[%c0_132, %c25] : memref<3x27xf32, #tpu.memory_space<smem>>
    %360 = vector.broadcast %359 : f32 to vector<2x14x14xf32>
    %361 = arith.mulf %360, %358 : vector<2x14x14xf32>
    %362 = arith.addf %348, %361 : vector<2x14x14xf32>
    %c1_133 = arith.constant 1 : index
    %c25_134 = arith.constant 25 : index
    %363 = memref.load %arg1[%c1_133, %c25_134] : memref<3x27xf32, #tpu.memory_space<smem>>
    %364 = vector.broadcast %363 : f32 to vector<2x14x14xf32>
    %365 = arith.mulf %364, %358 : vector<2x14x14xf32>
    %366 = arith.addf %352, %365 : vector<2x14x14xf32>
    %c2_135 = arith.constant 2 : index
    %c25_136 = arith.constant 25 : index
    %367 = memref.load %arg1[%c2_135, %c25_136] : memref<3x27xf32, #tpu.memory_space<smem>>
    %368 = vector.broadcast %367 : f32 to vector<2x14x14xf32>
    %369 = arith.mulf %368, %358 : vector<2x14x14xf32>
    %370 = arith.addf %356, %369 : vector<2x14x14xf32>
    %371 = vector.extract_strided_slice %0 {offsets = [0, 2, 2, 2], sizes = [2, 1, 14, 14], strides = [1, 1, 1, 1]} : vector<2x3x16x16xf32> to vector<2x1x14x14xf32>
    %372 = vector.shape_cast %371 : vector<2x1x14x14xf32> to vector<2x14x14xf32>
    %c0_137 = arith.constant 0 : index
    %c26 = arith.constant 26 : index
    %373 = memref.load %arg1[%c0_137, %c26] : memref<3x27xf32, #tpu.memory_space<smem>>
    %374 = vector.broadcast %373 : f32 to vector<2x14x14xf32>
    %375 = arith.mulf %374, %372 : vector<2x14x14xf32>
    %376 = arith.addf %362, %375 : vector<2x14x14xf32>
    %c1_138 = arith.constant 1 : index
    %c26_139 = arith.constant 26 : index
    %377 = memref.load %arg1[%c1_138, %c26_139] : memref<3x27xf32, #tpu.memory_space<smem>>
    %378 = vector.broadcast %377 : f32 to vector<2x14x14xf32>
    %379 = arith.mulf %378, %372 : vector<2x14x14xf32>
    %380 = arith.addf %366, %379 : vector<2x14x14xf32>
    %c2_140 = arith.constant 2 : index
    %c26_141 = arith.constant 26 : index
    %381 = memref.load %arg1[%c2_140, %c26_141] : memref<3x27xf32, #tpu.memory_space<smem>>
    %382 = vector.broadcast %381 : f32 to vector<2x14x14xf32>
    %383 = arith.mulf %382, %372 : vector<2x14x14xf32>
    %384 = arith.addf %370, %383 : vector<2x14x14xf32>
    %c0_142 = arith.constant 0 : index
    %c0_143 = arith.constant 0 : index
    %c0_144 = arith.constant 0 : index
    %c0_145 = arith.constant 0 : index
    %385 = vector.load %arg3[%c0_142, %c0_143, %c0_144, %c0_145] : memref<2x3x14x14xf32, #tpu.memory_space<vmem>>, vector<2x1x14x14xf32>
    %386 = vector.shape_cast %385 : vector<2x1x14x14xf32> to vector<2x14x14xf32>
    %387 = vector.shape_cast %376 : vector<2x14x14xf32> to vector<2x1x14x14xf32>
    tpu.vector_store %arg3[%c0_142, %c0_143, %c0_144, %c0_145], %387 {strides = array<i32>} : memref<2x3x14x14xf32, #tpu.memory_space<vmem>>, vector<2x1x14x14xf32>,
    %c0_146 = arith.constant 0 : index
    %c1_147 = arith.constant 1 : index
    %c0_148 = arith.constant 0 : index
    %c0_149 = arith.constant 0 : index
    %388 = vector.load %arg3[%c0_146, %c1_147, %c0_148, %c0_149] : memref<2x3x14x14xf32, #tpu.memory_space<vmem>>, vector<2x1x14x14xf32>
    %389 = vector.shape_cast %388 : vector<2x1x14x14xf32> to vector<2x14x14xf32>
    %390 = vector.shape_cast %380 : vector<2x14x14xf32> to vector<2x1x14x14xf32>
    tpu.vector_store %arg3[%c0_146, %c1_147, %c0_148, %c0_149], %390 {strides = array<i32>} : memref<2x3x14x14xf32, #tpu.memory_space<vmem>>, vector<2x1x14x14xf32>,
    %c0_150 = arith.constant 0 : index
    %c2_151 = arith.constant 2 : index
    %c0_152 = arith.constant 0 : index
    %c0_153 = arith.constant 0 : index
    %391 = vector.load %arg3[%c0_150, %c2_151, %c0_152, %c0_153] : memref<2x3x14x14xf32, #tpu.memory_space<vmem>>, vector<2x1x14x14xf32>
    %392 = vector.shape_cast %391 : vector<2x1x14x14xf32> to vector<2x14x14xf32>
    %393 = vector.shape_cast %384 : vector<2x14x14xf32> to vector<2x1x14x14xf32>
    tpu.vector_store %arg3[%c0_150, %c2_151, %c0_152, %c0_153], %393 {strides = array<i32>} : memref<2x3x14x14xf32, #tpu.memory_space<vmem>>, vector<2x1x14x14xf32>,
    return
  }
}

</mosaic_0001>

<bundles_post_ra>
// kernel: my_covn_net_forward.1
= control target key start
LH: loop header
LB: loop body
LE: loop exit
PB: predicated region body
PF: predicated region fallthrough
CT: control target
= control target key end

     0   :  { %8 = vsyncpa [#allocation3], 0  ;;  %s4318_s0 = inlined_call_operand.hbm [shape: f32[2,3,16,16], index: 0, kind: input, shape index: {}]   ;;  %s4319_s1 = inlined_call_operand.vmem [shape: f32[3,27], index: 1, kind: input, shape index: {}]   ;;  %s4320_s2 = inlined_call_operand.vmem [shape: f32[3], index: 2, kind: input, shape index: {}]   ;;  %s4321_s3 = inlined_call_operand.vmem [shape: f32[2,3,14,14], index: 3, kind: output, shape index: {}]  }
   0x1   :  { %9 = vsyncpa [#allocation4], 0 }
   0x2   :  { %10 = vsyncpa [#allocation7], 0  ;;  %s2399_s12 = smov [#allocation2]   ;;  %s29_s16 = sshll.u32 %s4319_s1, 4  ;;  %s30_s16 = int_to_ptr.vmem [resolvable:$true] %s29_s16 }
   0x3   :  { %s16_s13 = sshll.u32 %s2399_s12, 4  ;;  %s2347_s19 = scalar_lea.hbm %s4318_s0, 1536  ;;  %s17_s13 = int_to_ptr.vmem [resolvable:$true] %s16_s13 }
   0x4   :  { %p2348_p0 = scmp.ne.s32.totalorder %s4318_s0, %s2347_s19  ;;  %p2351_p1 = scmp.lt.u32.totalorder %s2347_s19, %s4318_s0 }
   0x6   :  { %p2353_p2 = pnand %p2351_p1, %p2348_p0 }
   0x8   :  { %2356 = shalt.err (!%p2353_p2)
}
   0x9   :  { %s2357_s24 = scalar_lea.vmem %s17_s13, 1536  ;;  %p2362_p4 = scmp.lt.s32.totalorder %s17_s13, %s17_s13 }
   0xa   :  { %p2358_p3 = scmp.ne.s32.totalorder %s17_s13, %s2357_s24  ;;  %p2363_p5 = scmp.lt.s32.totalorder %s2357_s24, %s2357_s24 }
   0xc   :  { %p2364_p6 = por %p2363_p5, %p2362_p4 }
   0xe   :  { %p2365_p7 = pnand %p2364_p6, %p2358_p3 }
  0x10   :  { %2368 = shalt.err (!%p2365_p7)
}
  0x11   :  { %s2400_s1 = smov 128   ;;  %s2401_s25 = smov 8  }
  0x12   :  { %22 = dma.hbm_to_vmem [thread:$0]  %s4318_s0, 1536, %s17_s13, [#allocation3], %s2400_s1, %s2400_s1, %s2401_s25  }
  0x13   :  { %s2369_s28 = scalar_lea.vmem %s30_s16, 64  ;;  %p2374_p9 = scmp.lt.s32.totalorder %s30_s16, %s30_s16 }
  0x14   :  { %p2370_p8 = scmp.ne.s32.totalorder %s30_s16, %s2369_s28  ;;  %p2375_p10 = scmp.lt.s32.totalorder %s2369_s28, %s2369_s28 }
  0x16   :  { %p2376_p11 = por %p2375_p10, %p2374_p9 }
  0x18   :  { %p2377_p12 = pnand %p2376_p11, %p2370_p8 }
  0x1a   :  { %2380 = shalt.err (!%p2377_p12)
}
  0x1b   :  { %s2402_s29 = smov [#allocation5]   ;;  %s39_s5 = sshll.u32 %s4320_s2, 4  ;;  %s40_s5 = int_to_ptr.vmem [resolvable:$true] %s39_s5 }
  0x1c   :  { %32 = dma.vmem_to_smem %s30_s16, 64, %s2402_s29, [#allocation4]  }
  0x1d   :  { %s2381_s6 = scalar_lea.vmem %s40_s5, 16  ;;  %p2386_p0 = scmp.lt.s32.totalorder %s40_s5, %s40_s5 }
  0x1e   :  { %p2382_p13 = scmp.ne.s32.totalorder %s40_s5, %s2381_s6  ;;  %p2387_p1 = scmp.lt.s32.totalorder %s2381_s6, %s2381_s6 }
  0x20   :  { %p2388_p2 = por %p2387_p1, %p2386_p0 }
  0x22   :  { %p2389_p3 = pnand %p2388_p2, %p2382_p13 }
  0x24   :  { %2392 = shalt.err (!%p2389_p3)
}
  0x25   :  { %s2403_s0 = smov [#allocation6]  }
  0x26   :  { %42 = dma.vmem_to_smem %s40_s5, 16, %s2403_s0, [#allocation7]  }
  0x27   :  { %2393 = dma.done.wait [#allocation3], 1536  }
  0x28   :  { %2394 = vsyncadd [#allocation3], 4294965760 }
  0x29   :  { %2395 = dma.done.wait [#allocation4], 64  }
  0x2a   :  { %2396 = vsyncadd [#allocation4], 4294967232 }
  0x2b   :  { %2397 = dma.done.wait [#allocation7], 16  }
  0x2c   :  { %2398 = vsyncadd [#allocation7], 4294967280 }
  0x2d   :  { %52 = sfence }
  0x2e   :  { %s2242_s7 = sld [smem:[#allocation5 + $0x1]]  ;;  %v2444_v0 = vld [vmem:[#allocation2 + $0x30] sm:$0xff]  ;;  %v2446_v1 = vld [vmem:[#allocation2] sm:$0xff]  ;;  %v2448_v3 = vld [vmem:[#allocation2 + $0x38] sm:$0xff]  ;;  %s2404_s2 = smov 127   ;;  %vm267_vm0 = vcmask 1046528  }
  0x2f   :  { %s2243_s8 = sld [smem:[#allocation5 + $0x81]]  ;;  %v2450_v4 = vld [vmem:[#allocation2 + $0x8] sm:$0xff]  ;;  %s2245_s10 = sld [smem:[#allocation5 + $0x2]]  ;;  %vm532_vm1 = vcmask 1045504   ;;  %vm2217_vm2 = vcmask 111616   ;;  %vm2215_vm3 = vcmask 113664  }
  0x30   :  { %s2244_s9 = sld [smem:[#allocation5 + $0x101]]  ;;  %s2246_s11 = sld [smem:[#allocation5 + $0x82]] }
  0x31   :  { %s2405_s12 = smov 126   ;;  %s2247_s13 = sld [smem:[#allocation5 + $0x102]] }
  0x32   :  { %s2251_s14 = sld [smem:[#allocation5 + $0x4]]  ;;  %s2254_s17 = sld [smem:[#allocation5 + $0x5]] }
  0x33   :  { %s2252_s15 = sld [smem:[#allocation5 + $0x84]]  ;;  %s2255_s18 = sld [smem:[#allocation5 + $0x85]] }
  0x34   :  { %v102_v2 = vstv %s2242_s7  ;;  %s2253_s16 = sld [smem:[#allocation5 + $0x104]]  ;;  %s2256_s19 = sld [smem:[#allocation5 + $0x105]] }
  0x35   :  { %v105_v5 = vmul.f32 %v102_v2, %v2444_v0  ;;  %v103_v6 = vmul.f32 %v102_v2, %v2446_v1  ;;  %v106_v7 = vmul.f32 %v102_v2, %v2448_v3  ;;  %v104_v8 = vmul.f32 %v102_v2, %v2450_v4  ;;  %s2260_s20 = sld [smem:[#allocation5 + $0x7]]  ;;  %s2263_s23 = sld [smem:[#allocation5 + $0x8]] }
  0x36   :  { %v128_v9 = vstv %s2243_s8  ;;  %v154_v14 = vstv %s2244_s9  ;;  %v180_v19 = vstv %s2245_s10  ;;  %v206_v24 = vstv %s2246_s11  ;;  %s2261_s21 = sld [smem:[#allocation5 + $0x87]]  ;;  %s2264_s24 = sld [smem:[#allocation5 + $0x88]] }
  0x37   :  { %115 = vrot.lane.b32.xlu1 %v105_v5, %s2404_s2  ;;  %111 = vrot.lane.b32.xlu0 %v103_v6, %s2404_s2  ;;  %v130_v10 = vmul.f32 %v128_v9, %v2450_v4  ;;  %v129_v11 = vmul.f32 %v128_v9, %v2446_v1  ;;  %v132_v12 = vmul.f32 %v128_v9, %v2448_v3  ;;  %v232_v29 = vstv %s2247_s13  ;;  %s2262_s22 = sld [smem:[#allocation5 + $0x107]]  ;;  %s2265_s1 = sld [smem:[#allocation5 + $0x108]] }
  0x38   :  { %v131_v13 = vmul.f32 %v128_v9, %v2444_v0  ;;  %v156_v15 = vmul.f32 %v154_v14, %v2450_v4  ;;  %v155_v16 = vmul.f32 %v154_v14, %v2446_v1  ;;  %v158_v17 = vmul.f32 %v154_v14, %v2448_v3  ;;  %s2269_s25 = sld [smem:[#allocation5 + $0xa]]  ;;  %s2272_s28 = sld [smem:[#allocation5 + $0xb]] }
  0x39   :  { %v157_v18 = vmul.f32 %v154_v14, %v2444_v0  ;;  %v182_v20 = vmul.f32 %v180_v19, %v2450_v4  ;;  %v181_v21 = vmul.f32 %v180_v19, %v2446_v1  ;;  %v184_v22 = vmul.f32 %v180_v19, %v2448_v3  ;;  %s2270_s26 = sld [smem:[#allocation5 + $0x8a]]  ;;  %s2273_s29 = sld [smem:[#allocation5 + $0x8b]] }
  0x3a   :  { %v183_v23 = vmul.f32 %v180_v19, %v2444_v0  ;;  %v208_v25 = vmul.f32 %v206_v24, %v2450_v4  ;;  %v207_v26 = vmul.f32 %v206_v24, %v2446_v1  ;;  %v210_v27 = vmul.f32 %v206_v24, %v2448_v3  ;;  %s2271_s27 = sld [smem:[#allocation5 + $0x10a]]  ;;  %s2274_s30 = sld [smem:[#allocation5 + $0x10b]] }
  0x3b   :  { %117 = vrot.lane.b32.xlu1 %v106_v7, %s2404_s2  ;;  %113 = vrot.lane.b32.xlu0 %v104_v8, %s2404_s2  ;;  %v209_v28 = vmul.f32 %v206_v24, %v2444_v0  ;;  %v331_v30 = vstv %s2251_s14  ;;  %v234_v31 = vmul.f32 %v232_v29, %v2450_v4  ;;  %v233_v32 = vmul.f32 %v232_v29, %v2446_v1  ;;  %s2278_s4 = sld [smem:[#allocation5 + $0xd]]  ;;  %s2281_s0 = sld [smem:[#allocation5 + $0xe]] }
  0x3c   :  { %v333_v33 = vmul.f32 %v331_v30, %v2450_v4  ;;  %v332_v34 = vmul.f32 %v331_v30, %v2446_v1  ;;  %v236_v35 = vmul.f32 %v232_v29, %v2448_v3  ;;  %v235_v36 = vmul.f32 %v232_v29, %v2444_v0  ;;  %s2279_s5 = sld [smem:[#allocation5 + $0x8d]]  ;;  %s2282_s7 = sld [smem:[#allocation5 + $0x8e]] }
  0x3d   :  { %v335_v37 = vmul.f32 %v331_v30, %v2448_v3  ;;  %v334_v40 = vmul.f32 %v331_v30, %v2444_v0  ;;  %v363_v41 = vstv %s2252_s15  ;;  %v395_v48 = vstv %s2253_s16  ;;  %s2280_s6 = sld [smem:[#allocation5 + $0x10d]]  ;;  %s2283_s8 = sld [smem:[#allocation5 + $0x10e]] }
  0x3e   :  { %v341_v38 = vrot.slane %v333_v33, 1  ;;  %v340_v39 = vrot.slane %v332_v34, 1  ;;  %v365_v45 = vmul.f32 %v363_v41, %v2450_v4  ;;  %v364_v46 = vmul.f32 %v363_v41, %v2446_v1  ;;  %s2287_s9 = sld [smem:[#allocation5 + $0x10]]  ;;  %s2290_s13 = sld [smem:[#allocation5 + $0x11]] }
  0x3f   :  { %139 = vrot.lane.b32.xlu1 %v130_v10, %s2404_s2  ;;  %137 = vrot.lane.b32.xlu0 %v129_v11, %s2404_s2  ;;  %v344_v42 = vrot.slane %v335_v37, 1  ;;  %v343_v44 = vrot.slane %v334_v40, 1  ;;  %v367_v47 = vmul.f32 %v363_v41, %v2448_v3  ;;  %v366_v52 = vmul.f32 %v363_v41, %v2444_v0  ;;  %s2288_s10 = sld [smem:[#allocation5 + $0x90]]  ;;  %s2898_s16 = sld [smem:[#allocation5 + $0x91]] }
  0x40   :  { %v342_v43 = vsel %vm267_vm0, %v340_v39, %v341_v38  ;;  %v373_v50 = vrot.slane %v365_v45, 1  ;;  %v372_v51 = vrot.slane %v364_v46, 1  ;;  %v397_v53 = vmul.f32 %v395_v48, %v2450_v4  ;;  %s2289_s11 = sld [smem:[#allocation5 + $0x110]] }
  0x41   :  { %v345_v49 = vsel %vm267_vm0, %v343_v44, %v344_v42  ;;  %v376_v55 = vrot.slane %v367_v47, 1  ;;  %v375_v56 = vrot.slane %v366_v52, 1  ;;  %v396_v57 = vmul.f32 %v395_v48, %v2446_v1  ;;  %s71_s14 = sld [smem:[#allocation5]] }
  0x42   :  { %v374_v54 = vsel %vm267_vm0, %v372_v51, %v373_v50  ;;  %v405_v58 = vrot.slane %v397_v53, 1  ;;  %v427_v59 = vstv %s2254_s17  ;;  %v399_v62 = vmul.f32 %v395_v48, %v2448_v3  ;;  %s2240_s15 = sld [smem:[#allocation5 + $0x80]] }
  0x43   :  { %143 = vrot.lane.b32.xlu1 %v132_v12, %s2404_s2  ;;  %141 = vrot.lane.b32.xlu0 %v131_v13, %s2404_s2  ;;  %v377_v60 = vsel %vm267_vm0, %v375_v56, %v376_v55  ;;  %v404_v61 = vrot.slane %v396_v57, 1  ;;  %v398_v63 = vmul.f32 %v395_v48, %v2444_v0  ;;  %v429_v2 = vmul.f32 %v427_v59, %v2450_v4  ;;  %s2900_s17 = sld [smem:[#allocation6]] }
  0x44   :  { %v408_v6 = vrot.slane %v399_v62, 1  ;;  %v428_v8 = vmul.f32 %v427_v59, %v2446_v1  ;;  %v431_v9 = vmul.f32 %v427_v59, %v2448_v3  ;;  %v459_v10 = vstv %s2255_s18  ;;  %s2902_s18 = sld [smem:[#allocation6 + $0x1]] }
  0x45   :  { %v406_v5 = vsel %vm267_vm0, %v404_v61, %v405_v58  ;;  %v407_v7 = vrot.slane %v398_v63, 1  ;;  %v437_v12 = vrot.slane %v429_v2, 1  ;;  %v430_v14 = vmul.f32 %v427_v59, %v2444_v0 }
  0x46   :  { %v436_v13 = vrot.slane %v428_v8, 1  ;;  %v460_v19 = vmul.f32 %v459_v10, %v2446_v1  ;;  %v462_v24 = vmul.f32 %v459_v10, %v2444_v0 }
  0x47   :  { %165 = vrot.lane.b32.xlu1 %v156_v15, %s2404_s2  ;;  %163 = vrot.lane.b32.xlu0 %v155_v16, %s2404_s2  ;;  %v409_v11 = vsel %vm267_vm0, %v407_v7, %v408_v6  ;;  %v461_v15 = vmul.f32 %v459_v10, %v2450_v4 }
  0x48   :  { %v438_v16 = vsel %vm267_vm0, %v436_v13, %v437_v12 }
  0x4b   :  { %169 = vrot.lane.b32.xlu1 %v158_v17, %s2404_s2  ;;  %167 = vrot.lane.b32.xlu0 %v157_v18, %s2404_s2  ;;  %v440_v17 = vrot.slane %v431_v9, 1  ;;  %v439_v18 = vrot.slane %v430_v14, 1  ;;  %v692_v9 = vstv %s2263_s23  ;;  %s2946_s23 = sld [smem:[#allocation6 + $0x2]] }
  0x4f   :  { %191 = vrot.lane.b32.xlu1 %v182_v20, %s2405_s12  ;;  %189 = vrot.lane.b32.xlu0 %v181_v21, %s2405_s12  ;;  %v463_v20 = vmul.f32 %v459_v10, %v2448_v3  ;;  %v441_v21 = vsel %vm267_vm0, %v439_v18, %v440_v17  ;;  %v694_v10 = vmul.f32 %v692_v9, %v2450_v4 }
  0x50   :  { %v696_v18 = vmul.f32 %v692_v9, %v2448_v3 }
  0x53   :  { %195 = vrot.lane.b32.xlu1 %v184_v22, %s2405_s12  ;;  %193 = vrot.lane.b32.xlu0 %v183_v23, %s2405_s12  ;;  %v469_v22 = vrot.slane %v461_v15, 1  ;;  %v468_v23 = vrot.slane %v460_v19, 1  ;;  %v702_v15 = vrot.slane %v694_v10, 2  ;;  %v695_v19 = vmul.f32 %v692_v9, %v2444_v0 }
  0x57   :  { %217 = vrot.lane.b32.xlu1 %v208_v25, %s2405_s12  ;;  %215 = vrot.lane.b32.xlu0 %v207_v26, %s2405_s12  ;;  %v491_v25 = vstv %s2256_s19  ;;  %v472_v26 = vrot.slane %v463_v20, 1  ;;  %s2913_s19 = sld [smem:[#allocation5 + $0x3]] }
  0x58   :  { %v493_v29 = vmul.f32 %v491_v25, %v2450_v4  ;;  %v492_v30 = vmul.f32 %v491_v25, %v2446_v1 }
  0x5a   :  { %v501_v34 = vrot.slane %v493_v29, 1 }
  0x5b   :  { %221 = vrot.lane.b32.xlu1 %v210_v27, %s2405_s12  ;;  %219 = vrot.lane.b32.xlu0 %v209_v28, %s2405_s12  ;;  %v470_v27 = vsel %vm267_vm0, %v468_v23, %v469_v22  ;;  %v471_v28 = vrot.slane %v462_v24, 1  ;;  %v705_v24 = vrot.slane %v696_v18, 2 }
  0x5d   :  { %v473_v33 = vsel %vm267_vm0, %v471_v28, %v472_v26 }
  0x5f   :  { %243 = vrot.lane.b32.xlu1 %v234_v31, %s2405_s12  ;;  %241 = vrot.lane.b32.xlu0 %v233_v32, %s2405_s12  ;;  %v495_v31 = vmul.f32 %v491_v25, %v2448_v3  ;;  %v596_v32 = vstv %s2260_s20  ;;  %s2917_s20 = sld [smem:[#allocation5 + $0x83]] }
  0x60   :  { %v598_v37 = vmul.f32 %v596_v32, %v2450_v4  ;;  %v597_v41 = vmul.f32 %v596_v32, %v2446_v1  ;;  %v599_v47 = vmul.f32 %v596_v32, %v2444_v0 }
  0x61   :  { %v504_v39 = vrot.slane %v495_v31, 1 }
  0x62   :  { %v606_v45 = vrot.slane %v598_v37, 2  ;;  %v605_v46 = vrot.slane %v597_v41, 2  ;;  %v608_v51 = vrot.slane %v599_v47, 2  ;;  %v756_v37 = vstv %s2265_s1  ;;  %s3006_s1 = sld [smem:[#allocation5 + $0x6]] }
  0x63   :  { %247 = vrot.lane.b32.xlu1 %v236_v35, %s2405_s12  ;;  %245 = vrot.lane.b32.xlu0 %v235_v36, %s2405_s12  ;;  %v500_v35 = vrot.slane %v492_v30, 1  ;;  %v494_v36 = vmul.f32 %v491_v25, %v2444_v0  ;;  %v704_v25 = vrot.slane %v695_v19, 2  ;;  %v758_v41 = vmul.f32 %v756_v37, %v2450_v4 }
  0x65   :  { %v503_v40 = vrot.slane %v494_v36, 1 }
  0x67   :  { %348 = vrot.lane.b32.xlu1 %v341_v38, %s2404_s2  ;;  %346 = vrot.lane.b32.xlu0 %v342_v43, %s2404_s2  ;;  %v502_v38 = vsel %vm267_vm0, %v500_v35, %v501_v34  ;;  %v628_v43 = vstv %s2261_s21  ;;  %v505_v44 = vsel %vm267_vm0, %v503_v40, %v504_v39  ;;  %s2931_s21 = sld [smem:[#allocation5 + $0x100]] }
  0x68   :  { %v630_v48 = vmul.f32 %v628_v43, %v2450_v4  ;;  %v629_v52 = vmul.f32 %v628_v43, %v2446_v1  ;;  %v632_v53 = vmul.f32 %v628_v43, %v2448_v3 }
  0x6a   :  { %v638_v56 = vrot.slane %v630_v48, 2  ;;  %v637_v57 = vrot.slane %v629_v52, 2  ;;  %v641_v59 = vrot.slane %v632_v53, 2  ;;  %v760_v48 = vmul.f32 %v756_v37, %v2448_v3 }
  0x6b   :  { %352 = vrot.lane.b32.xlu1 %v344_v42, %s2404_s2  ;;  %350 = vrot.lane.b32.xlu0 %v345_v49, %s2404_s2  ;;  %v600_v42 = vmul.f32 %v596_v32, %v2448_v3  ;;  %v607_v49 = vsel %vm532_vm1, %v605_v46, %v606_v45  ;;  %v706_v32 = vsel %vm532_vm1, %v704_v25, %v705_v24  ;;  %v766_v46 = vrot.slane %v758_v41, 2 }
  0x6c   :  { %v639_v61 = vsel %vm532_vm1, %v637_v57, %v638_v56 }
  0x6f   :  { %380 = vrot.lane.b32.xlu1 %v373_v50, %s2404_s2  ;;  %378 = vrot.lane.b32.xlu0 %v374_v54, %s2404_s2  ;;  %v609_v50 = vrot.slane %v600_v42, 2  ;;  %v631_v54 = vmul.f32 %v628_v43, %v2444_v0  ;;  %v757_v42 = vmul.f32 %v756_v37, %v2446_v1 }
  0x71   :  { %v765_v47 = vrot.slane %v757_v42, 2 }
  0x73   :  { %384 = vrot.lane.b32.xlu1 %v376_v55, %s2404_s2  ;;  %382 = vrot.lane.b32.xlu0 %v377_v60, %s2404_s2  ;;  %v610_v55 = vsel %vm532_vm1, %v608_v51, %v609_v50  ;;  %v640_v60 = vrot.slane %v631_v54, 2  ;;  %v769_v51 = vrot.slane %v760_v48, 2 }
  0x75   :  { %v642_v2 = vsel %vm532_vm1, %v640_v60, %v641_v59 }
  0x77   :  { %412 = vrot.lane.b32.xlu1 %v405_v58, %s2404_s2  ;;  %410 = vrot.lane.b32.xlu0 %v406_v5, %s2404_s2  ;;  %v660_v58 = vstv %s2262_s22  ;;  %s2938_s22 = sld [smem:[#allocation5 + $0x111]] }
  0x78   :  { %v662_v62 = vmul.f32 %v660_v58, %v2450_v4  ;;  %v661_v63 = vmul.f32 %v660_v58, %v2446_v1  ;;  %v664_v5 = vmul.f32 %v660_v58, %v2448_v3  ;;  %v663_v8 = vmul.f32 %v660_v58, %v2444_v0 }
  0x7a   :  { %v669_v7 = vrot.slane %v661_v63, 2  ;;  %v673_v13 = vrot.slane %v664_v5, 2  ;;  %v672_v14 = vrot.slane %v663_v8, 2 }
  0x7b   :  { %416 = vrot.lane.b32.xlu1 %v408_v6, %s2404_s2  ;;  %414 = vrot.lane.b32.xlu0 %v409_v11, %s2404_s2  ;;  %v670_v6 = vrot.slane %v662_v62, 2  ;;  %v693_v11 = vmul.f32 %v692_v9, %v2446_v1  ;;  %v2656_v62 = vld [vmem:[#allocation2 + $0x40] sm:$0xff] }
  0x7f   :  { %444 = vrot.lane.b32.xlu1 %v437_v12, %s2405_s12  ;;  %442 = vrot.lane.b32.xlu0 %v438_v16, %s2405_s12  ;;  %v671_v12 = vsel %vm532_vm1, %v669_v7, %v670_v6  ;;  %v701_v16 = vrot.slane %v693_v11, 2  ;;  %v844_v7 = vstv %s2270_s26  ;;  %s3027_s26 = sld [smem:[#allocation5 + $0x106]] }
  0x81   :  { %v703_v23 = vsel %vm532_vm1, %v701_v16, %v702_v15  ;;  %v870_v16 = vstv %s2271_s27  ;;  %s3038_s27 = sld [smem:[#allocation5 + $0x13]] }
  0x83   :  { %448 = vrot.lane.b32.xlu1 %v440_v17, %s2405_s12  ;;  %446 = vrot.lane.b32.xlu0 %v441_v21, %s2405_s12  ;;  %v674_v17 = vsel %vm532_vm1, %v672_v14, %v673_v13 }
  0x87   :  { %476 = vrot.lane.b32.xlu1 %v469_v22, %s2405_s12  ;;  %474 = vrot.lane.b32.xlu0 %v470_v27, %s2405_s12  ;;  %v724_v22 = vstv %s2264_s24  ;;  %s2973_s24 = sld [smem:[#allocation5 + $0x103]] }
  0x88   :  { %v725_v27 = vmul.f32 %v724_v22, %v2446_v1  ;;  %v728_v30 = vmul.f32 %v724_v22, %v2448_v3  ;;  %v727_v31 = vmul.f32 %v724_v22, %v2444_v0  ;;  %v2642_v3 = vld [vmem:[#allocation2 + $0x18] sm:$0xff] }
  0x89   :  { %v846_v10 = vmul.f32 %v844_v7, %v2642_v3  ;;  %v872_v19 = vmul.f32 %v870_v16, %v2642_v3 }
  0x8b   :  { %480 = vrot.lane.b32.xlu1 %v472_v26, %s2405_s12  ;;  %478 = vrot.lane.b32.xlu0 %v473_v33, %s2405_s12  ;;  %v726_v26 = vmul.f32 %v724_v22, %v2450_v4 }
  0x8d   :  { %v734_v33 = vrot.slane %v726_v26, 2  ;;  %v873_v26 = vmul.f32 %v870_v16, %v2656_v62 }
  0x8f   :  { %508 = vrot.lane.b32.xlu1 %v501_v34, %s2405_s12  ;;  %506 = vrot.lane.b32.xlu0 %v502_v38, %s2405_s12  ;;  %v733_v34 = vrot.slane %v725_v27, 2  ;;  %v737_v38 = vrot.slane %v728_v30, 2  ;;  %v896_v27 = vstv %s2272_s28  ;;  %s3100_s28 = sld [smem:[#allocation5 + $0x9]] }
  0x91   :  { %v735_v40 = vsel %vm532_vm1, %v733_v34, %v734_v33 }
  0x93   :  { %512 = vrot.lane.b32.xlu1 %v504_v39, %s2405_s12  ;;  %510 = vrot.lane.b32.xlu0 %v505_v44, %s2405_s12  ;;  %v736_v39 = vrot.slane %v727_v31, 2 }
  0x97   :  { %613 = vrot.lane.b32.xlu1 %v606_v45, %s2404_s2  ;;  %611 = vrot.lane.b32.xlu0 %v607_v49, %s2404_s2  ;;  %v738_v45 = vsel %vm532_vm1, %v736_v39, %v737_v38  ;;  %v759_v49 = vmul.f32 %v756_v37, %v2444_v0  ;;  %v899_v39 = vmul.f32 %v896_v27, %v2656_v62 }
  0x99   :  { %v768_v52 = vrot.slane %v759_v49, 2 }
  0x9b   :  { %617 = vrot.lane.b32.xlu1 %v609_v50, %s2404_s2  ;;  %615 = vrot.lane.b32.xlu0 %v610_v55, %s2404_s2  ;;  %v767_v50 = vsel %vm532_vm1, %v765_v47, %v766_v46  ;;  %v770_v0 = vsel %vm532_vm1, %v768_v52, %v769_v51  ;;  %v818_v55 = vstv %s2269_s25  ;;  %s3012_s25 = sld [smem:[#allocation5 + $0x86]] }
  0x9f   :  { %645 = vrot.lane.b32.xlu1 %v638_v56, %s2404_s2  ;;  %643 = vrot.lane.b32.xlu0 %v639_v61, %s2404_s2  ;;  %v2644_v56 = vld [vmem:[#allocation2 + $0x10] sm:$0xff]  ;;  %v2654_v61 = vld [vmem:[#allocation2 + $0x48] sm:$0xff] }
  0xa0   :  { %v819_v60 = vmul.f32 %v818_v55, %v2644_v56  ;;  %v822_v5 = vmul.f32 %v818_v55, %v2654_v61  ;;  %v845_v11 = vmul.f32 %v844_v7, %v2644_v56  ;;  %v848_v14 = vmul.f32 %v844_v7, %v2654_v61 }
  0xa1   :  { %v871_v22 = vmul.f32 %v870_v16, %v2644_v56  ;;  %v874_v25 = vmul.f32 %v870_v16, %v2654_v61 }
  0xa3   :  { %649 = vrot.lane.b32.xlu1 %v641_v59, %s2404_s2  ;;  %647 = vrot.lane.b32.xlu0 %v642_v2, %s2404_s2  ;;  %v820_v59 = vmul.f32 %v818_v55, %v2642_v3 }
  0xa7   :  { %677 = vrot.lane.b32.xlu1 %v670_v6, %s2404_s2  ;;  %675 = vrot.lane.b32.xlu0 %v671_v12, %s2404_s2  ;;  %v821_v6 = vmul.f32 %v818_v55, %v2656_v62  ;;  %v1046_v55 = vstv %s2278_s4  ;;  %s3139_s4 = sld [smem:[#allocation5 + $0x109]] }
  0xa9   :  { %v2592_v20 = vpop.permute.xlu1 %115  ;;  %v2594_v21 = vpop.permute.xlu0 %111 }
  0xab   :  { %681 = vrot.lane.b32.xlu1 %v673_v13, %s2404_s2  ;;  %679 = vrot.lane.b32.xlu0 %v674_v17, %s2404_s2 }
  0xad   :  { %v2601_v28 = vpop.permute.xlu1 %117  ;;  %v2603_v29 = vpop.permute.xlu0 %113 }
  0xaf   :  { %709 = vrot.lane.b32.xlu1 %v702_v15, %s2405_s12  ;;  %707 = vrot.lane.b32.xlu0 %v703_v23, %s2405_s12  ;;  %v847_v15 = vmul.f32 %v844_v7, %v2656_v62 }
  0xb1   :  { %v2610_v35 = vpop.permute.xlu1 %139  ;;  %v2612_v36 = vpop.permute.xlu0 %137 }
  0xb3   :  { %713 = vrot.lane.b32.xlu1 %v705_v24, %s2405_s12  ;;  %711 = vrot.lane.b32.xlu0 %v706_v32, %s2405_s12  ;;  %v898_v32 = vmul.f32 %v896_v27, %v2642_v3 }
  0xb5   :  { %v2619_v43 = vpop.permute.xlu1 %143  ;;  %v2621_v44 = vpop.permute.xlu0 %141 }
  0xb7   :  { %741 = vrot.lane.b32.xlu1 %v734_v33, %s2405_s12  ;;  %739 = vrot.lane.b32.xlu0 %v735_v40, %s2405_s12  ;;  %v897_v33 = vmul.f32 %v896_v27, %v2644_v56  ;;  %v922_v40 = vstv %s2273_s29  ;;  %s3120_s29 = sld [smem:[#allocation5 + $0x93]] }
  0xb8   :  { %v926_v49 = vmul.f32 %v922_v40, %v2654_v61 }
  0xb9   :  { %v2628_v4 = vpop.permute.xlu1 %165  ;;  %v2630_v1 = vpop.permute.xlu0 %163 }
  0xbb   :  { %745 = vrot.lane.b32.xlu1 %v737_v38, %s2405_s12  ;;  %743 = vrot.lane.b32.xlu0 %v738_v45, %s2405_s12  ;;  %v900_v38 = vmul.f32 %v896_v27, %v2654_v61  ;;  %v924_v45 = vmul.f32 %v922_v40, %v2642_v3  ;;  %v1078_v27 = vstv %s2279_s5  ;;  %s3198_s5 = sld [smem:[#allocation5 + $0x113]] }
  0xbd   :  { %v2635_v53 = vpop.permute.xlu1 %169  ;;  %v2637_v54 = vpop.permute.xlu0 %167 }
  0xbe   :  { %4335 = vst [vmem:[#allocation11_spill] sm:$0xff] %v2635_v53  ;;  %4336 = vst [vmem:[#allocation12_spill] sm:$0xff] %v2637_v54 }
  0xbf   :  { %773 = vrot.lane.b32.xlu1 %v766_v46, %s2405_s12  ;;  %771 = vrot.lane.b32.xlu0 %v767_v50, %s2405_s12  ;;  %v923_v46 = vmul.f32 %v922_v40, %v2644_v56  ;;  %v925_v50 = vmul.f32 %v922_v40, %v2656_v62  ;;  %v1079_v40 = vmul.f32 %v1078_v27, %v2644_v56 }
  0xc1   :  { %v2646_v57 = vpop.permute.xlu1 %191  ;;  %v2648_v58 = vpop.permute.xlu0 %189 }
  0xc3   :  { %777 = vrot.lane.b32.xlu1 %v769_v51, %s2405_s12  ;;  %775 = vrot.lane.b32.xlu0 %v770_v0, %s2405_s12  ;;  %v948_v51 = vstv %s2274_s30  ;;  %s3130_s30 = sld [smem:[#allocation5 + $0x89]] }
  0xc5   :  { %v2658_v63 = vpop.permute.xlu1 %195  ;;  %v2660_v2 = vpop.permute.xlu0 %193 }
  0xc7   :  { %829 = vrot.lane.b32.xlu1 %v820_v59, %s2404_s2  ;;  %827 = vrot.lane.b32.xlu0 %v819_v60, %s2404_s2  ;;  %v950_v59 = vmul.f32 %v948_v51, %v2642_v3  ;;  %v949_v60 = vmul.f32 %v948_v51, %v2644_v56 }
  0xc9   :  { %v2666_v8 = vpop.permute.xlu1 %217  ;;  %v2668_v9 = vpop.permute.xlu0 %215 }
  0xca   :  { %4337 = vst [vmem:[#allocation13_spill] sm:$0xff] %v2668_v9 }
  0xcb   :  { %833 = vrot.lane.b32.xlu1 %v822_v5, %s2404_s2  ;;  %831 = vrot.lane.b32.xlu0 %v821_v6, %s2404_s2  ;;  %v1048_v5 = vmul.f32 %v1046_v55, %v2642_v3  ;;  %v1047_v6 = vmul.f32 %v1046_v55, %v2644_v56 }
  0xcd   :  { %v2674_v12 = vpop.permute.xlu1 %221  ;;  %v2676_v13 = vpop.permute.xlu0 %219  ;;  %v1056_v16 = vrot.slane %v1048_v5, 1 }
  0xce   :  { %4338 = vst [vmem:[#allocation14_spill] sm:$0xff] %v2674_v12  ;;  %4339 = vst [vmem:[#allocation15_spill] sm:$0xff] %v2676_v13 }
  0xcf   :  { %855 = vrot.lane.b32.xlu1 %v846_v10, %s2404_s2  ;;  %853 = vrot.lane.b32.xlu0 %v845_v11, %s2404_s2  ;;  %v952_v11 = vmul.f32 %v948_v51, %v2654_v61 }
  0xd1   :  { %v2682_v17 = vpop.permute.xlu1 %243  ;;  %v2684_v18 = vpop.permute.xlu0 %241 }
  0xd2   :  { %4340 = vst [vmem:[#allocation16_spill] sm:$0xff] %v2682_v17  ;;  %4341 = vst [vmem:[#allocation17_spill] sm:$0xff] %v2684_v18  ;;  %v307_v18 = vstv %s2973_s24  ;;  %s4012_s24 = sld [smem:[#allocation5 + $0x1a]] }
  0xd3   :  { %859 = vrot.lane.b32.xlu1 %v848_v14, %s2404_s2  ;;  %857 = vrot.lane.b32.xlu0 %v847_v15, %s2404_s2  ;;  %v951_v14 = vmul.f32 %v948_v51, %v2656_v62  ;;  %v1050_v15 = vmul.f32 %v1046_v55, %v2654_v61 }
  0xd5   :  { %v2690_v23 = vpop.permute.xlu1 %247  ;;  %v2692_v24 = vpop.permute.xlu0 %245 }
  0xd6   :  { %4342 = vst [vmem:[#allocation18_spill] sm:$0xff] %v2690_v23  ;;  %4343 = vst [vmem:[#allocation19_spill] sm:$0xff] %v2692_v24 }
  0xd7   :  { %881 = vrot.lane.b32.xlu1 %v872_v19, %s2404_s2  ;;  %879 = vrot.lane.b32.xlu0 %v871_v22, %s2404_s2  ;;  %v1055_v19 = vrot.slane %v1047_v6, 1  ;;  %v1049_v22 = vmul.f32 %v1046_v55, %v2656_v62 }
  0xd9   :  { %v2698_v30 = vpop.permute.xlu1 %348  ;;  %v2700_v31 = vpop.permute.xlu0 %346 }
  0xda   :  { %4344 = vst [vmem:[#allocation20_spill] sm:$0xff] %v2698_v30  ;;  %4345 = vst [vmem:[#allocation21_spill] sm:$0xff] %v2700_v31 }
  0xdb   :  { %885 = vrot.lane.b32.xlu1 %v874_v25, %s2404_s2  ;;  %883 = vrot.lane.b32.xlu0 %v873_v26, %s2404_s2 }
  0xdd   :  { %v2706_v34 = vpop.permute.xlu1 %352  ;;  %v2708_v37 = vpop.permute.xlu0 %350 }
  0xde   :  { %4346 = vst [vmem:[#allocation22_spill] sm:$0xff] %v2706_v34  ;;  %4347 = vst [vmem:[#allocation23_spill] sm:$0xff] %v2708_v37 }
  0xdf   :  { %907 = vrot.lane.b32.xlu1 %v898_v32, %s2405_s12  ;;  %905 = vrot.lane.b32.xlu0 %v897_v33, %s2405_s12  ;;  %v1059_v32 = vrot.slane %v1050_v15, 1  ;;  %v1057_v33 = vsel %vm267_vm0, %v1055_v19, %v1056_v16 }
  0xe1   :  { %v2714_v41 = vpop.permute.xlu1 %380  ;;  %v2716_v42 = vpop.permute.xlu0 %378 }
  0xe2   :  { %4348 = vst [vmem:[#allocation24_spill] sm:$0xff] %v2714_v41  ;;  %4349 = vst [vmem:[#allocation25_spill] sm:$0xff] %v2716_v42  ;;  %v70_v41 = vstv %s2946_s23  ;;  %s3953_s23 = sld [smem:[#allocation5 + $0x119]] }
  0xe3   :  { %911 = vrot.lane.b32.xlu1 %v900_v38, %s2405_s12  ;;  %909 = vrot.lane.b32.xlu0 %v899_v39, %s2405_s12  ;;  %v1058_v38 = vrot.slane %v1049_v22, 1  ;;  %v1080_v39 = vmul.f32 %v1078_v27, %v2642_v3 }
  0xe5   :  { %v2722_v47 = vpop.permute.xlu1 %384  ;;  %v2724_v48 = vpop.permute.xlu0 %382  ;;  %v1060_v51 = vsel %vm267_vm0, %v1058_v38, %v1059_v32  ;;  %v1088_v55 = vrot.slane %v1080_v39, 1 }
  0xe6   :  { %4350 = vst [vmem:[#allocation26_spill] sm:$0xff] %v2722_v47  ;;  %4351 = vst [vmem:[#allocation27_spill] sm:$0xff] %v2724_v48 }
  0xe7   :  { %933 = vrot.lane.b32.xlu1 %v924_v45, %s2405_s12  ;;  %931 = vrot.lane.b32.xlu0 %v923_v46, %s2405_s12 }
  0xe9   :  { %v2730_v52 = vpop.permute.xlu1 %412  ;;  %v2732_v0 = vpop.permute.xlu0 %410 }
  0xea   :  { %4352 = vst [vmem:[#allocation28_spill] sm:$0xff] %v2730_v52  ;;  %4353 = vst [vmem:[#allocation29_spill] sm:$0xff] %v2732_v0 }
  0xeb   :  { %937 = vrot.lane.b32.xlu1 %v926_v49, %s2405_s12  ;;  %935 = vrot.lane.b32.xlu0 %v925_v50, %s2405_s12  ;;  %v1082_v49 = vmul.f32 %v1078_v27, %v2654_v61  ;;  %v1081_v50 = vmul.f32 %v1078_v27, %v2656_v62 }
  0xed   :  { %v2740_v7 = vpop.permute.xlu1 %416  ;;  %v2742_v10 = vpop.permute.xlu0 %414 }
  0xee   :  { %4354 = vst [vmem:[#allocation30_spill] sm:$0xff] %v2740_v7  ;;  %4355 = vst [vmem:[#allocation31_spill] sm:$0xff] %v2742_v10  ;;  %v2941_v10 = vld [vmem:[#allocation2 + $0x8] sm:$0xff] }
  0xef   :  { %959 = vrot.lane.b32.xlu1 %v950_v59, %s2405_s12  ;;  %957 = vrot.lane.b32.xlu0 %v949_v60, %s2405_s12  ;;  %v1087_v59 = vrot.slane %v1079_v40, 1  ;;  %v1110_v60 = vstv %s2280_s6  ;;  %s3218_s6 = sld [smem:[#allocation5 + $0xc]] }
  0xf0   :  { %v1112_v15 = vmul.f32 %v1110_v60, %v2642_v3  ;;  %v1111_v19 = vmul.f32 %v1110_v60, %v2644_v56  ;;  %v1114_v39 = vmul.f32 %v1110_v60, %v2654_v61  ;;  %v1113_v40 = vmul.f32 %v1110_v60, %v2656_v62 }
  0xf1   :  { %v2750_v25 = vpop.permute.xlu1 %444  ;;  %v2752_v26 = vpop.permute.xlu0 %442 }
  0xf2   :  { %4356 = vst [vmem:[#allocation32_spill] sm:$0xff] %v2750_v25  ;;  %4357 = vst [vmem:[#allocation33_spill] sm:$0xff] %v2752_v26  ;;  %v1119_v38 = vrot.slane %v1111_v19, 1 }
  0xf3   :  { %963 = vrot.lane.b32.xlu1 %v952_v11, %s2405_s12  ;;  %961 = vrot.lane.b32.xlu0 %v951_v14, %s2405_s12  ;;  %v1091_v11 = vrot.slane %v1082_v49, 1  ;;  %v1090_v14 = vrot.slane %v1081_v50, 1  ;;  %v1142_v49 = vstv %s2281_s0  ;;  %s3279_s0 = sld [smem:[#allocation5 + $0x8c]] }
  0xf5   :  { %v2759_v45 = vpop.permute.xlu1 %448  ;;  %v2761_v46 = vpop.permute.xlu0 %446 }
  0xf6   :  { %4358 = vst [vmem:[#allocation34_spill] sm:$0xff] %v2759_v45  ;;  %4359 = vst [vmem:[#allocation35_spill] sm:$0xff] %v2761_v46  ;;  %v68_v45 = vstv %s2902_s18  ;;  %s3602_s18 = sld [smem:[#allocation5 + $0x17]] }
  0xf7   :  { %1063 = vrot.lane.b32.xlu1 %v1056_v16, %s2404_s2  ;;  %1061 = vrot.lane.b32.xlu0 %v1057_v33, %s2404_s2  ;;  %v1089_v16 = vsel %vm267_vm0, %v1087_v59, %v1088_v55  ;;  %v1120_v33 = vrot.slane %v1112_v15, 1  ;;  %v1143_v59 = vmul.f32 %v1142_v49, %v2644_v56  ;;  %v1123_v15 = vrot.slane %v1114_v39, 1 }
  0xf9   :  { %v2768_v5 = vpop.permute.xlu1 %476  ;;  %v2770_v6 = vpop.permute.xlu0 %474 }
  0xfa   :  { %4360 = vst [vmem:[#allocation36_spill] sm:$0xff] %v2768_v5  ;;  %4361 = vst [vmem:[#allocation37_spill] sm:$0xff] %v2770_v6 }
  0xfb   :  { %1067 = vrot.lane.b32.xlu1 %v1059_v32, %s2404_s2  ;;  %1065 = vrot.lane.b32.xlu0 %v1060_v51, %s2404_s2  ;;  %v1092_v32 = vsel %vm267_vm0, %v1090_v14, %v1091_v11  ;;  %v1121_v14 = vsel %vm267_vm0, %v1119_v38, %v1120_v33 }
  0xfd   :  { %v2777_v22 = vpop.permute.xlu1 %480  ;;  %v2779_v27 = vpop.permute.xlu0 %478 }
  0xfe   :  { %4362 = vst [vmem:[#allocation38_spill] sm:$0xff] %v2777_v22  ;;  %4363 = vst [vmem:[#allocation39_spill] sm:$0xff] %v2779_v27  ;;  %v1145_v27 = vmul.f32 %v1142_v49, %v2656_v62  ;;  %v66_v22 = vstv %s2900_s17  ;;  %s3573_s17 = sld [smem:[#allocation5 + $0x10f]] }
  0xff   :  { %1095 = vrot.lane.b32.xlu1 %v1088_v55, %s2404_s2  ;;  %1093 = vrot.lane.b32.xlu0 %v1089_v16, %s2404_s2  ;;  %v1144_v55 = vmul.f32 %v1142_v49, %v2642_v3  ;;  %v1122_v16 = vrot.slane %v1113_v40, 1  ;;  %v1174_v40 = vstv %s2282_s7  ;;  %s3289_s7 = sld [smem:[#allocation5 + $0x14]] }
 0x101   :  { %v2786_v50 = vpop.permute.xlu1 %508  ;;  %v2788_v51 = vpop.permute.xlu0 %506 }
 0x102   :  { %4364 = vst [vmem:[#allocation40_spill] sm:$0xff] %v2786_v50  ;;  %4365 = vst [vmem:[#allocation41_spill] sm:$0xff] %v2788_v51  ;;  %v1152_v51 = vrot.slane %v1144_v55, 1  ;;  %v1146_v50 = vmul.f32 %v1142_v49, %v2654_v61 }
 0x103   :  { %1099 = vrot.lane.b32.xlu1 %v1091_v11, %s2404_s2  ;;  %1097 = vrot.lane.b32.xlu0 %v1092_v32, %s2404_s2  ;;  %v1151_v11 = vrot.slane %v1143_v59, 1  ;;  %v1124_v32 = vsel %vm267_vm0, %v1122_v16, %v1123_v15  ;;  %v1154_v59 = vrot.slane %v1145_v27, 1  ;;  %v1175_v16 = vmul.f32 %v1174_v40, %v2644_v56 }
 0x104   :  { %v1155_v55 = vrot.slane %v1146_v50, 1 }
 0x105   :  { %v2795_v19 = vpop.permute.xlu1 %512  ;;  %v2797_v60 = vpop.permute.xlu0 %510  ;;  %v1183_v27 = vrot.slane %v1175_v16, 1 }
 0x106   :  { %4366 = vst [vmem:[#allocation42_spill] sm:$0xff] %v2795_v19  ;;  %4367 = vst [vmem:[#allocation43_spill] sm:$0xff] %v2797_v60 }
 0x107   :  { %1127 = vrot.lane.b32.xlu1 %v1120_v33, %s2404_s2  ;;  %1125 = vrot.lane.b32.xlu0 %v1121_v14, %s2404_s2  ;;  %v1153_v33 = vsel %vm267_vm0, %v1151_v11, %v1152_v51  ;;  %v1176_v14 = vmul.f32 %v1174_v40, %v2642_v3  ;;  %v1156_v11 = vsel %vm267_vm0, %v1154_v59, %v1155_v55 }
 0x109   :  { %v2804_v38 = vpop.permute.xlu1 %613  ;;  %v2806_v39 = vpop.permute.xlu0 %611  ;;  %v1184_v50 = vrot.slane %v1176_v14, 1 }
 0x10a   :  { %4368 = vst [vmem:[#allocation44_spill] sm:$0xff] %v2804_v38  ;;  %4369 = vst [vmem:[#allocation45_spill] sm:$0xff] %v2806_v39  ;;  %v1206_v39 = vstv %s2283_s8  ;;  %s3299_s8 = sld [smem:[#allocation5 + $0x10c]] }
 0x10b   :  { %1131 = vrot.lane.b32.xlu1 %v1123_v15, %s2404_s2  ;;  %1129 = vrot.lane.b32.xlu0 %v1124_v32, %s2404_s2  ;;  %v1178_v15 = vmul.f32 %v1174_v40, %v2654_v61  ;;  %v1177_v32 = vmul.f32 %v1174_v40, %v2656_v62  ;;  %v1185_v40 = vsel %vm267_vm0, %v1183_v27, %v1184_v50 }
 0x10c   :  { %v1207_v59 = vmul.f32 %v1206_v39, %v2644_v56 }
 0x10d   :  { %v2813_v60 = vpop.permute.xlu1 %617  ;;  %v2815_v49 = vpop.permute.xlu0 %615 }
 0x10e   :  { %4370 = vst [vmem:[#allocation46_spill] sm:$0xff] %v2813_v60  ;;  %4371 = vst [vmem:[#allocation47_spill] sm:$0xff] %v2815_v49  ;;  %v1208_v49 = vmul.f32 %v1206_v39, %v2642_v3 }
 0x10f   :  { %1159 = vrot.lane.b32.xlu1 %v1152_v51, %s2405_s12  ;;  %1157 = vrot.lane.b32.xlu0 %v1153_v33, %s2405_s12  ;;  %v1187_v51 = vrot.slane %v1178_v15, 1  ;;  %v1186_v33 = vrot.slane %v1177_v32, 1  ;;  %v1210_v15 = vmul.f32 %v1206_v39, %v2654_v61  ;;  %v1209_v32 = vmul.f32 %v1206_v39, %v2656_v62 }
 0x111   :  { %v2822_v38 = vpop.permute.xlu1 %645  ;;  %v2824_v19 = vpop.permute.xlu0 %643 }
 0x112   :  { %4372 = vst [vmem:[#allocation48_spill] sm:$0xff] %v2822_v38  ;;  %4373 = vst [vmem:[#allocation49_spill] sm:$0xff] %v2824_v19  ;;  %v1216_v19 = vrot.slane %v1208_v49, 1  ;;  %v1310_v38 = vstv %s2287_s9  ;;  %s3363_s9 = sld [smem:[#allocation5 + $0x94]] }
 0x113   :  { %1163 = vrot.lane.b32.xlu1 %v1155_v55, %s2405_s12  ;;  %1161 = vrot.lane.b32.xlu0 %v1156_v11, %s2405_s12  ;;  %v1188_v55 = vsel %vm267_vm0, %v1186_v33, %v1187_v51  ;;  %v1215_v11 = vrot.slane %v1207_v59, 1  ;;  %v1311_v33 = vmul.f32 %v1310_v38, %v2644_v56  ;;  %v1218_v59 = vrot.slane %v1209_v32, 1 }
 0x114   :  { %v1342_v32 = vstv %s2288_s10  ;;  %s3423_s10 = sld [smem:[#allocation5 + $0x114]] }
 0x115   :  { %v2831_v14 = vpop.permute.xlu1 %649  ;;  %v2833_v16 = vpop.permute.xlu0 %647  ;;  %v1217_v49 = vsel %vm267_vm0, %v1215_v11, %v1216_v19 }
 0x116   :  { %4374 = vst [vmem:[#allocation50_spill] sm:$0xff] %v2831_v14  ;;  %4375 = vst [vmem:[#allocation51_spill] sm:$0xff] %v2833_v16  ;;  %v1313_v14 = vmul.f32 %v1310_v38, %v2656_v62 }
 0x117   :  { %1191 = vrot.lane.b32.xlu1 %v1184_v50, %s2405_s12  ;;  %1189 = vrot.lane.b32.xlu0 %v1185_v40, %s2405_s12  ;;  %v1312_v50 = vmul.f32 %v1310_v38, %v2642_v3  ;;  %v1219_v40 = vrot.slane %v1210_v15, 1 }
 0x119   :  { %v2840_v27 = vpop.permute.xlu1 %677  ;;  %v2842_v60 = vpop.permute.xlu0 %675 }
 0x11a   :  { %4376 = vst [vmem:[#allocation52_spill] sm:$0xff] %v2840_v27  ;;  %4377 = vst [vmem:[#allocation53_spill] sm:$0xff] %v2842_v60  ;;  %v1320_v60 = vrot.slane %v1312_v50, 2  ;;  %v1314_v27 = vmul.f32 %v1310_v38, %v2654_v61 }
 0x11b   :  { %1195 = vrot.lane.b32.xlu1 %v1187_v51, %s2405_s12  ;;  %1193 = vrot.lane.b32.xlu0 %v1188_v55, %s2405_s12  ;;  %v1319_v51 = vrot.slane %v1311_v33, 2  ;;  %v1220_v55 = vsel %vm267_vm0, %v1218_v59, %v1219_v40  ;;  %v1322_v33 = vrot.slane %v1313_v14, 2  ;;  %v1343_v59 = vmul.f32 %v1342_v32, %v2644_v56 }
 0x11c   :  { %v1323_v50 = vrot.slane %v1314_v27, 2 }
 0x11d   :  { %v2849_v16 = vpop.permute.xlu1 %681  ;;  %v2851_v39 = vpop.permute.xlu0 %679  ;;  %v1351_v14 = vrot.slane %v1343_v59, 2 }
 0x11e   :  { %4378 = vst [vmem:[#allocation54_spill] sm:$0xff] %v2849_v16  ;;  %4379 = vst [vmem:[#allocation55_spill] sm:$0xff] %v2851_v39 }
 0x11f   :  { %1223 = vrot.lane.b32.xlu1 %v1216_v19, %s2405_s12  ;;  %1221 = vrot.lane.b32.xlu0 %v1217_v49, %s2405_s12  ;;  %v1321_v19 = vsel %vm532_vm1, %v1319_v51, %v1320_v60  ;;  %v1344_v49 = vmul.f32 %v1342_v32, %v2642_v3  ;;  %v1324_v51 = vsel %vm532_vm1, %v1322_v33, %v1323_v50 }
 0x121   :  { %v2858_v11 = vpop.permute.xlu1 %709  ;;  %v2860_v15 = vpop.permute.xlu0 %707  ;;  %v1352_v27 = vrot.slane %v1344_v49, 2 }
 0x122   :  { %4380 = vst [vmem:[#allocation56_spill] sm:$0xff] %v2858_v11  ;;  %4381 = vst [vmem:[#allocation57_spill] sm:$0xff] %v2860_v15  ;;  %v1374_v15 = vstv %s2289_s11  ;;  %s3428_s11 = sld [smem:[#allocation5 + $0x16]] }
 0x123   :  { %1227 = vrot.lane.b32.xlu1 %v1219_v40, %s2405_s12  ;;  %1225 = vrot.lane.b32.xlu0 %v1220_v55, %s2405_s12  ;;  %v1346_v40 = vmul.f32 %v1342_v32, %v2654_v61  ;;  %v1345_v55 = vmul.f32 %v1342_v32, %v2656_v62  ;;  %v1353_v32 = vsel %vm532_vm1, %v1351_v14, %v1352_v27 }
 0x124   :  { %v1375_v33 = vmul.f32 %v1374_v15, %v2644_v56  ;;  %v1377_v14 = vmul.f32 %v1374_v15, %v2656_v62 }
 0x125   :  { %v2867_v39 = vpop.permute.xlu1 %713  ;;  %v2869_v38 = vpop.permute.xlu0 %711 }
 0x126   :  { %4382 = vst [vmem:[#allocation58_spill] sm:$0xff] %v2867_v39  ;;  %4383 = vst [vmem:[#allocation59_spill] sm:$0xff] %v2869_v38  ;;  %v1376_v38 = vmul.f32 %v1374_v15, %v2642_v3 }
 0x127   :  { %1327 = vrot.lane.b32.xlu1 %v1320_v60, %s2404_s2  ;;  %1325 = vrot.lane.b32.xlu0 %v1321_v19, %s2404_s2  ;;  %v1355_v60 = vrot.slane %v1346_v40, 2  ;;  %v1354_v19 = vrot.slane %v1345_v55, 2  ;;  %v1383_v55 = vrot.slane %v1375_v33, 2 }
 0x128   :  { %v1384_v40 = vrot.slane %v1376_v38, 2 }
 0x129   :  { %v2876_v16 = vpop.permute.xlu1 %741  ;;  %v2878_v11 = vpop.permute.xlu0 %739 }
 0x12a   :  { %4384 = vst [vmem:[#allocation60_spill] sm:$0xff] %v2876_v16  ;;  %4385 = vst [vmem:[#allocation61_spill] sm:$0xff] %v2878_v11  ;;  %v1406_v11 = vstv %s2290_s13  ;;  %s3430_s13 = sld [smem:[#allocation5 + $0xf]] }
 0x12b   :  { %1331 = vrot.lane.b32.xlu1 %v1323_v50, %s2404_s2  ;;  %1329 = vrot.lane.b32.xlu0 %v1324_v51, %s2404_s2  ;;  %v1356_v50 = vsel %vm532_vm1, %v1354_v19, %v1355_v60  ;;  %v1378_v51 = vmul.f32 %v1374_v15, %v2654_v61  ;;  %v1408_v38 = vmul.f32 %v1406_v11, %v2642_v3 }
 0x12c   :  { %v1385_v15 = vsel %vm532_vm1, %v1383_v55, %v1384_v40 }
 0x12d   :  { %v2885_v49 = vpop.permute.xlu1 %745  ;;  %v2887_v59 = vpop.permute.xlu0 %743  ;;  %v1387_v19 = vrot.slane %v1378_v51, 2  ;;  %v1410_v51 = vmul.f32 %v1406_v11, %v2654_v61 }
 0x12e   :  { %4386 = vst [vmem:[#allocation62_spill] sm:$0xff] %v2885_v49  ;;  %4387 = vst [vmem:[#allocation63_spill] sm:$0xff] %v2887_v59  ;;  %v82_v59 = vstv %s2240_s15  ;;  %s3504_s15 = sld [smem:[#allocation5 + $0x96]] }
 0x12f   :  { %1359 = vrot.lane.b32.xlu1 %v1352_v27, %s2404_s2  ;;  %1357 = vrot.lane.b32.xlu0 %v1353_v32, %s2404_s2  ;;  %v1407_v27 = vmul.f32 %v1406_v11, %v2644_v56  ;;  %v1386_v32 = vrot.slane %v1377_v14, 2  ;;  %v1409_v14 = vmul.f32 %v1406_v11, %v2656_v62  ;;  %v1438_v11 = vstv %s2898_s16  ;;  %s3564_s16 = sld [smem:[#allocation5 + $0x116]] }
 0x130   :  { %v84_v5 = vmul.f32 %v2941_v10, %v82_v59  ;;  %v1439_v0 = vmul.f32 %v1438_v11, %v2644_v56 }
 0x131   :  { %v2894_v16 = vpop.permute.xlu1 %773  ;;  %v2896_v49 = vpop.permute.xlu0 %771  ;;  %v1388_v55 = vsel %vm532_vm1, %v1386_v32, %v1387_v19  ;;  %v1418_v7 = vrot.slane %v1409_v14, 2 }
 0x132   :  { %4388 = vst [vmem:[#allocation64_spill] sm:$0xff] %v2894_v16  ;;  %4389 = vst [vmem:[#allocation65_spill] sm:$0xff] %v2896_v49  ;;  %v72_v16 = vstv %s71_s14  ;;  %s3499_s14 = sld [smem:[#allocation5 + $0x8f]] }
 0x133   :  { %1363 = vrot.lane.b32.xlu1 %v1355_v60, %s2404_s2  ;;  %1361 = vrot.lane.b32.xlu0 %v1356_v50, %s2404_s2  ;;  %v1416_v60 = vrot.slane %v1408_v38, 2  ;;  %v1415_v50 = vrot.slane %v1407_v27, 2  ;;  %v2928_v38 = vld [vmem:[#allocation2 + $0x38] sm:$0xff]  ;;  %v74_v6 = vmul.f32 %v2941_v10, %v72_v16 }
 0x134   :  { %v76_v27 = vmul.f32 %v2928_v38, %v72_v16  ;;  %v86_v26 = vmul.f32 %v2928_v38, %v82_v59 }
 0x135   :  { %v2909_v33 = vpop.permute.xlu1 %777  ;;  %v2911_v49 = vpop.permute.xlu0 %775 }
 0x136   :  { %4390 = vst [vmem:[#allocation66_spill] sm:$0xff] %v2909_v33  ;;  %4391 = vst [vmem:[#allocation67_spill] sm:$0xff] %v2911_v49  ;;  %v2922_v49 = vld [vmem:[#allocation2 + $0x30] sm:$0xff]  ;;  %v2959_v48 = vadd.f32 %v76_v27, %v66_v22  ;;  %v1447_v27 = vrot.slane %v1439_v0, 2 }
 0x137   :  { %1391 = vrot.lane.b32.xlu1 %v1384_v40, %s2404_s2  ;;  %1389 = vrot.lane.b32.xlu0 %v1385_v15, %s2404_s2  ;;  %v75_v33 = vmul.f32 %v2922_v49, %v72_v16  ;;  %v2925_v40 = vld [vmem:[#allocation2] sm:$0xff] }
 0x138   :  { %v73_v15 = vmul.f32 %v2925_v40, %v72_v16  ;;  %v83_v46 = vmul.f32 %v2925_v40, %v82_v59  ;;  %v1440_v16 = vmul.f32 %v1438_v11, %v2642_v3 }
 0x139   :  { %v2933_v32 = vpop.permute.xlu1 %829  ;;  %v2935_v39 = vpop.permute.xlu0 %827  ;;  %v2955_v25 = vadd.f32 %v75_v33, %v66_v22  ;;  %v258_v33 = vstv %s2913_s19  ;;  %s3631_s19 = sld [smem:[#allocation5 + $0x97]] }
 0x13a   :  { %4392 = vst [vmem:[#allocation68_spill] sm:$0xff] %v2933_v32  ;;  %4393 = vst [vmem:[#allocation69_spill] sm:$0xff] %v2935_v39  ;;  %v1417_v39 = vsel %vm532_vm1, %v1415_v50, %v1416_v60  ;;  %v1419_v32 = vrot.slane %v1410_v51, 2  ;;  %v2957_v52 = vadd.f32 %v73_v15, %v66_v22  ;;  %v2966_v50 = vadd.f32 %v74_v6, %v66_v22 }
 0x13b   :  { %1395 = vrot.lane.b32.xlu1 %v1387_v19, %s2404_s2  ;;  %1393 = vrot.lane.b32.xlu0 %v1388_v55, %s2404_s2  ;;  %v85_v19 = vmul.f32 %v2922_v49, %v82_v59  ;;  %v2968_v51 = vadd.f32 %v84_v5, %v68_v45  ;;  %v2970_v14 = vadd.f32 %v83_v46, %v68_v45  ;;  %v283_v5 = vstv %s2917_s20  ;;  %s3695_s20 = sld [smem:[#allocation5 + $0x117]] }
 0x13c   :  { %v2975_v15 = vadd.f32 %v86_v26, %v68_v45  ;;  %v2980_v59 = vmul.f32 %v1438_v11, %v2654_v61  ;;  %v1441_v6 = vmul.f32 %v1438_v11, %v2656_v62  ;;  %v1420_v46 = vsel %vm532_vm1, %v1418_v7, %v1419_v32 }
 0x13d   :  { %v2962_v47 = vpop.permute.xlu1 %833  ;;  %v2964_v55 = vpop.permute.xlu0 %831  ;;  %v1448_v22 = vrot.slane %v1440_v16, 2  ;;  %v2989_v26 = vmul.f32 %v2941_v10, %v258_v33  ;;  %v259_v37 = vmul.f32 %v2925_v40, %v258_v33  ;;  %v2999_v11 = vmul.f32 %v2928_v38, %v258_v33 }
 0x13e   :  { %4394 = vst [vmem:[#allocation70_spill] sm:$0xff] %v2962_v47  ;;  %4395 = vst [vmem:[#allocation71_spill] sm:$0xff] %v2964_v55  ;;  %v2985_v55 = vadd.f32 %v85_v19, %v68_v45  ;;  %v92_v47 = vstv %s2931_s21  ;;  %v261_v7 = vmul.f32 %v2922_v49, %v258_v33  ;;  %v3003_v0 = vmul.f32 %v2941_v10, %v283_v5  ;;  %s3709_s21 = sld [smem:[#allocation5 + $0x19]] }
 0x13f   :  { %1423 = vrot.lane.b32.xlu1 %v1416_v60, %s2405_s12  ;;  %1421 = vrot.lane.b32.xlu0 %v1417_v39, %s2405_s12  ;;  %4396 = vst [vmem:[#allocation72_spill] sm:$0xff] %v2989_v26  ;;  %v1470_v39 = vstv %s2938_s22  ;;  %4399 = vst [vmem:[#allocation75_spill] sm:$0xff] %v2999_v11  ;;  %v284_v45 = vmul.f32 %v2925_v40, %v283_v5  ;;  %v1451_v16 = vrot.slane %v2980_v59, 2  ;;  %v1450_v19 = vrot.slane %v1441_v6, 2  ;;  %s3827_s22 = sld [smem:[#allocation5 + $0x99]] }
 0x140   :  { %4400 = vst [vmem:[#allocation76_spill] sm:$0xff] %v3003_v0  ;;  %v1449_v33 = vsel %vm532_vm1, %v1447_v27, %v1448_v22  ;;  %v1471_v34 = vmul.f32 %v1470_v39, %v2644_v56  ;;  %v93_v31 = vmul.f32 %v2925_v40, %v92_v47  ;;  %v268_v24 = vrot.slane %v259_v37, 1 }
 0x141   :  { %v2991_v42 = vpop.permute.xlu1 %855  ;;  %v2993_v60 = vpop.permute.xlu0 %853  ;;  %v271_v27 = vrot.slane %v261_v7, 1  ;;  %v292_v54 = vrot.slane %v284_v45, 1  ;;  %v3031_v53 = vmul.f32 %v2928_v38, %v283_v5  ;;  %v1474_v23 = vmul.f32 %v1470_v39, %v2654_v61 }
 0x142   :  { %4397 = vst [vmem:[#allocation73_spill] sm:$0xff] %v2991_v42  ;;  %4398 = vst [vmem:[#allocation74_spill] sm:$0xff] %v2993_v60  ;;  %v94_v60 = vmul.f32 %v2941_v10, %v92_v47  ;;  %v1472_v42 = vmul.f32 %v1470_v39, %v2642_v3  ;;  %v1479_v37 = vrot.slane %v1471_v34, 2  ;;  %v1473_v7 = vmul.f32 %v1470_v39, %v2656_v62 }
 0x143   :  { %1427 = vrot.lane.b32.xlu1 %v1419_v32, %s2405_s12  ;;  %1425 = vrot.lane.b32.xlu0 %v1420_v46, %s2405_s12  ;;  %v96_v32 = vmul.f32 %v2928_v38, %v92_v47  ;;  %v95_v46 = vmul.f32 %v2922_v49, %v92_v47  ;;  %v1452_v47 = vsel %vm532_vm1, %v1450_v19, %v1451_v16 }
 0x144   :  { %v1480_v59 = vrot.slane %v1472_v42, 2  ;;  %v3040_v17 = vadd.f32 %v94_v60, %v70_v41  ;;  %v3042_v45 = vadd.f32 %v93_v31, %v70_v41  ;;  %v4407_v60 = vrot.slane %v2989_v26, 1 }
 0x145   :  { %v3021_v30 = vpop.permute.xlu1 %859  ;;  %v3023_v6 = vpop.permute.xlu0 %857  ;;  %v3054_v19 = vadd.f32 %v96_v32, %v70_v41  ;;  %v3056_v39 = vadd.f32 %v95_v46, %v70_v41  ;;  %v4409_v31 = vrot.slane %v2999_v11, 1  ;;  %v3075_v41 = vmul.f32 %v2925_v40, %v307_v18  ;;  %v3115_v11 = vld [vmem:[#allocation2 + $0x28] sm:$0xff] }
 0x146   :  { %4401 = vst [vmem:[#allocation77_spill] sm:$0xff] %v3021_v30  ;;  %4402 = vst [vmem:[#allocation78_spill] sm:$0xff] %v3023_v6  ;;  %v3061_v6 = vsel %vm267_vm0, %v268_v24, %v4407_v60  ;;  %v4411_v30 = vrot.slane %v3003_v0, 1  ;;  %v523_v46 = vstv %s3006_s1  ;;  %v548_v24 = vstv %s3012_s25  ;;  %s4017_s1 = sld [smem:[#allocation5 + $0x12]] }
 0x147   :  { %1455 = vrot.lane.b32.xlu1 %v1448_v22, %s2405_s12  ;;  %1453 = vrot.lane.b32.xlu0 %v1449_v33, %s2405_s12  ;;  %v3045_v22 = vmul.f32 %v2922_v49, %v283_v5  ;;  %v3048_v33 = vmul.f32 %v2941_v10, %v307_v18  ;;  %4405 = vst [vmem:[#allocation81_spill] sm:$0xff] %v3054_v19  ;;  %4406 = vst [vmem:[#allocation82_spill] sm:$0xff] %v3056_v39  ;;  %v1483_v60 = vrot.slane %v1474_v23, 2  ;;  %v3147_v39 = vld [vmem:[#allocation2 + $0x58] sm:$0xff]  ;;  %s4047_s25 = sld [smem:[#allocation5 + $0x92]] }
 0x148   :  { %4408 = vst [vmem:[#allocation83_spill] sm:$0xff] %v3061_v6  ;;  %v3066_v5 = vsel %vm267_vm0, %v271_v27, %v4409_v31  ;;  %v1481_v27 = vsel %vm532_vm1, %v1479_v37, %v1480_v59  ;;  %v1482_v31 = vrot.slane %v1473_v7, 2  ;;  %v310_v32 = vmul.f32 %v2922_v49, %v307_v18 }
 0x149   :  { %v3050_v42 = vpop.permute.xlu1 %881  ;;  %v3052_v34 = vpop.permute.xlu0 %879  ;;  %4410 = vst [vmem:[#allocation84_spill] sm:$0xff] %v3066_v5  ;;  %v524_v23 = vmul.f32 %v2925_v40, %v523_v46  ;;  %v572_v37 = vstv %s3027_s26  ;;  %v316_v7 = vrot.slane %v3075_v41, 1  ;;  %v1532_v41 = vstv %s3038_s27  ;;  %s4061_s26 = sld [smem:[#allocation5 + $0x9a]] }
 0x14a   :  { %4403 = vst [vmem:[#allocation79_spill] sm:$0xff] %v3050_v42  ;;  %4404 = vst [vmem:[#allocation80_spill] sm:$0xff] %v3052_v34  ;;  %v3071_v42 = vsel %vm267_vm0, %v292_v54, %v4411_v30  ;;  %v295_v34 = vrot.slane %v3045_v22, 1  ;;  %v3085_v30 = vmul.f32 %v2928_v38, %v307_v18  ;;  %v526_v18 = vmul.f32 %v2922_v49, %v523_v46  ;;  %s4084_s27 = sld [smem:[#allocation5 + $0x112]] }
 0x14b   :  { %4412 = vst [vmem:[#allocation85_spill] sm:$0xff] %v3071_v42  ;;  %1459 = vrot.lane.b32.xlu1 %v1451_v16, %s2405_s12  ;;  %1457 = vrot.lane.b32.xlu0 %v1452_v47, %s2405_s12  ;;  %v3093_v16 = vmul.f32 %v2941_v10, %v523_v46  ;;  %v3097_v47 = vmul.f32 %v2928_v38, %v523_v46  ;;  %v3118_v46 = vld [vmem:[#allocation2 + $0x20] sm:$0xff]  ;;  %v319_v19 = vrot.slane %v310_v32, 1 }
 0x14c   :  { %v3105_v22 = vmul.f32 %v2941_v10, %v548_v24  ;;  %v549_v54 = vmul.f32 %v2925_v40, %v548_v24  ;;  %v1484_v5 = vsel %vm532_vm1, %v1482_v31, %v1483_v60  ;;  %4415 = vst [vmem:[#allocation88_spill] sm:$0xff] %v3118_v46  ;;  %v3123_v6 = vmul.f32 %v2941_v10, %v572_v37 }
 0x14d   :  { %v3088_v42 = vpop.permute.xlu1 %885  ;;  %v3090_v0 = vpop.permute.xlu0 %883  ;;  %v575_v26 = vmul.f32 %v2922_v49, %v572_v37  ;;  %v533_v10 = vrot.slane %v524_v23, 2  ;;  %v4423_v12 = vrot.slane %v3093_v16, 2 }
 0x14e   :  { %4413 = vst [vmem:[#allocation86_spill] sm:$0xff] %v3088_v42  ;;  %4414 = vst [vmem:[#allocation87_spill] sm:$0xff] %v3090_v0  ;;  %v3111_v0 = vmul.f32 %v2928_v38, %v548_v24  ;;  %v551_v42 = vmul.f32 %v2922_v49, %v548_v24  ;;  %v1534_v49 = vmul.f32 %v1532_v41, %v3115_v11  ;;  %v557_v32 = vrot.slane %v549_v54, 2 }
 0x14f   :  { %1487 = vrot.lane.b32.xlu1 %v1480_v59, %s2405_s12  ;;  %1485 = vrot.lane.b32.xlu0 %v1481_v27, %s2405_s12  ;;  %v573_v59 = vmul.f32 %v2925_v40, %v572_v37  ;;  %v3127_v27 = vmul.f32 %v2928_v38, %v572_v37  ;;  %v536_v40 = vrot.slane %v526_v18, 2  ;;  %v1533_v38 = vmul.f32 %v1532_v41, %v3118_v46  ;;  %v3149_v18 = vld [vmem:[#allocation2 + $0x50] sm:$0xff] }
 0x150   :  { %v560_v23 = vrot.slane %v551_v42, 2  ;;  %v4420_v54 = vrot.slane %v3031_v53, 1  ;;  %v4421_v42 = vrot.slane %v3048_v33, 1 }
 0x151   :  { %v3132_v24 = vpop.permute.xlu1 %907  ;;  %v3134_v31 = vpop.permute.xlu0 %905 }
 0x152   :  { %4416 = vst [vmem:[#allocation89_spill] sm:$0xff] %v3132_v24  ;;  %4417 = vst [vmem:[#allocation90_spill] sm:$0xff] %v3134_v31  ;;  %v584_v31 = vrot.slane %v575_v26, 2  ;;  %v3160_v13 = vsel %vm267_vm0, %v295_v34, %v4420_v54  ;;  %v3165_v37 = vsel %vm267_vm0, %v316_v7, %v4421_v42  ;;  %v788_v26 = vstv %s3100_s28  ;;  %s4094_s28 = sld [smem:[#allocation5 + $0x11a]] }
 0x153   :  { %1491 = vrot.lane.b32.xlu1 %v1483_v60, %s2405_s12  ;;  %1489 = vrot.lane.b32.xlu0 %v1484_v5, %s2405_s12  ;;  %v581_v60 = vrot.slane %v573_v59, 2  ;;  %v4422_v59 = vrot.slane %v3085_v30, 1  ;;  %v1536_v34 = vmul.f32 %v1532_v41, %v3147_v39  ;;  %v1535_v7 = vmul.f32 %v1532_v41, %v3149_v18 }
 0x154   :  { %v4424_v54 = vrot.slane %v3097_v47, 2  ;;  %v4427_v41 = vrot.slane %v3123_v6, 2 }
 0x155   :  { %v3153_v24 = vpop.permute.xlu1 %911  ;;  %v3155_v9 = vpop.permute.xlu0 %909  ;;  %v3170_v5 = vsel %vm267_vm0, %v319_v19, %v4422_v59  ;;  %v4425_v19 = vrot.slane %v3105_v22, 2 }
 0x156   :  { %4418 = vst [vmem:[#allocation91_spill] sm:$0xff] %v3153_v24  ;;  %4419 = vst [vmem:[#allocation92_spill] sm:$0xff] %v3155_v9  ;;  %v3176_v9 = vsel %vm532_vm1, %v533_v10, %v4423_v12  ;;  %v3185_v42 = vsel %vm532_vm1, %v536_v40, %v4424_v54  ;;  %v4426_v12 = vrot.slane %v3111_v0, 2  ;;  %v4428_v40 = vrot.slane %v3127_v27, 2 }
 0x157   :  { %1543 = vrot.lane.b32.xlu1 %v1534_v49, %s2404_s2  ;;  %1541 = vrot.lane.b32.xlu0 %v1533_v38, %s2404_s2  ;;  %v3190_v59 = vsel %vm532_vm1, %v557_v32, %v4425_v19  ;;  %v1558_v49 = vstv %s3120_s29  ;;  %v3203_v38 = vsel %vm532_vm1, %v581_v60, %v4427_v41  ;;  %v3211_v32 = vmul.f32 %v788_v26, %v2642_v3  ;;  %s2303_s29 = sld [smem:[#allocation5 + $0x95]] }
 0x158   :  { %v3195_v10 = vsel %vm532_vm1, %v560_v23, %v4426_v12  ;;  %v3208_v54 = vsel %vm532_vm1, %v584_v31, %v4428_v40  ;;  %v798_v19 = vstv %s3130_s30  ;;  %v125_v12 = vadd.f32 %v2592_v20, %v2955_v25  ;;  %s2311_s30 = sld [smem:[#allocation5 + $0x18]] }
 0x159   :  { %v3214_v24 = vpop.permute.xlu1 %933  ;;  %v3216_v23 = vpop.permute.xlu0 %931  ;;  %v3223_v60 = vmul.f32 %v788_v26, %v2644_v56  ;;  %v3226_v41 = vmul.f32 %v788_v26, %v2654_v61  ;;  %v3229_v31 = vmul.f32 %v788_v26, %v2656_v62  ;;  %v123_v40 = vadd.f32 %v2594_v21, %v2957_v52 }
 0x15a   :  { %4429 = vst [vmem:[#allocation93_spill] sm:$0xff] %v3214_v24  ;;  %4430 = vst [vmem:[#allocation94_spill] sm:$0xff] %v3216_v23  ;;  %v808_v24 = vstv %s3139_s4  ;;  %v1560_v23 = vmul.f32 %v1558_v49, %v3115_v11  ;;  %v1559_v20 = vmul.f32 %v1558_v49, %v3118_v46  ;;  %v126_v25 = vadd.f32 %v2601_v28, %v2959_v48  ;;  %s2312_s4 = sld [smem:[#allocation5 + $0x98]] }
 0x15b   :  { %4431 = vst [vmem:[#allocation95_spill] sm:$0xff] %v3226_v41  ;;  %1547 = vrot.lane.b32.xlu1 %v1536_v34, %s2404_s2  ;;  %1545 = vrot.lane.b32.xlu0 %v1535_v7, %s2404_s2  ;;  %v124_v41 = vadd.f32 %v2603_v29, %v2966_v50  ;;  %v3243_v26 = vmul.f32 %v798_v19, %v2642_v3 }
 0x15c   :  { %v3246_v21 = vmul.f32 %v798_v19, %v2644_v56  ;;  %v150_v52 = vadd.f32 %v2610_v35, %v2968_v51  ;;  %v149_v34 = vadd.f32 %v2612_v36, %v2970_v14  ;;  %v3253_v7 = vmul.f32 %v798_v19, %v2654_v61 }
 0x15d   :  { %4432 = vst [vmem:[#allocation96_spill] sm:$0xff] %v3243_v26  ;;  %v3256_v28 = vmul.f32 %v798_v19, %v2656_v62  ;;  %v3258_v29 = vpop.permute.xlu1 %937  ;;  %v3260_v48 = vpop.permute.xlu0 %935  ;;  %v152_v50 = vadd.f32 %v2619_v43, %v2975_v15  ;;  %v151_v35 = vadd.f32 %v2621_v44, %v2985_v55  ;;  %v3267_v51 = vmul.f32 %v808_v24, %v2642_v3 }
 0x15e   :  { %4433 = vst [vmem:[#allocation97_spill] sm:$0xff] %v3246_v21  ;;  %4434 = vst [vmem:[#allocation98_spill] sm:$0xff] %v3253_v7  ;;  %v3270_v36 = vmul.f32 %v808_v24, %v2644_v56  ;;  %v3273_v14 = vmul.f32 %v808_v24, %v2654_v61  ;;  %v1562_v19 = vmul.f32 %v1558_v49, %v3147_v39  ;;  %v1584_v61 = vstv %s3198_s5  ;;  %v4480_v21 = vld [vmem:[#allocation22_spill] sm:$0xff]  ;;  %s2313_s5 = sld [smem:[#allocation5 + $0x118]] }
 0x15f   :  { %4435 = vst [vmem:[#allocation99_spill] sm:$0xff] %v3256_v28  ;;  %4436 = vst [vmem:[#allocation100_spill] sm:$0xff] %v3258_v29  ;;  %1569 = vrot.lane.b32.xlu1 %v1560_v23, %s2404_s2  ;;  %1567 = vrot.lane.b32.xlu0 %v1559_v20, %s2404_s2  ;;  %v1561_v43 = vmul.f32 %v1558_v49, %v3149_v18  ;;  %v176_v44 = vadd.f32 %v2628_v4, %v3040_v17  ;;  %v974_v4 = vstv %s3218_s6  ;;  %v4442_v17 = vld [vmem:[#allocation13_spill] sm:$0xff] }
 0x160   :  { %4437 = vst [vmem:[#allocation101_spill] sm:$0xff] %v3260_v48  ;;  %4438 = vst [vmem:[#allocation102_spill] sm:$0xff] %v3267_v51  ;;  %v175_v3 = vadd.f32 %v2630_v1, %v3042_v45  ;;  %v3286_v56 = vmul.f32 %v808_v24, %v2656_v62  ;;  %v202_v55 = vadd.f32 %v2646_v57, %v124_v41  ;;  %v4443_v24 = vld [vmem:[#allocation14_spill] sm:$0xff]  ;;  %v4444_v57 = vld [vmem:[#allocation15_spill] sm:$0xff] }
 0x161   :  { %4439 = vst [vmem:[#allocation103_spill] sm:$0xff] %v3270_v36  ;;  %v201_v15 = vadd.f32 %v2648_v58, %v123_v40  ;;  %v204_v49 = vadd.f32 %v2658_v63, %v126_v25  ;;  %v3294_v23 = vpop.permute.xlu1 %959  ;;  %v3296_v20 = vpop.permute.xlu0 %957  ;;  %v203_v1 = vadd.f32 %v2660_v2, %v125_v12  ;;  %v228_v62 = vadd.f32 %v2666_v8, %v150_v52  ;;  %v4445_v40 = vld [vmem:[#allocation81_spill] sm:$0xff]  ;;  %v4446_v25 = vld [vmem:[#allocation11_spill] sm:$0xff]  ;;  %v4447_v2 = vld [vmem:[#allocation82_spill] sm:$0xff] }
 0x162   :  { %4440 = vst [vmem:[#allocation104_spill] sm:$0xff] %v3294_v23  ;;  %4441 = vst [vmem:[#allocation105_spill] sm:$0xff] %v3296_v20  ;;  %v227_v45 = vadd.f32 %v4442_v17, %v149_v34  ;;  %v230_v48 = vadd.f32 %v4443_v24, %v152_v50  ;;  %v229_v41 = vadd.f32 %v4444_v57, %v151_v35  ;;  %v4448_v12 = vld [vmem:[#allocation12_spill] sm:$0xff]  ;;  %v3314_v52 = vld [vmem:[#allocation2 + $0x18] sm:$0xff] }
 0x163   :  { %1573 = vrot.lane.b32.xlu1 %v1562_v19, %s2404_s2  ;;  %1571 = vrot.lane.b32.xlu0 %v1561_v43, %s2404_s2  ;;  %v1586_v58 = vmul.f32 %v1584_v61, %v3115_v11  ;;  %v1585_v63 = vmul.f32 %v1584_v61, %v3118_v46  ;;  %v178_v20 = vadd.f32 %v4446_v25, %v4445_v40  ;;  %v3319_v50 = vld [vmem:[#allocation2 + $0x10] sm:$0xff]  ;;  %v4449_v19 = vld [vmem:[#allocation16_spill] sm:$0xff]  ;;  %v4452_v40 = vld [vmem:[#allocation83_spill] sm:$0xff] }
 0x164   :  { %v177_v8 = vadd.f32 %v4448_v12, %v4447_v2  ;;  %v3317_v34 = vmul.f32 %v3314_v52, %v974_v4  ;;  %v975_v35 = vmul.f32 %v3319_v50, %v974_v4  ;;  %v254_v43 = vadd.f32 %v4449_v19, %v176_v44  ;;  %v4450_v17 = vld [vmem:[#allocation72_spill] sm:$0xff]  ;;  %v4453_v2 = vld [vmem:[#allocation75_spill] sm:$0xff] }
 0x165   :  { %v4451_v24 = vrot.slane %v4450_v17, 1  ;;  %v3328_v25 = vadd.f32 %v4452_v40, %v201_v15  ;;  %v4454_v12 = vrot.slane %v4453_v2, 1  ;;  %v3334_v29 = vpop.permute.xlu1 %963  ;;  %v3336_v36 = vpop.permute.xlu0 %961  ;;  %v4456_v51 = vld [vmem:[#allocation84_spill] sm:$0xff]  ;;  %v4460_v15 = vrot.slane %v3031_v53, 1  ;;  %v4461_v2 = vld [vmem:[#allocation17_spill] sm:$0xff] }
 0x166   :  { %4455 = vst [vmem:[#allocation13_spill] sm:$0xff] %v3336_v36  ;;  %v3339_v28 = vadd.f32 %v4456_v51, %v203_v1  ;;  %v4457_v44 = vld [vmem:[#allocation76_spill] sm:$0xff]  ;;  %v1588_v51 = vmul.f32 %v1584_v61, %v3147_v39  ;;  %v1587_v1 = vmul.f32 %v1584_v61, %v3149_v18  ;;  %v983_v53 = vrot.slane %v975_v35, 1 }
 0x167   :  { %v3325_v57 = vadd.f32 %v4451_v24, %v202_v55  ;;  %v3332_v23 = vadd.f32 %v4454_v12, %v204_v49  ;;  %v4458_v19 = vrot.slane %v4457_v44, 1  ;;  %v4459_v55 = vld [vmem:[#allocation85_spill] sm:$0xff]  ;;  %v3350_v40 = vadd.f32 %v4460_v15, %v230_v48  ;;  %1595 = vrot.lane.b32.xlu1 %v1586_v58, %s2404_s2  ;;  %1593 = vrot.lane.b32.xlu0 %v1585_v63, %s2404_s2  ;;  %v3373_v44 = vld [vmem:[#allocation2 + $0x48] sm:$0xff] }
 0x168   :  { %v3346_v24 = vadd.f32 %v4459_v55, %v227_v45  ;;  %v3353_v49 = vadd.f32 %v3160_v13, %v229_v41  ;;  %v253_v45 = vadd.f32 %v4461_v2, %v175_v3  ;;  %v1610_v48 = vstv %s3289_s7  ;;  %v3378_v3 = vld [vmem:[#allocation2 + $0x40] sm:$0xff]  ;;  %v4466_v55 = vld [vmem:[#allocation18_spill] sm:$0xff] }
 0x169   :  { %v3343_v17 = vadd.f32 %v4458_v19, %v228_v62  ;;  %v998_v62 = vstv %s3279_s0  ;;  %v4462_v13 = vrot.slane %v3048_v33, 1  ;;  %v3369_v58 = vpop.permute.xlu1 %1063  ;;  %v3371_v63 = vpop.permute.xlu0 %1061  ;;  %v3376_v61 = vmul.f32 %v3373_v44, %v974_v4 }
 0x16a   :  { %4463 = vst [vmem:[#allocation14_spill] sm:$0xff] %v3369_v58  ;;  %4464 = vst [vmem:[#allocation15_spill] sm:$0xff] %v3371_v63  ;;  %v977_v35 = vmul.f32 %v3378_v3, %v974_v4  ;;  %v1022_v19 = vstv %s3299_s8  ;;  %v256_v15 = vadd.f32 %v4466_v55, %v178_v20  ;;  %v3384_v33 = vmul.f32 %v3314_v52, %v998_v62  ;;  %v4468_v63 = vld [vmem:[#allocation19_spill] sm:$0xff] }
 0x16b   :  { %v3367_v41 = vadd.f32 %v4462_v13, %v254_v43  ;;  %4465 = vst [vmem:[#allocation81_spill] sm:$0xff] %v3376_v61  ;;  %v999_v43 = vmul.f32 %v3319_v50, %v998_v62  ;;  %v3388_v2 = vmul.f32 %v3373_v44, %v998_v62  ;;  %1599 = vrot.lane.b32.xlu1 %v1588_v51, %s2404_s2 }
 0x16c   :  { %1597 = vrot.lane.b32.xlu0 %v1587_v1, %s2404_s2  ;;  %v1612_v13 = vmul.f32 %v1610_v48, %v3115_v11  ;;  %v1611_v12 = vmul.f32 %v1610_v48, %v3118_v46  ;;  %v1001_v4 = vmul.f32 %v3378_v3, %v998_v62  ;;  %v255_v20 = vadd.f32 %v4468_v63, %v177_v8 }
 0x16d   :  { %4467 = vst [vmem:[#allocation11_spill] sm:$0xff] %v3388_v2  ;;  %v326_v55 = vadd.f32 %v3165_v37, %v253_v45  ;;  %v3398_v58 = vmul.f32 %v3314_v52, %v1022_v19  ;;  %v1023_v7 = vmul.f32 %v3319_v50, %v1022_v19  ;;  %v3402_v51 = vpop.permute.xlu1 %1067  ;;  %v986_v1 = vrot.slane %v977_v35, 1  ;;  %v3404_v26 = vpop.permute.xlu0 %1065 }
 0x16e   :  { %4470 = vst [vmem:[#allocation12_spill] sm:$0xff] %v3402_v51  ;;  %4471 = vst [vmem:[#allocation16_spill] sm:$0xff] %v3404_v26  ;;  %v3407_v36 = vmul.f32 %v3373_v44, %v1022_v19  ;;  %v1025_v8 = vmul.f32 %v3378_v3, %v1022_v19  ;;  %v4472_v37 = vrot.slane %v3085_v30, 1  ;;  %v4473_v45 = vrot.slane %v3317_v34, 1 }
 0x16f   :  { %4469 = vst [vmem:[#allocation82_spill] sm:$0xff] %v3398_v58  ;;  %v1007_v51 = vrot.slane %v999_v43, 1  ;;  %1621 = vrot.lane.b32.xlu1 %v1612_v13, %s2405_s12  ;;  %v1614_v35 = vmul.f32 %v1610_v48, %v3147_v39  ;;  %v1613_v26 = vmul.f32 %v1610_v48, %v3149_v18  ;;  %v1010_v30 = vrot.slane %v1001_v4, 1 }
 0x170   :  { %v329_v62 = vadd.f32 %v4472_v37, %v256_v15  ;;  %v3415_v63 = vsel %vm267_vm0, %v983_v53, %v4473_v45  ;;  %1619 = vrot.lane.b32.xlu0 %v1611_v12, %s2405_s12  ;;  %v328_v15 = vadd.f32 %v3170_v5, %v255_v20  ;;  %v1636_v53 = vstv %s3363_s9  ;;  %v4475_v12 = vld [vmem:[#allocation20_spill] sm:$0xff] }
 0x171   :  { %4474 = vst [vmem:[#allocation72_spill] sm:$0xff] %v3415_v63  ;;  %v1031_v45 = vrot.slane %v1023_v7, 1  ;;  %v359_v43 = vadd.f32 %v4475_v12, %v3325_v57  ;;  %v4476_v48 = vrot.slane %v3376_v61, 1  ;;  %v3439_v4 = vpop.permute.xlu1 %1095  ;;  %v3441_v19 = vpop.permute.xlu0 %1093  ;;  %v1034_v20 = vrot.slane %v1025_v8, 1  ;;  %v4479_v7 = vld [vmem:[#allocation21_spill] sm:$0xff]  ;;  %v4481_v57 = vld [vmem:[#allocation23_spill] sm:$0xff] }
 0x172   :  { %4477 = vst [vmem:[#allocation83_spill] sm:$0xff] %v3439_v4  ;;  %4478 = vst [vmem:[#allocation75_spill] sm:$0xff] %v3441_v19  ;;  %v358_v37 = vadd.f32 %v4479_v7, %v3328_v25  ;;  %v361_v63 = vadd.f32 %v4480_v21, %v3332_v23  ;;  %v360_v12 = vadd.f32 %v4481_v57, %v3339_v28  ;;  %v4482_v61 = vrot.slane %v3384_v33, 1  ;;  %v4485_v28 = vld [vmem:[#allocation24_spill] sm:$0xff]  ;;  %v4486_v7 = vld [vmem:[#allocation25_spill] sm:$0xff] }
 0x173   :  { %v3437_v13 = vsel %vm267_vm0, %v986_v1, %v4476_v48  ;;  %1625 = vrot.lane.b32.xlu1 %v1614_v35, %s2405_s12  ;;  %v4483_v8 = vrot.slane %v3388_v2, 1  ;;  %v1638_v25 = vmul.f32 %v1636_v53, %v3115_v11  ;;  %v1637_v21 = vmul.f32 %v1636_v53, %v3118_v46  ;;  %v4491_v5 = vld [vmem:[#allocation28_spill] sm:$0xff] }
 0x174   :  { %v3453_v1 = vsel %vm267_vm0, %v1007_v51, %v4482_v61  ;;  %1623 = vrot.lane.b32.xlu0 %v1613_v26, %s2405_s12  ;;  %v391_v23 = vadd.f32 %v4485_v28, %v3343_v17  ;;  %v390_v61 = vadd.f32 %v4486_v7, %v3346_v24  ;;  %v4487_v51 = vld [vmem:[#allocation26_spill] sm:$0xff]  ;;  %v4488_v26 = vrot.slane %v3398_v58, 1  ;;  %v4492_v4 = vld [vmem:[#allocation32_spill] sm:$0xff] }
 0x175   :  { %v3460_v48 = vsel %vm267_vm0, %v1010_v30, %v4483_v8  ;;  %v393_v35 = vadd.f32 %v4487_v51, %v3350_v40  ;;  %v4490_v30 = vld [vmem:[#allocation27_spill] sm:$0xff]  ;;  %v423_v19 = vadd.f32 %v4491_v5, %v3367_v41  ;;  %v455_v17 = vadd.f32 %v4492_v4, %v359_v43  ;;  %v3480_v28 = vpop.permute.xlu1 %1099  ;;  %v3482_v24 = vpop.permute.xlu0 %1097  ;;  %v4499_v41 = vld [vmem:[#allocation34_spill] sm:$0xff] }
 0x176   :  { %4484 = vst [vmem:[#allocation84_spill] sm:$0xff] %v3460_v48  ;;  %v3473_v57 = vsel %vm267_vm0, %v1031_v45, %v4488_v26  ;;  %v392_v8 = vadd.f32 %v4490_v30, %v3353_v49  ;;  %4493 = vst [vmem:[#allocation85_spill] sm:$0xff] %v3480_v28  ;;  %v4495_v40 = vrot.slane %v3407_v36, 1  ;;  %v4496_v45 = vld [vmem:[#allocation29_spill] sm:$0xff]  ;;  %v4497_v26 = vld [vmem:[#allocation30_spill] sm:$0xff]  ;;  %v457_v5 = vadd.f32 %v4499_v41, %v361_v63 }
 0x177   :  { %4489 = vst [vmem:[#allocation76_spill] sm:$0xff] %v3473_v57  ;;  %4494 = vst [vmem:[#allocation17_spill] sm:$0xff] %v3482_v24  ;;  %v422_v51 = vadd.f32 %v4496_v45, %v326_v55  ;;  %v425_v49 = vadd.f32 %v4497_v26, %v329_v62  ;;  %v4498_v30 = vld [vmem:[#allocation33_spill] sm:$0xff]  ;;  %v4500_v43 = vld [vmem:[#allocation35_spill] sm:$0xff]  ;;  %1647 = vrot.lane.b32.xlu1 %v1638_v25, %s2405_s12  ;;  %v1640_v58 = vmul.f32 %v1636_v53, %v3147_v39 }
 0x178   :  { %v3487_v7 = vsel %vm267_vm0, %v1034_v20, %v4495_v40  ;;  %v454_v57 = vadd.f32 %v4498_v30, %v358_v37  ;;  %v456_v4 = vadd.f32 %v4500_v43, %v360_v12  ;;  %1645 = vrot.lane.b32.xlu0 %v1637_v21, %s2405_s12  ;;  %v1639_v20 = vmul.f32 %v1636_v53, %v3149_v18  ;;  %v4501_v55 = vld [vmem:[#allocation36_spill] sm:$0xff]  ;;  %v4502_v62 = vld [vmem:[#allocation37_spill] sm:$0xff]  ;;  %v4503_v12 = vld [vmem:[#allocation31_spill] sm:$0xff] }
 0x179   :  { %v1662_v40 = vstv %s3423_s10  ;;  %v487_v45 = vadd.f32 %v4501_v55, %v391_v23  ;;  %v486_v26 = vadd.f32 %v4502_v62, %v390_v61  ;;  %v1760_v37 = vstv %s3428_s11  ;;  %v4504_v25 = vld [vmem:[#allocation38_spill] sm:$0xff]  ;;  %v4505_v21 = vld [vmem:[#allocation39_spill] sm:$0xff]  ;;  %v3514_v28 = vpop.permute.xlu1 %1127  ;;  %v3516_v48 = vpop.permute.xlu0 %1125 }
 0x17a   :  { %v1238_v63 = vstv %s3430_s13  ;;  %v424_v30 = vadd.f32 %v4503_v12, %v328_v15  ;;  %v489_v41 = vadd.f32 %v4504_v25, %v393_v35  ;;  %v488_v43 = vadd.f32 %v4505_v21, %v392_v8  ;;  %4507 = vst [vmem:[#allocation18_spill] sm:$0xff] %v3514_v28  ;;  %4508 = vst [vmem:[#allocation19_spill] sm:$0xff] %v3516_v48 }
 0x17b   :  { %v4506_v24 = vrot.slane %v3093_v16, 2  ;;  %v3519_v23 = vadd.f32 %v3176_v9, %v454_v57  ;;  %v4509_v61 = vrot.slane %v3097_v47, 2  ;;  %v1664_v15 = vmul.f32 %v1662_v40, %v3115_v11  ;;  %1651 = vrot.lane.b32.xlu1 %v1640_v58, %s2405_s12 }
 0x17c   :  { %v1663_v35 = vmul.f32 %v1662_v40, %v3118_v46  ;;  %1649 = vrot.lane.b32.xlu0 %v1639_v20, %s2405_s12  ;;  %v1762_v16 = vmul.f32 %v1760_v37, %v3115_v11  ;;  %v3531_v8 = vmul.f32 %v3314_v52, %v1238_v63  ;;  %v1239_v9 = vmul.f32 %v3319_v50, %v1238_v63 }
 0x17d   :  { %v3512_v53 = vadd.f32 %v4506_v24, %v455_v17  ;;  %v3523_v55 = vadd.f32 %v4509_v61, %v457_v5  ;;  %v3535_v57 = vadd.f32 %v3185_v42, %v456_v4  ;;  %v4511_v47 = vrot.slane %v3105_v22, 2  ;;  %v3552_v12 = vpop.permute.xlu1 %1131  ;;  %v3554_v42 = vpop.permute.xlu0 %1129  ;;  %v4514_v4 = vld [vmem:[#allocation40_spill] sm:$0xff] }
 0x17e   :  { %4510 = vst [vmem:[#allocation20_spill] sm:$0xff] %v3531_v8  ;;  %v3542_v24 = vadd.f32 %v3190_v59, %v486_v26  ;;  %v1761_v58 = vmul.f32 %v1760_v37, %v3118_v46  ;;  %v4512_v5 = vrot.slane %v3111_v0, 2  ;;  %v3550_v62 = vadd.f32 %v3195_v10, %v488_v43  ;;  %v4515_v26 = vld [vmem:[#allocation41_spill] sm:$0xff] }
 0x17f   :  { %v3539_v17 = vadd.f32 %v4511_v47, %v487_v45  ;;  %v3557_v22 = vmul.f32 %v3373_v44, %v1238_v63  ;;  %v1241_v59 = vmul.f32 %v3378_v3, %v1238_v63  ;;  %v519_v45 = vadd.f32 %v4514_v4, %v423_v19  ;;  %1673 = vrot.lane.b32.xlu1 %v1664_v15, %s2405_s12  ;;  %v4517_v4 = vld [vmem:[#allocation43_spill] sm:$0xff] }
 0x180   :  { %v3547_v20 = vadd.f32 %v4512_v5, %v489_v41  ;;  %v518_v0 = vadd.f32 %v4515_v26, %v422_v51  ;;  %v1666_v25 = vmul.f32 %v1662_v40, %v3147_v39  ;;  %v1665_v41 = vmul.f32 %v1662_v40, %v3149_v18  ;;  %1671 = vrot.lane.b32.xlu0 %v1663_v35, %s2405_s12  ;;  %v4516_v40 = vld [vmem:[#allocation42_spill] sm:$0xff] }
 0x181   :  { %4513 = vst [vmem:[#allocation21_spill] sm:$0xff] %v3557_v22  ;;  %v1770_v10 = vrot.slane %v1762_v16, 1  ;;  %v1247_v43 = vrot.slane %v1239_v9, 2  ;;  %v1262_v61 = vstv %s3499_s14  ;;  %v1769_v63 = vrot.slane %v1761_v58, 1  ;;  %v3577_v15 = vpop.permute.xlu1 %1159  ;;  %v3579_v35 = vpop.permute.xlu0 %1157 }
 0x182   :  { %v1764_v19 = vmul.f32 %v1760_v37, %v3147_v39  ;;  %v1763_v51 = vmul.f32 %v1760_v37, %v3149_v18  ;;  %v1792_v47 = vstv %s3504_s15  ;;  %v521_v5 = vadd.f32 %v4516_v40, %v425_v49 }
 0x183   :  { %v520_v26 = vadd.f32 %v4517_v4, %v424_v30  ;;  %v1250_v9 = vrot.slane %v1241_v59, 2  ;;  %v4518_v58 = vrot.slane %v3123_v6, 2  ;;  %v3587_v37 = vadd.f32 %v3203_v38, %v518_v0  ;;  %1677 = vrot.lane.b32.xlu1 %v1666_v25, %s2405_s12 }
 0x184   :  { %v3590_v48 = vmul.f32 %v3314_v52, %v1262_v61  ;;  %v1263_v49 = vmul.f32 %v3319_v50, %v1262_v61  ;;  %1675 = vrot.lane.b32.xlu0 %v1665_v41, %s2405_s12  ;;  %v1794_v30 = vmul.f32 %v1792_v47, %v3115_v11  ;;  %v1793_v59 = vmul.f32 %v1792_v47, %v3118_v46 }
 0x185   :  { %v3584_v21 = vadd.f32 %v4518_v58, %v519_v45  ;;  %v4520_v6 = vrot.slane %v3531_v8, 2  ;;  %v1771_v38 = vsel %vm267_vm0, %v1769_v63, %v1770_v10  ;;  %v1773_v0 = vrot.slane %v1764_v19, 1  ;;  %v3615_v16 = vpop.permute.xlu1 %1163 }
 0x186   :  { %4519 = vst [vmem:[#allocation22_spill] sm:$0xff] %v3590_v48  ;;  %v1772_v40 = vrot.slane %v1763_v51, 1  ;;  %v3606_v25 = vmul.f32 %v3373_v44, %v1262_v61  ;;  %v4523_v41 = vrot.slane %v3127_v27, 2  ;;  %v3613_v58 = vadd.f32 %v3208_v54, %v520_v26  ;;  %v4527_v51 = vld [vmem:[#allocation44_spill] sm:$0xff] }
 0x187   :  { %v3600_v45 = vsel %vm532_vm1, %v1247_v43, %v4520_v6  ;;  %v3617_v43 = vpop.permute.xlu0 %1161  ;;  %v4525_v6 = vrot.slane %v3557_v22, 2  ;;  %v1265_v19 = vmul.f32 %v3378_v3, %v1262_v61  ;;  %v3627_v27 = vadd.f32 %v4527_v51, %v3512_v53  ;;  %1777 = vrot.lane.b32.xlu1 %v1770_v10, %s2404_s2 }
 0x188   :  { %4521 = vst [vmem:[#allocation23_spill] sm:$0xff] %v3600_v45  ;;  %4522 = vst [vmem:[#allocation24_spill] sm:$0xff] %v3606_v25  ;;  %v3610_v4 = vadd.f32 %v4523_v41, %v521_v5  ;;  %v1824_v5 = vstv %s3564_s16  ;;  %v1271_v26 = vrot.slane %v1263_v49, 2  ;;  %v4528_v41 = vld [vmem:[#allocation45_spill] sm:$0xff]  ;;  %1775 = vrot.lane.b32.xlu0 %v1771_v38, %s2404_s2  ;;  %v1801_v61 = vrot.slane %v1793_v59, 1 }
 0x189   :  { %4524 = vst [vmem:[#allocation25_spill] sm:$0xff] %v3617_v43  ;;  %v3622_v63 = vsel %vm532_vm1, %v1250_v9, %v4525_v6  ;;  %v3635_v28 = vadd.f32 %v4528_v41, %v3519_v23  ;;  %v1802_v9 = vrot.slane %v1794_v30, 1  ;;  %v1796_v6 = vmul.f32 %v1792_v47, %v3147_v39  ;;  %v4532_v41 = vld [vmem:[#allocation47_spill] sm:$0xff]  ;;  %v4569_v43 = vld [vmem:[#allocation65_spill] sm:$0xff] }
 0x18a   :  { %4526 = vst [vmem:[#allocation26_spill] sm:$0xff] %v3622_v63  ;;  %v1774_v53 = vsel %vm267_vm0, %v1772_v40, %v1773_v0  ;;  %v1795_v51 = vmul.f32 %v1792_v47, %v3149_v18  ;;  %v1286_v54 = vstv %s3573_s17  ;;  %v3644_v63 = vpop.permute.xlu1 %1191  ;;  %v3649_v10 = vmul.f32 %v1824_v5, %v3115_v11  ;;  %v4531_v40 = vld [vmem:[#allocation46_spill] sm:$0xff] }
 0x18b   :  { %4529 = vst [vmem:[#allocation27_spill] sm:$0xff] %v3644_v63  ;;  %v3646_v23 = vpop.permute.xlu0 %1189  ;;  %v1825_v30 = vmul.f32 %v1824_v5, %v3118_v46  ;;  %v1274_v59 = vrot.slane %v1265_v19, 2  ;;  %v3653_v38 = vmul.f32 %v3373_v44, %v1286_v54  ;;  %v626_v47 = vadd.f32 %v4531_v40, %v3523_v55  ;;  %1781 = vrot.lane.b32.xlu1 %v1773_v0, %s2404_s2 }
 0x18c   :  { %4530 = vst [vmem:[#allocation28_spill] sm:$0xff] %v3646_v23  ;;  %v625_v49 = vadd.f32 %v4532_v41, %v3535_v57  ;;  %v4533_v22 = vrot.slane %v3590_v48, 2  ;;  %v1289_v23 = vmul.f32 %v3378_v3, %v1286_v54  ;;  %1779 = vrot.lane.b32.xlu0 %v1774_v53, %s2404_s2  ;;  %v1803_v44 = vsel %vm267_vm0, %v1801_v61, %v1802_v9 }
 0x18d   :  { %v1805_v19 = vrot.slane %v1796_v6, 1  ;;  %v1856_v2 = vstv %s3602_s18  ;;  %v3670_v55 = vmul.f32 %v3314_v52, %v1286_v54  ;;  %v1804_v57 = vrot.slane %v1795_v51, 1 }
 0x18e   :  { %v3662_v63 = vsel %vm532_vm1, %v1271_v26, %v4533_v22  ;;  %v3673_v40 = vmul.f32 %v1824_v5, %v3147_v39  ;;  %v1827_v22 = vmul.f32 %v1824_v5, %v3149_v18  ;;  %v3677_v3 = vmul.f32 %v3319_v50, %v1286_v54  ;;  %v3679_v0 = vpop.permute.xlu1 %1195 }
 0x18f   :  { %4534 = vst [vmem:[#allocation32_spill] sm:$0xff] %v3662_v63  ;;  %4536 = vst [vmem:[#allocation30_spill] sm:$0xff] %v3679_v0  ;;  %v3681_v26 = vpop.permute.xlu0 %1193  ;;  %v1834_v61 = vrot.slane %v3649_v10, 1  ;;  %v1833_v6 = vrot.slane %v1825_v30, 1  ;;  %v4538_v53 = vrot.slane %v3606_v25, 2  ;;  %v3691_v41 = vmul.f32 %v1856_v2, %v3115_v11  ;;  %v4540_v63 = vld [vmem:[#allocation48_spill] sm:$0xff]  ;;  %1809 = vrot.lane.b32.xlu1 %v1802_v9, %s2404_s2 }
 0x190   :  { %4535 = vst [vmem:[#allocation29_spill] sm:$0xff] %v3677_v3  ;;  %4537 = vst [vmem:[#allocation33_spill] sm:$0xff] %v3681_v26  ;;  %v1857_v50 = vmul.f32 %v1856_v2, %v3118_v46  ;;  %v1888_v5 = vstv %s3631_s19  ;;  %v1298_v54 = vrot.slane %v1289_v23, 2  ;;  %v656_v10 = vadd.f32 %v4540_v63, %v3539_v17  ;;  %1807 = vrot.lane.b32.xlu0 %v1803_v44, %s2404_s2  ;;  %v4542_v17 = vld [vmem:[#allocation50_spill] sm:$0xff]  ;;  %v4543_v9 = vld [vmem:[#allocation51_spill] sm:$0xff] }
 0x191   :  { %v3687_v52 = vsel %vm532_vm1, %v1274_v59, %v4538_v53  ;;  %v3702_v30 = vmul.f32 %v1856_v2, %v3147_v39  ;;  %v1859_v59 = vmul.f32 %v1856_v2, %v3149_v18  ;;  %v4541_v53 = vld [vmem:[#allocation49_spill] sm:$0xff]  ;;  %v1837_v23 = vrot.slane %v3673_v40, 1 }
 0x192   :  { %4539 = vst [vmem:[#allocation34_spill] sm:$0xff] %v3687_v52  ;;  %v655_v51 = vadd.f32 %v4541_v53, %v3542_v24  ;;  %v1806_v52 = vsel %vm267_vm0, %v1804_v57, %v1805_v19  ;;  %v1836_v25 = vrot.slane %v1827_v22, 1  ;;  %v658_v63 = vadd.f32 %v4542_v17, %v3547_v20  ;;  %v3715_v48 = vpop.permute.xlu1 %1223 }
 0x193   :  { %v657_v44 = vadd.f32 %v4543_v9, %v3550_v62  ;;  %4544 = vst [vmem:[#allocation35_spill] sm:$0xff] %v3715_v48  ;;  %v3717_v26 = vpop.permute.xlu0 %1221  ;;  %v3720_v2 = vmul.f32 %v1888_v5, %v3115_v11  ;;  %v1889_v24 = vmul.f32 %v1888_v5, %v3118_v46  ;;  %v1835_v57 = vsel %vm267_vm0, %v1833_v6, %v1834_v61  ;;  %v4547_v62 = vld [vmem:[#allocation56_spill] sm:$0xff] }
 0x194   :  { %4545 = vst [vmem:[#allocation36_spill] sm:$0xff] %v3717_v26  ;;  %v1865_v22 = vrot.slane %v1857_v50, 1  ;;  %v4546_v53 = vrot.slane %v3653_v38, 2  ;;  %v720_v17 = vadd.f32 %v4547_v62, %v3627_v27  ;;  %1813 = vrot.lane.b32.xlu1 %v1805_v19, %s2404_s2  ;;  %1811 = vrot.lane.b32.xlu0 %v1806_v52, %s2404_s2  ;;  %v1868_v26 = vrot.slane %v1859_v59, 1  ;;  %v4548_v50 = vld [vmem:[#allocation52_spill] sm:$0xff]  ;;  %v4550_v19 = vld [vmem:[#allocation54_spill] sm:$0xff] }
 0x195   :  { %v3736_v6 = vmul.f32 %v1888_v5, %v3147_v39  ;;  %v688_v40 = vadd.f32 %v4548_v50, %v3584_v21  ;;  %v1838_v48 = vsel %vm267_vm0, %v1836_v25, %v1837_v23  ;;  %v1891_v27 = vmul.f32 %v1888_v5, %v3149_v18  ;;  %v4551_v62 = vld [vmem:[#allocation57_spill] sm:$0xff]  ;;  %v4553_v25 = vld [vmem:[#allocation58_spill] sm:$0xff]  ;;  %v4554_v5 = vld [vmem:[#allocation59_spill] sm:$0xff] }
 0x196   :  { %v3728_v20 = vsel %vm532_vm1, %v1298_v54, %v4546_v53  ;;  %v4549_v54 = vld [vmem:[#allocation53_spill] sm:$0xff]  ;;  %v690_v52 = vadd.f32 %v4550_v19, %v3610_v4  ;;  %v719_v9 = vadd.f32 %v4551_v62, %v3635_v28  ;;  %v3748_v59 = vpop.permute.xlu1 %1227  ;;  %v4332_v21 = vrot.slane %v3720_v2, 1 }
 0x197   :  { %v687_v53 = vadd.f32 %v4549_v54, %v3587_v37  ;;  %v3750_v0 = vpop.permute.xlu0 %1225  ;;  %v1897_v50 = vrot.slane %v1889_v24, 1  ;;  %v4552_v37 = vld [vmem:[#allocation55_spill] sm:$0xff]  ;;  %v722_v3 = vadd.f32 %v4553_v25, %v626_v47  ;;  %v721_v45 = vadd.f32 %v4554_v5, %v625_v49  ;;  %v4557_v47 = vld [vmem:[#allocation66_spill] sm:$0xff] }
 0x198   :  { %v689_v54 = vadd.f32 %v4552_v37, %v3613_v58  ;;  %v1920_v8 = vstv %s3695_s20  ;;  %v794_v4 = vadd.f32 %v3211_v32, %v720_v17  ;;  %1841 = vrot.lane.b32.xlu1 %v1834_v61, %s2404_s2  ;;  %1839 = vrot.lane.b32.xlu0 %v1835_v57, %s2404_s2  ;;  %v4555_v28 = vrot.slane %v3691_v41, 1  ;;  %v4558_v49 = vld [vmem:[#allocation67_spill] sm:$0xff] }
 0x199   :  { %v4556_v24 = vrot.slane %v3702_v30, 1  ;;  %v4334_v58 = vrot.slane %v3736_v6, 1  ;;  %v786_v37 = vadd.f32 %v4557_v47, %v690_v52  ;;  %v1900_v5 = vrot.slane %v1891_v27, 1 }
 0x19a   :  { %v1867_v19 = vsel %vm267_vm0, %v1865_v22, %v4555_v28  ;;  %v785_v25 = vadd.f32 %v4558_v49, %v689_v54  ;;  %v3771_v32 = vstv %s3709_s21  ;;  %v793_v61 = vadd.f32 %v3223_v60, %v719_v9  ;;  %v3774_v57 = vpop.permute.xlu1 %1327  ;;  %v4561_v54 = vld [vmem:[#allocation95_spill] sm:$0xff]  ;;  %v4563_v49 = vld [vmem:[#allocation61_spill] sm:$0xff] }
 0x19b   :  { %v1870_v62 = vsel %vm267_vm0, %v1868_v26, %v4556_v24  ;;  %4559 = vst [vmem:[#allocation37_spill] sm:$0xff] %v3774_v57  ;;  %v3776_v17 = vpop.permute.xlu0 %1325  ;;  %v3781_v22 = vsel %vm267_vm0, %v1897_v50, %v4332_v21  ;;  %v3784_v26 = vmul.f32 %v1920_v8, %v3115_v11  ;;  %v1921_v52 = vmul.f32 %v1920_v8, %v3118_v46  ;;  %v4562_v24 = vld [vmem:[#allocation60_spill] sm:$0xff] }
 0x19c   :  { %4560 = vst [vmem:[#allocation31_spill] sm:$0xff] %v3776_v17  ;;  %v796_v27 = vadd.f32 %v4561_v54, %v722_v3  ;;  %v795_v28 = vadd.f32 %v3229_v31, %v721_v45  ;;  %v3790_v60 = vmul.f32 %v1920_v8, %v3147_v39  ;;  %v1923_v9 = vmul.f32 %v1920_v8, %v3149_v18 }
 0x19d   :  { %v752_v47 = vadd.f32 %v4562_v24, %v656_v10  ;;  %1845 = vrot.lane.b32.xlu1 %v1837_v23, %s2404_s2  ;;  %1843 = vrot.lane.b32.xlu0 %v1838_v48, %s2404_s2  ;;  %v3798_v50 = vmul.f32 %v3771_v32, %v3115_v11  ;;  %v2025_v3 = vmul.f32 %v3771_v32, %v3118_v46  ;;  %v4564_v10 = vld [vmem:[#allocation62_spill] sm:$0xff]  ;;  %v4565_v23 = vld [vmem:[#allocation63_spill] sm:$0xff]  ;;  %v1930_v46 = vrot.slane %v3784_v26, 1  ;;  %v4625_v26 = vld [vmem:[#allocation21_spill] sm:$0xff] }
 0x19e   :  { %v751_v31 = vadd.f32 %v4563_v49, %v655_v51  ;;  %v816_v45 = vadd.f32 %v3273_v14, %v786_v37  ;;  %v815_v54 = vadd.f32 %v3286_v56, %v785_v25  ;;  %v3808_v8 = vsel %vm267_vm0, %v1900_v5, %v4334_v58  ;;  %v3812_v21 = vpop.permute.xlu1 %1331  ;;  %v4566_v49 = vld [vmem:[#allocation86_spill] sm:$0xff]  ;;  %v4567_v37 = vld [vmem:[#allocation87_spill] sm:$0xff]  ;;  %v4568_v5 = vld [vmem:[#allocation64_spill] sm:$0xff] }
 0x19f   :  { %v754_v48 = vadd.f32 %v4564_v10, %v658_v63  ;;  %v753_v24 = vadd.f32 %v4565_v23, %v657_v44  ;;  %v3814_v17 = vpop.permute.xlu0 %1329  ;;  %v1929_v51 = vrot.slane %v1921_v52, 1  ;;  %v1932_v57 = vrot.slane %v1923_v9, 1  ;;  %v4572_v23 = vld [vmem:[#allocation69_spill] sm:$0xff] }
 0x1a0   :  { %v894_v14 = vadd.f32 %v4566_v49, %v816_v45  ;;  %v893_v56 = vadd.f32 %v4567_v37, %v815_v54  ;;  %v784_v58 = vadd.f32 %v4568_v5, %v688_v40  ;;  %v783_v63 = vadd.f32 %v4569_v43, %v687_v53  ;;  %v4571_v45 = vld [vmem:[#allocation68_spill] sm:$0xff]  ;;  %v4573_v40 = vld [vmem:[#allocation13_spill] sm:$0xff] }
 0x1a1   :  { %v4570_v44 = vrot.slane %v3691_v41, 1  ;;  %1871 = vrot.lane.b32.xlu0 %v1867_v19, %s2405_s12  ;;  %v2033_v52 = vrot.slane %v2025_v3, 2  ;;  %v840_v54 = vadd.f32 %v4571_v45, %v794_v4  ;;  %v839_v49 = vadd.f32 %v4572_v23, %v793_v61  ;;  %v4574_v43 = vld [vmem:[#allocation96_spill] sm:$0xff]  ;;  %v4575_v5 = vld [vmem:[#allocation97_spill] sm:$0xff]  ;;  %v4577_v61 = vld [vmem:[#allocation99_spill] sm:$0xff] }
 0x1a2   :  { %v972_v9 = vadd.f32 %v3334_v29, %v894_v14  ;;  %v971_v37 = vadd.f32 %v4573_v40, %v893_v56  ;;  %v804_v53 = vadd.f32 %v4574_v43, %v752_v47  ;;  %v803_v41 = vadd.f32 %v4575_v5, %v751_v31  ;;  %v3836_v19 = vpop.permute.xlu1 %1359  ;;  %v4578_v29 = vld [vmem:[#allocation89_spill] sm:$0xff]  ;;  %v4579_v56 = vld [vmem:[#allocation90_spill] sm:$0xff]  ;;  %v4582_v40 = vld [vmem:[#allocation71_spill] sm:$0xff] }
 0x1a3   :  { %1873 = vrot.lane.b32.xlu1 %v4570_v44, %s2405_s12  ;;  %v4576_v44 = vld [vmem:[#allocation98_spill] sm:$0xff]  ;;  %v3838_v10 = vpop.permute.xlu0 %1357  ;;  %v3843_v4 = vsel %vm267_vm0, %v1929_v51, %v1930_v46  ;;  %v805_v3 = vadd.f32 %v4577_v61, %v753_v24  ;;  %v918_v14 = vadd.f32 %v4578_v29, %v840_v54  ;;  %v917_v45 = vadd.f32 %v4579_v56, %v839_v49  ;;  %v4585_v54 = vld [vmem:[#allocation103_spill] sm:$0xff] }
 0x1a4   :  { %v806_v25 = vadd.f32 %v4576_v44, %v754_v48  ;;  %v4580_v47 = vrot.slane %v3790_v60, 1  ;;  %v4581_v48 = vld [vmem:[#allocation70_spill] sm:$0xff]  ;;  %v841_v43 = vadd.f32 %v4582_v40, %v795_v28  ;;  %v4584_v51 = vrot.slane %v3702_v30, 1  ;;  %v4589_v56 = vld [vmem:[#allocation91_spill] sm:$0xff] }
 0x1a5   :  { %v842_v23 = vadd.f32 %v4581_v48, %v796_v27  ;;  %v4583_v5 = vld [vmem:[#allocation102_spill] sm:$0xff]  ;;  %1875 = vrot.lane.b32.xlu0 %v1870_v62, %s2405_s12  ;;  %v1296_v24 = vrot.slane %v3670_v55, 2  ;;  %v813_v49 = vadd.f32 %v4585_v54, %v783_v63  ;;  %v4586_v61 = vrot.slane %v3407_v36, 1  ;;  %v4590_v62 = vld [vmem:[#allocation92_spill] sm:$0xff] }
 0x1a6   :  { %v3851_v31 = vsel %vm267_vm0, %v1932_v57, %v4580_v47  ;;  %v814_v44 = vadd.f32 %v4583_v5, %v784_v58  ;;  %v1043_v29 = vadd.f32 %v3487_v7, %v971_v37  ;;  %v4587_v27 = vrot.slane %v3798_v50, 2  ;;  %v4588_v58 = vld [vmem:[#allocation73_spill] sm:$0xff]  ;;  %v3873_v40 = vpop.permute.xlu1 %1363 }
 0x1a7   :  { %1877 = vrot.lane.b32.xlu1 %v4584_v51, %s2405_s12  ;;  %v1044_v57 = vadd.f32 %v4586_v61, %v972_v9  ;;  %v866_v30 = vadd.f32 %v4588_v58, %v804_v53  ;;  %v920_v47 = vadd.f32 %v4589_v56, %v842_v23  ;;  %v919_v48 = vadd.f32 %v4590_v62, %v841_v43  ;;  %v3875_v63 = vpop.permute.xlu0 %1361  ;;  %v4593_v23 = vld [vmem:[#allocation74_spill] sm:$0xff]  ;;  %v4594_v43 = vld [vmem:[#allocation77_spill] sm:$0xff] }
 0x1a8   :  { %v3868_v28 = vsel %vm532_vm1, %v2033_v52, %v4587_v27  ;;  %v3879_v36 = vmul.f32 %v3771_v32, %v3147_v39  ;;  %v4591_v7 = vrot.slane %v3317_v34, 1  ;;  %v4592_v52 = vld [vmem:[#allocation72_spill] sm:$0xff]  ;;  %v1139_v53 = vadd.f32 %v3554_v42, %v1043_v29  ;;  %v4595_v61 = vld [vmem:[#allocation78_spill] sm:$0xff]  ;;  %v4601_v62 = vld [vmem:[#allocation81_spill] sm:$0xff] }
 0x1a9   :  { %v993_v37 = vadd.f32 %v4592_v52, %v917_v45  ;;  %v1140_v5 = vadd.f32 %v3552_v12, %v1044_v57  ;;  %v865_v51 = vadd.f32 %v4593_v23, %v803_v41  ;;  %v868_v54 = vadd.f32 %v4594_v43, %v806_v25  ;;  %1903 = vrot.lane.b32.xlu0 %v3781_v22, %s2405_s12  ;;  %v4598_v12 = vld [vmem:[#allocation15_spill] sm:$0xff]  ;;  %v4599_v25 = vld [vmem:[#allocation93_spill] sm:$0xff] }
 0x1aa   :  { %v994_v9 = vadd.f32 %v4591_v7, %v918_v14  ;;  %v867_v27 = vadd.f32 %v4595_v61, %v805_v3  ;;  %v4596_v58 = vrot.slane %v3720_v2, 1  ;;  %v3895_v34 = vstv %s3827_s22  ;;  %v4597_v14 = vld [vmem:[#allocation14_spill] sm:$0xff]  ;;  %v3906_v22 = vpop.permute.xlu1 %1391 }
 0x1ab   :  { %v1073_v57 = vadd.f32 %v4598_v12, %v993_v37  ;;  %v1236_v42 = vadd.f32 %v3748_v59, %v1140_v5  ;;  %v1235_v41 = vadd.f32 %v3750_v0, %v1139_v53  ;;  %v944_v29 = vadd.f32 %v4599_v25, %v866_v30  ;;  %v4600_v3 = vld [vmem:[#allocation94_spill] sm:$0xff]  ;;  %v3908_v23 = vpop.permute.xlu0 %1389  ;;  %v4604_v30 = vld [vmem:[#allocation101_spill] sm:$0xff]  ;;  %v4605_v53 = vld [vmem:[#allocation12_spill] sm:$0xff] }
 0x1ac   :  { %1905 = vrot.lane.b32.xlu1 %v4596_v58, %s2405_s12  ;;  %v1074_v45 = vadd.f32 %v4597_v14, %v994_v9  ;;  %v943_v56 = vadd.f32 %v4600_v3, %v865_v51  ;;  %v4602_v2 = vrot.slane %v4601_v62, 1  ;;  %v995_v52 = vadd.f32 %v3437_v13, %v919_v48  ;;  %v4603_v9 = vld [vmem:[#allocation100_spill] sm:$0xff]  ;;  %v4608_v48 = vld [vmem:[#allocation79_spill] sm:$0xff]  ;;  %v4611_v12 = vld [vmem:[#allocation25_spill] sm:$0xff] }
 0x1ad   :  { %v946_v43 = vadd.f32 %v4603_v9, %v868_v54  ;;  %v1169_v59 = vadd.f32 %v3579_v35, %v1073_v57  ;;  %v2027_v0 = vmul.f32 %v3771_v32, %v3149_v18  ;;  %v945_v5 = vadd.f32 %v4604_v30, %v867_v27  ;;  %1907 = vrot.lane.b32.xlu0 %v3808_v8, %s2405_s12  ;;  %v4612_v3 = vld [vmem:[#allocation20_spill] sm:$0xff]  ;;  %v4614_v62 = vld [vmem:[#allocation23_spill] sm:$0xff] }
 0x1ae   :  { %v996_v7 = vadd.f32 %v4602_v2, %v920_v47  ;;  %v1170_v37 = vadd.f32 %v3577_v15, %v1074_v45  ;;  %v4606_v47 = vld [vmem:[#allocation16_spill] sm:$0xff]  ;;  %v4607_v13 = vrot.slane %v3736_v6, 1  ;;  %v2037_v15 = vrot.slane %v3879_v36, 2  ;;  %v1396_v25 = vpop.permute.xlu1 %1395  ;;  %v4619_v9 = vld [vmem:[#allocation83_spill] sm:$0xff] }
 0x1af   :  { %v1075_v61 = vadd.f32 %v4606_v47, %v995_v52  ;;  %v892_v35 = vadd.f32 %v4608_v48, %v814_v44  ;;  %v4609_v54 = vrot.slane %v3653_v38, 2  ;;  %v1307_v27 = vadd.f32 %v3728_v20, %v1235_v41  ;;  %v1394_v44 = vpop.permute.xlu0 %1393  ;;  %v4615_v2 = vld [vmem:[#allocation80_spill] sm:$0xff] }
 0x1b0   :  { %v1076_v51 = vadd.f32 %v4605_v53, %v996_v7  ;;  %1909 = vrot.lane.b32.xlu1 %v4607_v13, %s2405_s12  ;;  %v3930_v58 = vmul.f32 %v3895_v34, %v3115_v11  ;;  %v4610_v14 = vrot.slane %v3384_v33, 1  ;;  %v1017_v45 = vadd.f32 %v3453_v1, %v943_v56  ;;  %v4618_v56 = vld [vmem:[#allocation84_spill] sm:$0xff] }
 0x1b1   :  { %v1308_v32 = vadd.f32 %v4609_v54, %v1236_v42  ;;  %v1171_v57 = vadd.f32 %v4611_v12, %v1075_v61  ;;  %v4613_v38 = vrot.slane %v4612_v3, 2  ;;  %v1257_v20 = vadd.f32 %v4614_v62, %v1169_v59  ;;  %1935 = vrot.lane.b32.xlu0 %v3843_v4, %s2405_s12  ;;  %v4620_v59 = vld [vmem:[#allocation75_spill] sm:$0xff]  ;;  %v4623_v47 = vld [vmem:[#allocation104_spill] sm:$0xff]  ;;  %v4624_v61 = vld [vmem:[#allocation105_spill] sm:$0xff] }
 0x1b2   :  { %v1018_v6 = vadd.f32 %v4610_v14, %v944_v29  ;;  %v1172_v8 = vadd.f32 %v3615_v16, %v1076_v51  ;;  %v3942_v11 = vadd.f32 %v1394_v44, %v1307_v27  ;;  %v891_v33 = vadd.f32 %v4615_v2, %v813_v49  ;;  %v4616_v29 = vld [vmem:[#allocation11_spill] sm:$0xff]  ;;  %v4621_v49 = vld [vmem:[#allocation37_spill] sm:$0xff]  ;;  %v4627_v54 = vld [vmem:[#allocation26_spill] sm:$0xff] }
 0x1b3   :  { %v1258_v42 = vadd.f32 %v4613_v38, %v1170_v37  ;;  %v3940_v41 = vadd.f32 %v1396_v25, %v1308_v32  ;;  %v4617_v7 = vrot.slane %v4616_v29, 1  ;;  %v1019_v16 = vadd.f32 %v4618_v56, %v945_v5  ;;  %v4622_v51 = vld [vmem:[#allocation31_spill] sm:$0xff]  ;;  %v1422_v32 = vpop.permute.xlu0 %1421  ;;  %v4630_v44 = vld [vmem:[#allocation85_spill] sm:$0xff] }
 0x1b4   :  { %1937 = vrot.lane.b32.xlu1 %v1930_v46, %s2405_s12  ;;  %v2036_v52 = vrot.slane %v2027_v0, 2  ;;  %v1106_v37 = vadd.f32 %v4619_v9, %v1018_v6  ;;  %v1105_v30 = vadd.f32 %v4620_v59, %v1017_v45  ;;  %v970_v5 = vadd.f32 %v4623_v47, %v892_v35  ;;  %v1424_v0 = vpop.permute.xlu1 %1423  ;;  %v4628_v27 = vld [vmem:[#allocation27_spill] sm:$0xff]  ;;  %v4629_v6 = vld [vmem:[#allocation28_spill] sm:$0xff]  ;;  %v4631_v35 = vld [vmem:[#allocation17_spill] sm:$0xff] }
 0x1b5   :  { %v1020_v1 = vadd.f32 %v4617_v7, %v946_v43  ;;  %v1338_v53 = vadd.f32 %v4621_v49, %v1258_v42  ;;  %v1337_v43 = vadd.f32 %v4622_v51, %v1257_v20  ;;  %v969_v13 = vadd.f32 %v4624_v61, %v891_v33  ;;  %v4632_v42 = vld [vmem:[#allocation29_spill] sm:$0xff]  ;;  %1939 = vrot.lane.b32.xlu0 %v3851_v31, %s2405_s12  ;;  %v4638_v31 = vld [vmem:[#allocation30_spill] sm:$0xff] }
 0x1b6   :  { %v4626_v46 = vrot.slane %v4625_v26, 2  ;;  %v1259_v4 = vadd.f32 %v4627_v54, %v1171_v57  ;;  %v1202_v14 = vadd.f32 %v4628_v27, %v1106_v37  ;;  %v1201_v12 = vadd.f32 %v4629_v6, %v1105_v30  ;;  %v4634_v57 = vld [vmem:[#allocation88_spill] sm:$0xff]  ;;  %v4639_v59 = vld [vmem:[#allocation33_spill] sm:$0xff]  ;;  %v4648_v6 = vld [vmem:[#allocation34_spill] sm:$0xff] }
 0x1b7   :  { %v3966_v45 = vadd.f32 %v1424_v0, %v1338_v53  ;;  %v3968_v25 = vadd.f32 %v1422_v32, %v1337_v43  ;;  %v1108_v3 = vadd.f32 %v4630_v44, %v1020_v1  ;;  %v1107_v38 = vadd.f32 %v4631_v35, %v1019_v16  ;;  %v4635_v1 = vld [vmem:[#allocation82_spill] sm:$0xff]  ;;  %v4637_v16 = vld [vmem:[#allocation76_spill] sm:$0xff] }
 0x1b8   :  { %v1260_v48 = vadd.f32 %v4626_v46, %v1172_v8  ;;  %v1295_v62 = vrot.slane %v4632_v42, 2  ;;  %v4633_v8 = vrot.slane %v3790_v60, 1  ;;  %v2057_v20 = vmul.f32 %v3895_v34, %v4634_v57  ;;  %v1428_v49 = vpop.permute.xlu1 %1427  ;;  %v4640_v53 = vld [vmem:[#allocation22_spill] sm:$0xff]  ;;  %v4642_v43 = vld [vmem:[#allocation32_spill] sm:$0xff] }
 0x1b9   :  { %v1339_v33 = vadd.f32 %v3814_v17, %v1259_v4  ;;  %v2038_v29 = vsel %vm532_vm1, %v2036_v52, %v2037_v15  ;;  %v2066_v7 = vrot.slane %v3930_v58, 2  ;;  %v4636_v56 = vrot.slane %v4635_v1, 1  ;;  %2039 = vrot.lane.b32.xlu0 %v3868_v28, %s2404_s2  ;;  %v4645_v4 = vld [vmem:[#allocation19_spill] sm:$0xff]  ;;  %v4646_v27 = vld [vmem:[#allocation24_spill] sm:$0xff] }
 0x1ba   :  { %1941 = vrot.lane.b32.xlu1 %v4633_v8, %s2405_s12  ;;  %v1340_v2 = vadd.f32 %v3812_v21, %v1260_v48  ;;  %v1041_v9 = vadd.f32 %v4637_v16, %v969_v13  ;;  %v1204_v37 = vadd.f32 %v4638_v31, %v1108_v3  ;;  %v1203_v30 = vadd.f32 %v4639_v59, %v1107_v38  ;;  %v1426_v21 = vpop.permute.xlu0 %1425  ;;  %v4644_v48 = vld [vmem:[#allocation18_spill] sm:$0xff]  ;;  %v4650_v3 = vld [vmem:[#allocation36_spill] sm:$0xff] }
 0x1bb   :  { %v1042_v60 = vadd.f32 %v4636_v56, %v970_v5  ;;  %v4641_v17 = vrot.slane %v4640_v53, 2  ;;  %v1281_v47 = vadd.f32 %v4642_v43, %v1201_v12  ;;  %v3996_v58 = vadd.f32 %v1426_v21, %v1339_v33  ;;  %v4032_v57 = vld [vmem:[#allocation2 + $0x28] sm:$0xff]  ;;  %v4038_v56 = vld [vmem:[#allocation2 + $0x20] sm:$0xff]  ;;  %v4052_v31 = vld [vmem:[#allocation2 + $0x58] sm:$0xff] }
 0x1bc   :  { %v3994_v52 = vadd.f32 %v1428_v49, %v1340_v2  ;;  %v4643_v5 = vrot.slane %v3798_v50, 2  ;;  %v2065_v61 = vrot.slane %v2057_v20, 2  ;;  %v2060_v13 = vmul.f32 %v3895_v34, %v3147_v39  ;;  %v1456_v39 = vpop.permute.xlu1 %1455 }
 0x1bd   :  { %v1282_v51 = vadd.f32 %v4641_v17, %v1202_v14  ;;  %v2059_v26 = vmul.f32 %v3895_v34, %v3149_v18  ;;  %v2088_v46 = vstv %s3953_s23  ;;  %v1138_v54 = vadd.f32 %v4644_v48, %v1042_v60  ;;  %v4649_v18 = vld [vmem:[#allocation35_spill] sm:$0xff]  ;;  %2043 = vrot.lane.b32.xlu0 %v2038_v29, %s2404_s2 }
 0x1be   :  { %2041 = vrot.lane.b32.xlu1 %v4643_v5, %s2404_s2  ;;  %v1137_v0 = vadd.f32 %v4645_v4, %v1041_v9  ;;  %v1369_v50 = vadd.f32 %v3838_v10, %v1281_v47  ;;  %v4647_v28 = vrot.slane %v4646_v27, 2  ;;  %v1283_v12 = vadd.f32 %v4648_v6, %v1203_v30  ;;  %v1454_v44 = vpop.permute.xlu0 %1453 }
 0x1bf   :  { %v1370_v32 = vadd.f32 %v3836_v19, %v1282_v51  ;;  %v1234_v34 = vadd.f32 %v4649_v18, %v1138_v54  ;;  %v1297_v10 = vsel %vm532_vm1, %v1295_v62, %v1296_v24  ;;  %v2069_v42 = vrot.slane %v2060_v13, 2 }
 0x1c0   :  { %v1284_v14 = vadd.f32 %v4647_v28, %v1204_v37  ;;  %v1233_v35 = vadd.f32 %v4650_v3, %v1137_v0  ;;  %v4023_v19 = vadd.f32 %v1454_v44, %v1369_v50  ;;  %v2068_v8 = vrot.slane %v2059_v26, 2  ;;  %v1460_v36 = vpop.permute.xlu1 %1459 }
 0x1c1   :  { %v4021_v38 = vadd.f32 %v1456_v39, %v1370_v32  ;;  %v2090_v20 = vmul.f32 %v4032_v57, %v2088_v46  ;;  %v1371_v33 = vadd.f32 %v3875_v63, %v1283_v12  ;;  %v2067_v1 = vsel %vm532_vm1, %v2065_v61, %v2066_v7 }
 0x1c2   :  { %2045 = vrot.lane.b32.xlu1 %v2037_v15, %s2404_s2  ;;  %v1372_v2 = vadd.f32 %v3873_v40, %v1284_v14  ;;  %v2089_v62 = vmul.f32 %v4038_v56, %v2088_v46  ;;  %v1458_v15 = vpop.permute.xlu0 %1457  ;;  %v1306_v29 = vadd.f32 %v1296_v24, %v1234_v34  ;;  %v1305_v60 = vadd.f32 %v1297_v10, %v1233_v35  ;;  %v4055_v24 = vld [vmem:[#allocation2 + $0x50] sm:$0xff] }
 0x1c3   :  { %v4045_v9 = vadd.f32 %v1458_v15, %v1371_v33  ;;  %2071 = vrot.lane.b32.xlu0 %v2067_v1, %s2404_s2  ;;  %v2070_v40 = vsel %vm532_vm1, %v2068_v8, %v2069_v42  ;;  %v2098_v63 = vrot.slane %v2090_v20, 2  ;;  %v2092_v55 = vmul.f32 %v4052_v31, %v2088_v46 }
 0x1c4   :  { %v4043_v16 = vadd.f32 %v1460_v36, %v1372_v2  ;;  %v2091_v37 = vmul.f32 %v4055_v24, %v2088_v46  ;;  %v1402_v59 = vadd.f32 %v3906_v22, %v1306_v29  ;;  %v1401_v30 = vadd.f32 %v3908_v23, %v1305_v60 }
 0x1c5   :  { %v2097_v49 = vrot.slane %v2089_v62, 2  ;;  %v2120_v21 = vstv %s4012_s24  ;;  %v1502_v17 = vstv %s4017_s1  ;;  %v2101_v47 = vrot.slane %v2092_v55, 2 }
 0x1c6   :  { %2073 = vrot.lane.b32.xlu1 %v2066_v7, %s2404_s2  ;;  %v1488_v7 = vpop.permute.xlu1 %1487  ;;  %v1486_v53 = vpop.permute.xlu0 %1485  ;;  %v2100_v22 = vrot.slane %v2091_v37, 2  ;;  %v2122_v23 = vmul.f32 %v4032_v57, %v2120_v21  ;;  %v1504_v61 = vmul.f32 %v4032_v57, %v1502_v17  ;;  %v1503_v13 = vmul.f32 %v4038_v56, %v1502_v17 }
 0x1c7   :  { %v4064_v51 = vadd.f32 %v1488_v7, %v1402_v59  ;;  %v4066_v43 = vadd.f32 %v1486_v53, %v1401_v30  ;;  %2075 = vrot.lane.b32.xlu0 %v2070_v40, %s2404_s2  ;;  %v2099_v5 = vsel %vm532_vm1, %v2097_v49, %v2098_v63  ;;  %v2121_v26 = vmul.f32 %v4038_v56, %v2120_v21 }
 0x1c8   :  { %v1506_v54 = vmul.f32 %v4052_v31, %v1502_v17  ;;  %v1505_v32 = vmul.f32 %v4055_v24, %v1502_v17  ;;  %v1512_v50 = vstv %s4047_s25  ;;  %v2102_v27 = vsel %vm532_vm1, %v2100_v22, %v2101_v47 }
 0x1c9   :  { %v2130_v28 = vrot.slane %v2122_v23, 2  ;;  %v2124_v14 = vmul.f32 %v4052_v31, %v2120_v21  ;;  %v1508_v6 = vadd.f32 %v1504_v61, %v3966_v45  ;;  %v2129_v12 = vrot.slane %v2121_v26, 2 }
 0x1ca   :  { %2077 = vrot.lane.b32.xlu1 %v2069_v42, %s2404_s2  ;;  %v1492_v46 = vpop.permute.xlu1 %1491  ;;  %v1490_v48 = vpop.permute.xlu0 %1489  ;;  %v2152_v39 = vstv %s4061_s26  ;;  %v1514_v35 = vmul.f32 %v4032_v57, %v1512_v50  ;;  %v1513_v45 = vmul.f32 %v4038_v56, %v1512_v50  ;;  %v1510_v8 = vadd.f32 %v1506_v54, %v3994_v52 }
 0x1cb   :  { %v4077_v4 = vadd.f32 %v1492_v46, %v3940_v41  ;;  %v4080_v0 = vadd.f32 %v1490_v48, %v3942_v11  ;;  %2103 = vrot.lane.b32.xlu0 %v2099_v5, %s2404_s2  ;;  %v2123_v41 = vmul.f32 %v4055_v24, %v2120_v21  ;;  %v1507_v11 = vadd.f32 %v1503_v13, %v3968_v25 }
 0x1cc   :  { %v2133_v25 = vrot.slane %v2124_v14, 2  ;;  %v2154_v42 = vmul.f32 %v4032_v57, %v2152_v39  ;;  %v1509_v20 = vadd.f32 %v1505_v32, %v3996_v58  ;;  %v2131_v2 = vsel %vm532_vm1, %v2129_v12, %v2130_v28 }
 0x1cd   :  { %v2132_v10 = vrot.slane %v2123_v41, 2  ;;  %v2153_v33 = vmul.f32 %v4038_v56, %v2152_v39  ;;  %v1516_v36 = vmul.f32 %v4052_v31, %v1512_v50  ;;  %v1515_v60 = vmul.f32 %v4055_v24, %v1512_v50 }
 0x1ce   :  { %2105 = vrot.lane.b32.xlu1 %v2098_v63, %s2404_s2  ;;  %v1544_v44 = vpop.permute.xlu1 %1543  ;;  %v1542_v18 = vpop.permute.xlu0 %1541  ;;  %v1522_v40 = vstv %s4084_s27  ;;  %v2162_v58 = vrot.slane %v2154_v42, 2  ;;  %v2156_v63 = vmul.f32 %v4052_v31, %v2152_v39  ;;  %v2155_v55 = vmul.f32 %v4055_v24, %v2152_v39 }
 0x1cf   :  { %v4096_v34 = vadd.f32 %v1544_v44, %v1508_v6  ;;  %v4098_v3 = vadd.f32 %v1542_v18, %v1507_v11  ;;  %2107 = vrot.lane.b32.xlu0 %v2102_v27, %s2404_s2  ;;  %v2134_v52 = vsel %vm532_vm1, %v2132_v10, %v2133_v25  ;;  %v1518_v37 = vadd.f32 %v1514_v35, %v4021_v38 }
 0x1d0   :  { %v1517_v59 = vadd.f32 %v1513_v45, %v4023_v19  ;;  %v2161_v30 = vrot.slane %v2153_v33, 2  ;;  %v2184_v49 = vstv %s4094_s28  ;;  %v2165_v22 = vrot.slane %v2156_v63, 2 }
 0x1d1   :  { %v2164_v23 = vrot.slane %v2155_v55, 2  ;;  %v2186_v5 = vmul.f32 %v4032_v57, %v2184_v49  ;;  %v2185_v38 = vmul.f32 %v4038_v56, %v2184_v49  ;;  %v1520_v19 = vadd.f32 %v1516_v36, %v4043_v16 }
 0x1d2   :  { %2109 = vrot.lane.b32.xlu1 %v2101_v47, %s2404_s2  ;;  %v1548_v1 = vpop.permute.xlu1 %1547  ;;  %v1546_v62 = vpop.permute.xlu0 %1545  ;;  %v1524_v47 = vmul.f32 %v4032_v57, %v1522_v40  ;;  %v1519_v61 = vadd.f32 %v1515_v60, %v4045_v9  ;;  %v2163_v13 = vsel %vm532_vm1, %v2161_v30, %v2162_v58  ;;  %v1523_v26 = vmul.f32 %v4038_v56, %v1522_v40  ;;  %s2302_s2 = sld [smem:[#allocation5 + $0x15]] }
 0x1d3   :  { %v4110_v15 = vadd.f32 %v1548_v1, %v1510_v8  ;;  %v4112_v29 = vadd.f32 %v1546_v62, %v1509_v20  ;;  %2135 = vrot.lane.b32.xlu0 %v2131_v2, %s2405_s12  ;;  %v1526_v50 = vmul.f32 %v4052_v31, %v1522_v40  ;;  %v2166_v27 = vsel %vm532_vm1, %v2164_v23, %v2165_v22 }
 0x1d4   :  { %v1525_v16 = vmul.f32 %v4055_v24, %v1522_v40  ;;  %v2193_v9 = vrot.slane %v2185_v38, 2  ;;  %v1528_v14 = vadd.f32 %v1524_v47, %v4064_v51  ;;  %v1527_v41 = vadd.f32 %v1523_v26, %v4066_v43 }
 0x1d5   :  { %v2188_v6 = vmul.f32 %v4052_v31, %v2184_v49  ;;  %v2187_v11 = vmul.f32 %v4055_v24, %v2184_v49  ;;  %v1530_v45 = vadd.f32 %v1526_v50, %v4077_v4 }
 0x1d6   :  { %2137 = vrot.lane.b32.xlu1 %v2130_v28, %s2405_s12  ;;  %v1570_v21 = vpop.permute.xlu1 %1569  ;;  %v1568_v7 = vpop.permute.xlu0 %1567  ;;  %v2194_v28 = vrot.slane %v2186_v5, 2  ;;  %v1529_v51 = vadd.f32 %v1525_v16, %v4080_v0 }
 0x1d7   :  { %v1580_v53 = vadd.f32 %v1570_v21, %v1518_v37  ;;  %v1579_v17 = vadd.f32 %v1568_v7, %v1517_v59  ;;  %2139 = vrot.lane.b32.xlu0 %v2134_v52, %s2405_s12  ;;  %v2196_v43 = vrot.slane %v2187_v11, 2 }
 0x1d8   :  { %v2195_v35 = vsel %vm532_vm1, %v2193_v9, %v2194_v28  ;;  %v1688_v63 = vstv %s2302_s2 }
 0x1d9   :  { %v1691_v23 = vmul.f32 %v4055_v24, %v1688_v63 }
 0x1da   :  { %2141 = vrot.lane.b32.xlu1 %v2133_v25, %s2405_s12  ;;  %v1574_v46 = vpop.permute.xlu1 %1573  ;;  %v1572_v48 = vpop.permute.xlu0 %1571  ;;  %v2197_v25 = vrot.slane %v2188_v6, 2 }
 0x1db   :  { %v1582_v54 = vadd.f32 %v1574_v46, %v1520_v19  ;;  %v1581_v32 = vadd.f32 %v1572_v48, %v1519_v61  ;;  %2167 = vrot.lane.b32.xlu0 %v2163_v13, %s2405_s12  ;;  %v1700_v26 = vrot.slane %v1691_v23, 1 }
 0x1dc   :  { %v2198_v2 = vsel %vm532_vm1, %v2196_v43, %v2197_v25 }
 0x1de   :  { %2169 = vrot.lane.b32.xlu1 %v2162_v58, %s2405_s12  ;;  %v1596_v12 = vpop.permute.xlu1 %1595  ;;  %v1594_v39 = vpop.permute.xlu0 %1593 }
 0x1df   :  { %v1606_v44 = vadd.f32 %v1596_v12, %v1528_v14  ;;  %v1605_v18 = vadd.f32 %v1594_v39, %v1527_v41  ;;  %2171 = vrot.lane.b32.xlu0 %v2166_v27, %s2405_s12 }
 0x1e2   :  { %2173 = vrot.lane.b32.xlu1 %v2165_v22, %s2405_s12  ;;  %v1600_v10 = vpop.permute.xlu1 %1599  ;;  %v1598_v42 = vpop.permute.xlu0 %1597 }
 0x1e3   :  { %v1608_v8 = vadd.f32 %v1600_v10, %v1530_v45  ;;  %v1607_v20 = vadd.f32 %v1598_v42, %v1529_v51  ;;  %2199 = vrot.lane.b32.xlu0 %v2195_v35, %s2405_s12 }
 0x1e6   :  { %2201 = vrot.lane.b32.xlu1 %v2194_v28, %s2405_s12  ;;  %v1622_v33 = vpop.permute.xlu1 %1621  ;;  %v1620_v1 = vpop.permute.xlu0 %1619 }
 0x1e7   :  { %v1632_v62 = vadd.f32 %v1622_v33, %v4096_v34  ;;  %v1631_v4 = vadd.f32 %v1620_v1, %v4098_v3  ;;  %2203 = vrot.lane.b32.xlu0 %v2198_v2, %s2405_s12  ;;  %v1690_v34 = vmul.f32 %v4032_v57, %v1688_v63  ;;  %v1689_v3 = vmul.f32 %v4038_v56, %v1688_v63 }
 0x1e9   :  { %v1698_v7 = vrot.slane %v1690_v34, 1  ;;  %v1697_v47 = vrot.slane %v1689_v3, 1 }
 0x1ea   :  { %2205 = vrot.lane.b32.xlu1 %v2197_v25, %s2405_s12  ;;  %v1626_v0 = vpop.permute.xlu1 %1625  ;;  %v1624_v36 = vpop.permute.xlu0 %1623  ;;  %s2304_s12 = sld [smem:[#allocation5 + $0x115]] }
 0x1eb   :  { %v1634_v60 = vadd.f32 %v1626_v0, %v4110_v15  ;;  %v1633_v40 = vadd.f32 %v1624_v36, %v4112_v29  ;;  %v1692_v29 = vmul.f32 %v4052_v31, %v1688_v63  ;;  %v1699_v38 = vsel %vm267_vm0, %v1697_v47, %v1698_v7 }
 0x1ec   :  { %v1708_v50 = vadd.f32 %v1698_v7, %v1632_v62  ;;  %v1707_v27 = vadd.f32 %v1699_v38, %v1631_v4 }
 0x1ed   :  { %v1701_v13 = vrot.slane %v1692_v29, 1 }
 0x1ee   :  { %v1648_v52 = vpop.permute.xlu1 %1647  ;;  %v1646_v58 = vpop.permute.xlu0 %1645 }
 0x1ef   :  { %v1658_v55 = vadd.f32 %v1648_v52, %v1580_v53  ;;  %v1657_v37 = vadd.f32 %v1646_v58, %v1579_v17  ;;  %v1712_v17 = vstv %s2303_s29  ;;  %v1702_v41 = vsel %vm267_vm0, %v1700_v26, %v1701_v13 }
 0x1f0   :  { %v1714_v46 = vmul.f32 %v4032_v57, %v1712_v17  ;;  %v1713_v48 = vmul.f32 %v4038_v56, %v1712_v17  ;;  %v1716_v16 = vmul.f32 %v4052_v31, %v1712_v17  ;;  %v1715_v28 = vmul.f32 %v4055_v24, %v1712_v17 }
 0x1f1   :  { %v1709_v35 = vadd.f32 %v1702_v41, %v1633_v40 }
 0x1f2   :  { %v1652_v59 = vpop.permute.xlu1 %1651  ;;  %v1650_v30 = vpop.permute.xlu0 %1649  ;;  %v1722_v6 = vrot.slane %v1714_v46, 1  ;;  %v1721_v11 = vrot.slane %v1713_v48, 1  ;;  %v1725_v45 = vrot.slane %v1716_v16, 1  ;;  %v1724_v51 = vrot.slane %v1715_v28, 1 }
 0x1f3   :  { %v1660_v49 = vadd.f32 %v1652_v59, %v1582_v54  ;;  %v1659_v21 = vadd.f32 %v1650_v30, %v1581_v32 }
 0x1f4   :  { %v1723_v10 = vsel %vm267_vm0, %v1721_v11, %v1722_v6  ;;  %v1732_v33 = vadd.f32 %v1722_v6, %v1658_v55  ;;  %v1726_v62 = vsel %vm267_vm0, %v1724_v51, %v1725_v45 }
 0x1f5   :  { %v1731_v1 = vadd.f32 %v1723_v10, %v1657_v37  ;;  %v1734_v34 = vadd.f32 %v1725_v45, %v1660_v49  ;;  %v1733_v3 = vadd.f32 %v1726_v62, %v1659_v21  ;;  %v1952_v45 = vstv %s2311_s30 }
 0x1f6   :  { %v1674_v22 = vpop.permute.xlu1 %1673  ;;  %v1672_v15 = vpop.permute.xlu0 %1671  ;;  %v1953_v10 = vmul.f32 %v4038_v56, %v1952_v45 }
 0x1f7   :  { %v1684_v5 = vadd.f32 %v1674_v22, %v1606_v44  ;;  %v1683_v53 = vadd.f32 %v1672_v15, %v1605_v18  ;;  %v1736_v44 = vstv %s2304_s12  ;;  %v1710_v18 = vadd.f32 %v1701_v13, %v1634_v60 }
 0x1f8   :  { %v1738_v42 = vmul.f32 %v4032_v57, %v1736_v44  ;;  %v1740_v40 = vmul.f32 %v4052_v31, %v1736_v44  ;;  %v1739_v52 = vmul.f32 %v4055_v24, %v1736_v44  ;;  %v1961_v62 = vrot.slane %v1953_v10, 2 }
 0x1fa   :  { %v1678_v19 = vpop.permute.xlu1 %1677  ;;  %v1676_v61 = vpop.permute.xlu0 %1675  ;;  %v1746_v36 = vrot.slane %v1738_v42, 1  ;;  %v1749_v37 = vrot.slane %v1740_v40, 1  ;;  %v1748_v7 = vrot.slane %v1739_v52, 1  ;;  %v1976_v42 = vstv %s2312_s4 }
 0x1fb   :  { %v1686_v54 = vadd.f32 %v1678_v19, %v1608_v8  ;;  %v1685_v32 = vadd.f32 %v1676_v61, %v1607_v20  ;;  %v1737_v8 = vmul.f32 %v4038_v56, %v1736_v44 }
 0x1fc   :  { %v1756_v15 = vadd.f32 %v1746_v36, %v1684_v5  ;;  %v1750_v38 = vsel %vm267_vm0, %v1748_v7, %v1749_v37 }
 0x1fd   :  { %v1745_v60 = vrot.slane %v1737_v8, 1  ;;  %v1758_v21 = vadd.f32 %v1749_v37, %v1686_v54  ;;  %v1757_v61 = vadd.f32 %v1750_v38, %v1685_v32 }
 0x1fe   :  { %v1778_v9 = vpop.permute.xlu1 %1777  ;;  %v1776_v14 = vpop.permute.xlu0 %1775 }
 0x1ff   :  { %v4166_v12 = vadd.f32 %v1778_v9, %v1708_v50  ;;  %v4168_v39 = vadd.f32 %v1776_v14, %v1707_v27  ;;  %v1747_v55 = vsel %vm267_vm0, %v1745_v60, %v1746_v36  ;;  %v1978_v36 = vmul.f32 %v4032_v57, %v1976_v42 }
 0x200   :  { %v1755_v29 = vadd.f32 %v1747_v55, %v1683_v53  ;;  %v1977_v60 = vmul.f32 %v4038_v56, %v1976_v42 }
 0x201   :  { %v1986_v37 = vrot.slane %v1978_v36, 2 }
 0x202   :  { %v1782_v25 = vpop.permute.xlu1 %1781  ;;  %v1780_v43 = vpop.permute.xlu0 %1779  ;;  %v1985_v7 = vrot.slane %v1977_v60, 2 }
 0x203   :  { %v4173_v20 = vadd.f32 %v1782_v25, %v1710_v18  ;;  %v4175_v2 = vadd.f32 %v1780_v43, %v1709_v35  ;;  %v1954_v43 = vmul.f32 %v4032_v57, %v1952_v45 }
 0x206   :  { %v1810_v4 = vpop.permute.xlu1 %1809  ;;  %v1808_v0 = vpop.permute.xlu0 %1807 }
 0x207   :  { %v4180_v58 = vadd.f32 %v1810_v4, %v1732_v33  ;;  %v4182_v63 = vadd.f32 %v1808_v0, %v1731_v1  ;;  %v1962_v1 = vrot.slane %v1954_v43, 2  ;;  %v1956_v4 = vmul.f32 %v4052_v31, %v1952_v45 }
 0x208   :  { %v1955_v0 = vmul.f32 %v4055_v24, %v1952_v45 }
 0x20a   :  { %v1814_v59 = vpop.permute.xlu1 %1813  ;;  %v1812_v30 = vpop.permute.xlu0 %1811  ;;  %v1964_v55 = vrot.slane %v1955_v0, 2 }
 0x20b   :  { %v4185_v47 = vadd.f32 %v1814_v59, %v1734_v34  ;;  %v4187_v22 = vadd.f32 %v1812_v30, %v1733_v3  ;;  %v1963_v59 = vsel %vm532_vm1, %v1961_v62, %v1962_v1  ;;  %v1965_v30 = vrot.slane %v1956_v4, 2 }
 0x20e   :  { %v1842_v23 = vpop.permute.xlu1 %1841  ;;  %v1840_v17 = vpop.permute.xlu0 %1839 }
 0x20f   :  { %v4190_v19 = vadd.f32 %v1842_v23, %v1756_v15  ;;  %v4192_v49 = vadd.f32 %v1840_v17, %v1755_v29  ;;  %v2000_v15 = vstv %s2313_s5 }
 0x210   :  { %v2002_v45 = vmul.f32 %v4032_v57, %v2000_v15  ;;  %v2001_v43 = vmul.f32 %v4038_v56, %v2000_v15 }
 0x212   :  { %v1846_v13 = vpop.permute.xlu1 %1845  ;;  %v1844_v26 = vpop.permute.xlu0 %1843 }
 0x213   :  { %v4194_v46 = vadd.f32 %v1846_v13, %v1758_v21  ;;  %v4196_v48 = vadd.f32 %v1844_v26, %v1757_v61  ;;  %v1980_v13 = vmul.f32 %v4052_v31, %v1976_v42  ;;  %v1979_v26 = vmul.f32 %v4055_v24, %v1976_v42 }
 0x215   :  { %v1989_v0 = vrot.slane %v1980_v13, 2  ;;  %v1988_v42 = vrot.slane %v1979_v26, 2 }
 0x216   :  { %v1874_v50 = vpop.permute.xlu1 %1873  ;;  %v1872_v27 = vpop.permute.xlu0 %1871 }
 0x217   :  { %v1884_v34 = vadd.f32 %v1874_v50, %v4166_v12  ;;  %v1883_v3 = vadd.f32 %v1872_v27, %v4168_v39  ;;  %v1966_v12 = vsel %vm532_vm1, %v1964_v55, %v1965_v30  ;;  %v1987_v39 = vsel %vm532_vm1, %v1985_v7, %v1986_v37 }
 0x219   :  { %v1972_v21 = vadd.f32 %v1962_v1, %v1884_v34  ;;  %v1971_v61 = vadd.f32 %v1963_v59, %v1883_v3  ;;  %v1990_v34 = vsel %vm532_vm1, %v1988_v42, %v1989_v0  ;;  %v2004_v3 = vmul.f32 %v4052_v31, %v2000_v15 }
 0x21a   :  { %v1878_v5 = vpop.permute.xlu1 %1877  ;;  %v1876_v53 = vpop.permute.xlu0 %1875  ;;  %v2003_v59 = vmul.f32 %v4055_v24, %v2000_v15 }
 0x21b   :  { %v1886_v17 = vadd.f32 %v1878_v5, %v4173_v20  ;;  %v1885_v38 = vadd.f32 %v1876_v53, %v4175_v2  ;;  %v2013_v7 = vrot.slane %v2004_v3, 2 }
 0x21c   :  { %v2012_v15 = vrot.slane %v2003_v59, 2 }
 0x21d   :  { %v1974_v10 = vadd.f32 %v1965_v30, %v1886_v17  ;;  %v1973_v1 = vadd.f32 %v1966_v12, %v1885_v38 }
 0x21e   :  { %v1906_v16 = vpop.permute.xlu1 %1905  ;;  %v1904_v28 = vpop.permute.xlu0 %1903  ;;  %v2014_v12 = vsel %vm532_vm1, %v2012_v15, %v2013_v7 }
 0x21f   :  { %v1916_v20 = vadd.f32 %v1906_v16, %v4180_v58  ;;  %v1915_v2 = vadd.f32 %v1904_v28, %v4182_v63  ;;  %v2010_v58 = vrot.slane %v2002_v45, 2  ;;  %v2009_v63 = vrot.slane %v2001_v43, 2 }
 0x221   :  { %v1996_v57 = vadd.f32 %v1986_v37, %v1916_v20  ;;  %v1995_v56 = vadd.f32 %v1987_v39, %v1915_v2  ;;  %v2011_v24 = vsel %vm532_vm1, %v2009_v63, %v2010_v58 }
 0x222   :  { %v4198_v9 = vpop.permute.xlu1 %1909  ;;  %v4200_v14 = vpop.permute.xlu0 %1907 }
 0x226   :  { %v4202_v41 = vpop.permute.xlu1 %1937  ;;  %v4204_v54 = vpop.permute.xlu0 %1935 }
 0x227   :  { %v1947_v31 = vadd.f32 %v4204_v54, %v4192_v49 }
 0x229   :  { %v2019_v49 = vadd.f32 %v2011_v24, %v1947_v31 }
 0x22a   :  { %v4208_v6 = vpop.permute.xlu0 %1939 }
 0x22c   :  { %v4206_v32 = vpop.permute.xlu1 %1941 }
 0x22e   :  { %v2040_v44 = vpop.permute.xlu0 %2039 }
 0x22f   :  { %v2051_v27 = vadd.f32 %v2040_v44, %v1971_v61 }
 0x230   :  { %v2042_v11 = vpop.permute.xlu1 %2041 }
 0x231   :  { %v2052_v50 = vadd.f32 %v2042_v11, %v1972_v21  ;;  %v1950_v21 = vadd.f32 %v4206_v32, %v4194_v46 }
 0x232   :  { %v2044_v35 = vpop.permute.xlu0 %2043 }
 0x233   :  { %v2053_v44 = vadd.f32 %v2044_v35, %v1973_v1  ;;  %v1917_v35 = vadd.f32 %v4200_v14, %v4187_v22  ;;  %v2022_v32 = vadd.f32 %v2013_v7, %v1950_v21 }
 0x234   :  { %v2046_v18 = vpop.permute.xlu1 %2045 }
 0x235   :  { %v2054_v11 = vadd.f32 %v2046_v18, %v1974_v10  ;;  %v1918_v18 = vadd.f32 %v4198_v9, %v4185_v47  ;;  %v1948_v47 = vadd.f32 %v4202_v41, %v4190_v19 }
 0x236   :  { %v4212_v25 = vpop.permute.xlu0 %2071 }
 0x237   :  { %v2083_v55 = vadd.f32 %v4212_v25, %v1995_v56  ;;  %v1998_v14 = vadd.f32 %v1989_v0, %v1918_v18  ;;  %v2020_v19 = vadd.f32 %v2010_v58, %v1948_v47 }
 0x238   :  { %v4210_v51 = vpop.permute.xlu1 %2073 }
 0x239   :  { %v2084_v30 = vadd.f32 %v4210_v51, %v1996_v57  ;;  %v1997_v51 = vadd.f32 %v1990_v34, %v1917_v35 }
 0x23a   :  { %v4218_v33 = vpop.permute.xlu0 %2075 }
 0x23b   :  { %v2085_v38 = vadd.f32 %v4218_v33, %v1997_v51 }
 0x23c   :  { %v4216_v8 = vpop.permute.xlu1 %2077 }
 0x23d   :  { %v2086_v17 = vadd.f32 %v4216_v8, %v1998_v14  ;;  %v1949_v8 = vadd.f32 %v4208_v6, %v4196_v48 }
 0x23e   :  { %v4226_v52 = vpop.permute.xlu0 %2103 }
 0x23f   :  { %v2115_v13 = vadd.f32 %v4226_v52, %v2019_v49  ;;  %v2021_v6 = vadd.f32 %v2014_v12, %v1949_v8 }
 0x240   :  { %v4224_v40 = vpop.permute.xlu1 %2105 }
 0x241   :  { %v2116_v39 = vadd.f32 %v4224_v40, %v2020_v19 }
 0x242   :  { %v4233_v23 = vpop.permute.xlu0 %2107 }
 0x243   :  { %v2117_v52 = vadd.f32 %v4233_v23, %v2021_v6 }
 0x244   :  { %v4231_v29 = vpop.permute.xlu1 %2109 }
 0x245   :  { %v2118_v40 = vadd.f32 %v4231_v29, %v2022_v32 }
 0x246   :  { %v2136_v53 = vpop.permute.xlu0 %2135 }
 0x247   :  { %v2147_v4 = vadd.f32 %v2136_v53, %v2051_v27 }
 0x248   :  { %v2138_v5 = vpop.permute.xlu1 %2137 }
 0x249   :  { %v2148_v62 = vadd.f32 %v2138_v5, %v2052_v50  ;;  %2216 = vst.msk [vmem:[%s4321_s3] sm:$0xff] %vm2215_vm3, %v2147_v4 }
 0x24a   :  { %v2140_v28 = vpop.permute.xlu0 %2139 }
 0x24b   :  { %2218 = vst.msk [vmem:[%s4321_s3 + $0x8] sm:$0x3f] %vm2217_vm2, %v2148_v62  ;;  %v2149_v60 = vadd.f32 %v2140_v28, %v2053_v44 }
 0x24c   :  { %v2142_v16 = vpop.permute.xlu1 %2141 }
 0x24d   :  { %v2150_v36 = vadd.f32 %v2142_v16, %v2054_v11  ;;  %2219 = vst.msk [vmem:[%s4321_s3 + $0x30] sm:$0xff] %vm2215_vm3, %v2149_v60 }
 0x24e   :  { %v2168_v9 = vpop.permute.xlu0 %2167 }
 0x24f   :  { %2220 = vst.msk [vmem:[%s4321_s3 + $0x38] sm:$0x3f] %vm2217_vm2, %v2150_v36  ;;  %v2179_v37 = vadd.f32 %v2168_v9, %v2083_v55 }
 0x250   :  { %v2170_v22 = vpop.permute.xlu1 %2169 }
 0x251   :  { %v2180_v25 = vadd.f32 %v2170_v22, %v2084_v30  ;;  %2320 = vst.msk [vmem:[%s4321_s3 + $0x10] sm:$0xff] %vm2215_vm3, %v2179_v37 }
 0x252   :  { %v2172_v54 = vpop.permute.xlu0 %2171 }
 0x253   :  { %2321 = vst.msk [vmem:[%s4321_s3 + $0x18] sm:$0x3f] %vm2217_vm2, %v2180_v25  ;;  %v2181_v61 = vadd.f32 %v2172_v54, %v2085_v38 }
 0x254   :  { %v2174_v41 = vpop.permute.xlu1 %2173 }
 0x255   :  { %v2182_v33 = vadd.f32 %v2174_v41, %v2086_v17  ;;  %2322 = vst.msk [vmem:[%s4321_s3 + $0x40] sm:$0xff] %vm2215_vm3, %v2181_v61 }
 0x256   :  { %v2200_v48 = vpop.permute.xlu0 %2199 }
 0x257   :  { %2323 = vst.msk [vmem:[%s4321_s3 + $0x48] sm:$0x3f] %vm2217_vm2, %v2182_v33  ;;  %v2211_v50 = vadd.f32 %v2200_v48, %v2115_v13 }
 0x258   :  { %v2202_v46 = vpop.permute.xlu1 %2201 }
 0x259   :  { %v2212_v26 = vadd.f32 %v2202_v46, %v2116_v39  ;;  %2324 = vst.msk [vmem:[%s4321_s3 + $0x20] sm:$0xff] %vm2215_vm3, %v2211_v50 }
 0x25a   :  { %v2204_v45 = vpop.permute.xlu0 %2203 }
 0x25b   :  { %2325 = vst.msk [vmem:[%s4321_s3 + $0x28] sm:$0x3f] %vm2217_vm2, %v2212_v26  ;;  %v2213_v20 = vadd.f32 %v2204_v45, %v2117_v52 }
 0x25c   :  { %v2206_v27 = vpop.permute.xlu1 %2205 }
 0x25d   :  { %v2214_v43 = vadd.f32 %v2206_v27, %v2118_v40  ;;  %2326 = vst.msk [vmem:[%s4321_s3 + $0x50] sm:$0xff] %vm2215_vm3, %v2213_v20 }
 0x25f   :  { %2327 = vst.msk [vmem:[%s4321_s3 + $0x58] sm:$0x3f] %vm2217_vm2, %v2214_v43 }
 0x260   :  { %2235 = vsyncpa [#allocation3], 1 }
 0x261   :  { %2236 = vsyncpa [#allocation4], 1 }
 0x262   :  { %2237 = vsyncpa [#allocation7], 1 }

</bundles_post_ra>
